<compile_context>
chip_gen: v5e
topology: v5e:2x2
jax: 0.10.0
libtpu: 0.0.40
codegen_flags: <defaults>
</compile_context>

<pallas_src>
import functools

import jax
import jax.numpy as jnp
import numpy as np
from jax import lax
from jax.experimental import pallas as pl
from jax.experimental.pallas import tpu as pltpu


def _lane_pad(n):
    return ((n + 127) // 128) * 128


# ------------------------------------------------------------------
# Fused Pallas kernel: entire Refine forward for one group of Bt images.
# ------------------------------------------------------------------
def _refine_kernel(x_ref, d_ref, m_ref,
                   in_w_ref, in_b_ref,
                   w1_ref, b1_ref, w2_ref, b2_ref,
                   ow_ref, ob_ref,
                   o_ref,
                   pad_ref, feat_ref,
                   *, H, W, bt, cfeat, cexp, num_blocks):
    HW = H * W
    NC = bt * HW                      # lane columns handled per grid step
    PAD = _lane_pad(W + 1)            # lane-aligned halo, covers |shift| <= W+1

    # Zero only the two halo slabs (the interior is fully overwritten by every
    # conv; halo reads are masked, but must not contain NaN garbage).
    zeros_halo = jnp.zeros((pad_ref.shape[0], PAD), jnp.bfloat16)
    pad_ref[:, 0:PAD] = zeros_halo
    pad_ref[:, PAD + NC:PAD + NC + PAD] = zeros_halo

    def conv3x3(a, get_w_tap, bias, cin, cout):
        """3x3 'same' conv as 9 accumulated (cout,cin)@(cin,NC) MXU matmuls."""
        # one bf16 cast + one lane-aligned store of the activation per conv
        pad_ref[0:cin, PAD:PAD + NC] = a.astype(jnp.bfloat16)
        acc = jnp.zeros((cout, NC), jnp.float32)
        for t in range(9):
            dy, dx = t // 3 - 1, t % 3 - 1
            k = dy * W + dx
            sh = pad_ref[0:cin, PAD + k:PAD + k + NC]        # (cin, NC) bf16
            if t != 4:                                       # center tap: no mask
                sh = sh * m_ref[pl.ds(t, 1), :]              # bf16 boundary mask
            acc = acc + jnp.dot(get_w_tap(t), sh,
                                preferred_element_type=jnp.float32)
        return acc + bias                                    # (cout, NC) f32

    def mish(v):
        # mish(x) = x * tanh(softplus(x)) = x * (e^2 + 2e) / (e^2 + 2e + 2),
        # e = exp(x).  Clip avoids e^2 overflow; limit is exact in f32.
        e = jnp.exp(jnp.minimum(v, 20.0))
        num = e * (e + 2.0)
        return v * num * pl.reciprocal(num + 2.0, approx=True)

    x = x_ref[0].astype(jnp.float32)                          # (8, NC)
    feat_ref[...] = conv3x3(x, lambda t: in_w_ref[t], in_b_ref[...], 8, cfeat)

    @pl.loop(0, num_blocks)
    def _(i):
        h = mish(conv3x3(feat_ref[...], lambda t: w1_ref[i * 9 + t],
                         b1_ref[i], cfeat, cexp))
        feat_ref[...] = feat_ref[...] + conv3x3(
            h, lambda t: w2_ref[i * 9 + t], b2_ref[i], cexp, cfeat)

    disp_res = conv3x3(feat_ref[...], lambda t: ow_ref[t], ob_ref[...],
                       cfeat, 8)[0:1]                         # (1, NC)
    o_ref[0] = (d_ref[0].astype(jnp.float32) + disp_res).astype(o_ref.dtype)


# ------------------------------------------------------------------
# Host-side helpers
# ------------------------------------------------------------------
def _make_masks(H, W, bt):
    """(9, bt*H*W) bf16 in-bounds masks for the 9 conv taps (precomputed)."""
    p = np.arange(H * W)
    py, px = p // W, p % W
    rows = []
    for t in range(9):
        dy, dx = t // 3 - 1, t % 3 - 1
        ok = ((py + dy) >= 0) & ((py + dy) < H) & \
             ((px + dx) >= 0) & ((px + dx) < W)
        rows.append(ok.astype(np.float32))
    m = np.tile(np.stack(rows, 0), (1, bt))
    return jnp.asarray(m, dtype=jnp.bfloat16)


def _pick_bt(n, max_bt=2):
    # Pack several images per grid step, but keep >= 2 grid steps so both
    # TensorCores stay busy on v7x ("parallel" grid axis); cap bt for vregs.
    for bt in range(max_bt, 0, -1):
        if n % bt == 0 and n // bt >= 2:
            return bt
    return 1


# ------------------------------------------------------------------
# Wrapper: NCHW in / NCHW out, single fused pallas_call over the batch.
# ------------------------------------------------------------------
def refine_forward(packed, info_entr, disp_raw, img, *, bt=None):
    N, _, H, W = disp_raw.shape
    HW = H * W
    cfeat = packed["in_b"].shape[0]
    num_blocks, cexp, _ = packed["b1"].shape
    cmax = max(8, cfeat, cexp)
    if bt is None:
        bt = _pick_bt(N)
    assert N % bt == 0
    G = N // bt
    NC = bt * HW
    PAD = _lane_pad(W + 1)

    # channel-major, spatially flattened; pad 5 -> 8 input channels; pack `bt`
    # images side-by-side along the lane axis.
    x = jnp.concatenate(
        [info_entr, disp_raw, img, jnp.zeros((N, 3, H, W), img.dtype)],
        axis=1).reshape(G, bt, 8, HW).transpose(0, 2, 1, 3).reshape(G, 8, NC)
    d = disp_raw.reshape(G, bt, 1, HW).transpose(0, 2, 1, 3).reshape(G, 1, NC)
    masks = _make_masks(H, W, bt)

    kernel = functools.partial(_refine_kernel, H=H, W=W, bt=bt, cfeat=cfeat,
                               cexp=cexp, num_blocks=num_blocks)

    flops = int(2 * 9 * HW * N *
                (8 * cfeat + 2 * num_blocks * cfeat * cexp + cfeat))
    transc = int(2 * N * num_blocks * cexp * HW)
    bytes_acc = int(sum(int(np.prod(v.shape)) * v.dtype.itemsize
                        for v in packed.values())
                    + x.size * 4 + d.size * 4 + N * HW * 4
                    + masks.size * 2)

    out = pl.pallas_call(
        kernel,
        out_shape=jax.ShapeDtypeStruct((G, 1, NC), disp_raw.dtype),
        grid_spec=pltpu.PrefetchScalarGridSpec(
            num_scalar_prefetch=0,
            grid=(G,),
            in_specs=[
                pl.BlockSpec((1, 8, NC), lambda g: (g, 0, 0)),       # x
                pl.BlockSpec((1, 1, NC), lambda g: (g, 0, 0)),       # disp_raw
                pl.BlockSpec(masks.shape, lambda g: (0, 0)),         # tap masks
                pl.BlockSpec(packed["in_w"].shape, lambda g: (0, 0, 0)),
                pl.BlockSpec(packed["in_b"].shape, lambda g: (0, 0)),
                pl.BlockSpec(packed["w1"].shape, lambda g: (0, 0, 0)),
                pl.BlockSpec(packed["b1"].shape, lambda g: (0, 0, 0)),
                pl.BlockSpec(packed["w2"].shape, lambda g: (0, 0, 0)),
                pl.BlockSpec(packed["b2"].shape, lambda g: (0, 0, 0)),
                pl.BlockSpec(packed["out_w"].shape, lambda g: (0, 0, 0)),
                pl.BlockSpec(packed["out_b"].shape, lambda g: (0, 0)),
            ],
            out_specs=pl.BlockSpec((1, 1, NC), lambda g: (g, 0, 0)),
            scratch_shapes=[
                pltpu.VMEM((cmax, NC + 2 * PAD), jnp.bfloat16),  # zero-halo act
                pltpu.VMEM((cfeat, NC), jnp.float32),            # resident feat
            ],
        ),
        compiler_params=pltpu.CompilerParams(
            dimension_semantics=("parallel",),
            vmem_limit_bytes=32 * 1024 * 1024,
        ),
        cost_estimate=pl.CostEstimate(flops=flops, transcendentals=transc,
                                      bytes_accessed=bytes_acc),
    )(x, d, masks,
      packed["in_w"], packed["in_b"],
      packed["w1"], packed["b1"], packed["w2"], packed["b2"],
      packed["out_w"], packed["out_b"])

    return out.reshape(G, 1, bt, HW).transpose(0, 2, 1, 3).reshape(N, 1, H, W)


# ------------------------------------------------------------------
# Parameter setup (deterministic, in-script).  HWIO weights; weight-norm is
# resolved to an effective weight at init time (matches PyTorch semantics).
# ------------------------------------------------------------------
def _weight_normed(key, cin, cout):
    kv, kg = jax.random.split(key)
    v = 0.05 * jax.random.normal(kv, (3, 3, cin, cout), jnp.float32)
    g = 1.0 + 0.1 * jax.random.normal(kg, (cout,), jnp.float32)
    norm = jnp.sqrt(jnp.sum(v * v, axis=(0, 1, 2), keepdims=True)) + 1e-12
    return g.reshape(1, 1, 1, cout) * v / norm


def init_params(key, num_blocks=8, feature_dim=16, expansion=4):
    keys = jax.random.split(key, 4 + 4 * num_blocks)
    p = {}
    p["in_w"] = 0.05 * jax.random.normal(keys[0], (3, 3, 5, feature_dim), jnp.float32)
    p["in_b"] = 0.01 * jax.random.normal(keys[1], (feature_dim,), jnp.float32)
    blocks = []
    for i in range(num_blocks):
        k1, k2, k3, k4 = keys[4 + 4 * i: 8 + 4 * i]
        w1 = _weight_normed(k1, feature_dim, feature_dim * expansion)
        b1 = 0.01 * jax.random.normal(k2, (feature_dim * expansion,), jnp.float32)
        w2 = _weight_normed(k3, feature_dim * expansion, feature_dim)
        b2 = 0.01 * jax.random.normal(k4, (feature_dim,), jnp.float32)
        blocks.append((w1, b1, w2, b2))
    p["blocks"] = blocks
    p["out_w"] = 0.05 * jax.random.normal(keys[2], (3, 3, feature_dim, 1), jnp.float32)
    p["out_b"] = 0.01 * jax.random.normal(keys[3], (1,), jnp.float32)
    return p


def pack_params(p):
    """HWIO (3,3,Cin,Cout) weights -> per-tap (9, Cout, Cin) bf16 stacks."""
    def pack_w(w):
        cin, cout = w.shape[2], w.shape[3]
        return jnp.transpose(w, (0, 1, 3, 2)).reshape(9, cout, cin).astype(jnp.bfloat16)

    in_w8 = jnp.pad(p["in_w"], ((0, 0), (0, 0), (0, 3), (0, 0)))    # cin 5 -> 8
    out_w8 = jnp.pad(p["out_w"], ((0, 0), (0, 0), (0, 0), (0, 7)))  # cout 1 -> 8
    out_b8 = jnp.pad(p["out_b"], (0, 7))
    return {
        "in_w": pack_w(in_w8),                                               # (9, 16, 8)
        "in_b": p["in_b"].reshape(-1, 1).astype(jnp.float32),                # (16, 1)
        "w1": jnp.concatenate([pack_w(w1) for (w1, _, _, _) in p["blocks"]],
                              axis=0),                                       # (nb*9, 64, 16)
        "b1": jnp.stack([b1.reshape(-1, 1) for (_, b1, _, _) in p["blocks"]]
                        ).astype(jnp.float32),                               # (nb, 64, 1)
        "w2": jnp.concatenate([pack_w(w2) for (_, _, w2, _) in p["blocks"]],
                              axis=0),                                       # (nb*9, 16, 64)
        "b2": jnp.stack([b2.reshape(-1, 1) for (_, _, _, b2) in p["blocks"]]
                        ).astype(jnp.float32),                               # (nb, 16, 1)
        "out_w": pack_w(out_w8),                                             # (9, 8, 16)
        "out_b": out_b8.reshape(-1, 1).astype(jnp.float32),                  # (8, 1)
    }


# ------------------------------------------------------------------
# Pure-JAX reference (correctness sanity-check only)
# ------------------------------------------------------------------
def _conv_ref(x, w, b):
    y = lax.conv_general_dilated(
        x, w, window_strides=(1, 1), padding="SAME",
        dimension_numbers=("NHWC", "HWIO", "NHWC"))
    return y + b.reshape(1, 1, 1, -1)


def _mish_ref(x):
    sp = jnp.maximum(x, 0.0) + jnp.log(1.0 + jnp.exp(-jnp.abs(x)))
    return x * jnp.tanh(sp)


def refine_reference(params, info_entr, disp_raw, img):
    x = jnp.concatenate([info_entr, disp_raw, img], axis=1)
    x = jnp.transpose(x, (0, 2, 3, 1))
    feat = _conv_ref(x, params["in_w"], params["in_b"])
    for (w1, b1, w2, b2) in params["blocks"]:
        h = _mish_ref(_conv_ref(feat, w1, b1))
        feat = feat + _conv_ref(h, w2, b2)
    disp_res = _conv_ref(feat, params["out_w"], params["out_b"])
    disp_res = jnp.transpose(disp_res, (0, 3, 1, 2))
    return disp_raw + disp_res


# ------------------------------------------------------------------
if __name__ == "__main__":
    key = jax.random.PRNGKey(0)
    k1, k2, k3, kp = jax.random.split(key, 4)

    N, H, W = 2, 16, 16
    info_entr = jax.random.normal(k1, (N, 1, H, W), jnp.float32)
    disp_raw = jax.random.normal(k2, (N, 1, H, W), jnp.float32)
    img = jax.random.normal(k3, (N, 3, H, W), jnp.float32)

    params = init_params(kp, num_blocks=8, feature_dim=16, expansion=4)
    packed = pack_params(params)

    fwd = jax.jit(refine_forward)
    out = jax.block_until_ready(fwd(packed, info_entr, disp_raw, img))

    ref = jax.block_until_ready(refine_reference(params, info_entr, disp_raw, img))
    assert out.shape == (N, 1, H, W), out.shape
    if not np.allclose(np.asarray(out), np.asarray(ref), rtol=3e-2, atol=5e-2):
        raise AssertionError(
            f"mismatch vs reference, max abs diff = "
            f"{float(jnp.max(jnp.abs(out - ref)))}")

    print("KERNEL_OK")
</pallas_src>

<mosaic_0001>
module attributes {stable_mosaic.version = 11 : i64} {
  func.func @_refine_kernel(%arg0: i32, %arg1: memref<1x8x256xf32, #tpu.memory_space<vmem>>, %arg2: memref<1x1x256xf32, #tpu.memory_space<vmem>>, %arg3: memref<9x256xbf16, #tpu.memory_space<vmem>>, %arg4: memref<9x16x8xbf16, #tpu.memory_space<vmem>>, %arg5: memref<16x1xf32, #tpu.memory_space<vmem>>, %arg6: memref<72x64x16xbf16, #tpu.memory_space<vmem>>, %arg7: memref<8x64x1xf32, #tpu.memory_space<vmem>>, %arg8: memref<72x16x64xbf16, #tpu.memory_space<vmem>>, %arg9: memref<8x16x1xf32, #tpu.memory_space<vmem>>, %arg10: memref<9x8x16xbf16, #tpu.memory_space<vmem>>, %arg11: memref<8x1xf32, #tpu.memory_space<vmem>>, %arg12: memref<1x1x256xf32, #tpu.memory_space<vmem>>, %arg13: memref<64x512xbf16, #tpu.memory_space<vmem>>, %arg14: memref<16x256xf32, #tpu.memory_space<vmem>>) attributes {dimension_semantics = [#tpu.dimension_semantics<parallel>], iteration_bounds = array<i64: 2>, scalar_prefetch = 0 : i64, scratch_operands = 2 : i64, tpu.core_type = #tpu.core_type<tc>, window_params = [{transform_indices = @transform_0, window_bounds = array<i64: 1, 8, 256>}, {transform_indices = @transform_1, window_bounds = array<i64: 1, 1, 256>}, {pipeline_mode = #tpu.pipeline_mode<synchronous>, transform_indices = @transform_2, window_bounds = array<i64: 9, 256>}, {pipeline_mode = #tpu.pipeline_mode<synchronous>, transform_indices = @transform_3, window_bounds = array<i64: 9, 16, 8>}, {pipeline_mode = #tpu.pipeline_mode<synchronous>, transform_indices = @transform_4, window_bounds = array<i64: 16, 1>}, {pipeline_mode = #tpu.pipeline_mode<synchronous>, transform_indices = @transform_5, window_bounds = array<i64: 72, 64, 16>}, {pipeline_mode = #tpu.pipeline_mode<synchronous>, transform_indices = @transform_6, window_bounds = array<i64: 8, 64, 1>}, {pipeline_mode = #tpu.pipeline_mode<synchronous>, transform_indices = @transform_7, window_bounds = array<i64: 72, 16, 64>}, {pipeline_mode = #tpu.pipeline_mode<synchronous>, transform_indices = @transform_8, window_bounds = array<i64: 8, 16, 1>}, {pipeline_mode = #tpu.pipeline_mode<synchronous>, transform_indices = @transform_9, window_bounds = array<i64: 9, 8, 16>}, {pipeline_mode = #tpu.pipeline_mode<synchronous>, transform_indices = @transform_10, window_bounds = array<i64: 8, 1>}, {transform_indices = @transform_11, window_bounds = array<i64: 1, 1, 256>}]} {
    %cst = arith.constant 0.000000e+00 : bf16
    %0 = vector.broadcast %cst : bf16 to vector<64x128xbf16>
    %c0 = arith.constant 0 : index
    %c0_0 = arith.constant 0 : index
    %1 = vector.load %arg13[%c0, %c0_0] : memref<64x512xbf16, #tpu.memory_space<vmem>>, vector<64x128xbf16>
    tpu.vector_store %arg13[%c0, %c0_0], %0 {strides = array<i32>} : memref<64x512xbf16, #tpu.memory_space<vmem>>, vector<64x128xbf16>,
    %c0_1 = arith.constant 0 : index
    %c384 = arith.constant 384 : index
    %2 = vector.load %arg13[%c0_1, %c384] : memref<64x512xbf16, #tpu.memory_space<vmem>>, vector<64x128xbf16>
    tpu.vector_store %arg13[%c0_1, %c384], %0 {strides = array<i32>} : memref<64x512xbf16, #tpu.memory_space<vmem>>, vector<64x128xbf16>,
    %c0_2 = arith.constant 0 : index
    %c0_3 = arith.constant 0 : index
    %c0_4 = arith.constant 0 : index
    %3 = vector.load %arg1[%c0_2, %c0_3, %c0_4] : memref<1x8x256xf32, #tpu.memory_space<vmem>>, vector<1x8x256xf32>
    %4 = vector.shape_cast %3 : vector<1x8x256xf32> to vector<8x256xf32>
    %c0_5 = arith.constant 0 : index
    %c0_6 = arith.constant 0 : index
    %5 = vector.load %arg5[%c0_5, %c0_6] : memref<16x1xf32, #tpu.memory_space<vmem>>, vector<16x1xf32>
    %6 = arith.truncf %4 : vector<8x256xf32> to vector<8x256xbf16>
    %c0_7 = arith.constant 0 : index
    %c128 = arith.constant 128 : index
    %7 = vector.load %arg13[%c0_7, %c128] : memref<64x512xbf16, #tpu.memory_space<vmem>>, vector<8x256xbf16>
    tpu.vector_store %arg13[%c0_7, %c128], %6 {strides = array<i32>} : memref<64x512xbf16, #tpu.memory_space<vmem>>, vector<8x256xbf16>,
    %cst_8 = arith.constant 0.000000e+00 : f32
    %8 = vector.broadcast %cst_8 : f32 to vector<16x256xf32>
    %c0_9 = arith.constant 0 : index
    %c111 = arith.constant 111 : index
    %9 = vector.load %arg13[%c0_9, %c111] : memref<64x512xbf16, #tpu.memory_space<vmem>>, vector<8x256xbf16>
    %c0_10 = arith.constant 0 : index
    %c0_11 = arith.constant 0 : index
    %10 = vector.load %arg3[%c0_10, %c0_11] : memref<9x256xbf16, #tpu.memory_space<vmem>>, vector<1x256xbf16>
    %11 = vector.broadcast %10 : vector<1x256xbf16> to vector<8x256xbf16>
    %12 = arith.mulf %9, %11 : vector<8x256xbf16>
    %c0_12 = arith.constant 0 : index
    %c0_13 = arith.constant 0 : index
    %c0_14 = arith.constant 0 : index
    %13 = vector.load %arg4[%c0_12, %c0_13, %c0_14] : memref<9x16x8xbf16, #tpu.memory_space<vmem>>, vector<1x16x8xbf16>
    %14 = vector.shape_cast %13 : vector<1x16x8xbf16> to vector<16x8xbf16>
    %cst_15 = arith.constant dense<0.000000e+00> : vector<16x256xf32>
    %15 = tpu.matmul %14, %12, %cst_15 {dimension_numbers = #tpu.dot_dimension_numbers<[1], [0], [0], [1], [0, 0, 1, 1], [], []>} : vector<16x8xbf16>, vector<8x256xbf16>, vector<16x256xf32> -> vector<16x256xf32>
    %16 = arith.addf %8, %15 : vector<16x256xf32>
    %c0_16 = arith.constant 0 : index
    %c112 = arith.constant 112 : index
    %17 = vector.load %arg13[%c0_16, %c112] : memref<64x512xbf16, #tpu.memory_space<vmem>>, vector<8x256xbf16>
    %c1 = arith.constant 1 : index
    %c0_17 = arith.constant 0 : index
    %18 = vector.load %arg3[%c1, %c0_17] : memref<9x256xbf16, #tpu.memory_space<vmem>>, vector<1x256xbf16>
    %19 = vector.broadcast %18 : vector<1x256xbf16> to vector<8x256xbf16>
    %20 = arith.mulf %17, %19 : vector<8x256xbf16>
    %c1_18 = arith.constant 1 : index
    %c0_19 = arith.constant 0 : index
    %c0_20 = arith.constant 0 : index
    %21 = vector.load %arg4[%c1_18, %c0_19, %c0_20] : memref<9x16x8xbf16, #tpu.memory_space<vmem>>, vector<1x16x8xbf16>
    %22 = vector.shape_cast %21 : vector<1x16x8xbf16> to vector<16x8xbf16>
    %cst_21 = arith.constant dense<0.000000e+00> : vector<16x256xf32>
    %23 = tpu.matmul %22, %20, %cst_21 {dimension_numbers = #tpu.dot_dimension_numbers<[1], [0], [0], [1], [0, 0, 1, 1], [], []>} : vector<16x8xbf16>, vector<8x256xbf16>, vector<16x256xf32> -> vector<16x256xf32>
    %24 = arith.addf %16, %23 : vector<16x256xf32>
    %c0_22 = arith.constant 0 : index
    %c113 = arith.constant 113 : index
    %25 = vector.load %arg13[%c0_22, %c113] : memref<64x512xbf16, #tpu.memory_space<vmem>>, vector<8x256xbf16>
    %c2 = arith.constant 2 : index
    %c0_23 = arith.constant 0 : index
    %26 = vector.load %arg3[%c2, %c0_23] : memref<9x256xbf16, #tpu.memory_space<vmem>>, vector<1x256xbf16>
    %27 = vector.broadcast %26 : vector<1x256xbf16> to vector<8x256xbf16>
    %28 = arith.mulf %25, %27 : vector<8x256xbf16>
    %c2_24 = arith.constant 2 : index
    %c0_25 = arith.constant 0 : index
    %c0_26 = arith.constant 0 : index
    %29 = vector.load %arg4[%c2_24, %c0_25, %c0_26] : memref<9x16x8xbf16, #tpu.memory_space<vmem>>, vector<1x16x8xbf16>
    %30 = vector.shape_cast %29 : vector<1x16x8xbf16> to vector<16x8xbf16>
    %cst_27 = arith.constant dense<0.000000e+00> : vector<16x256xf32>
    %31 = tpu.matmul %30, %28, %cst_27 {dimension_numbers = #tpu.dot_dimension_numbers<[1], [0], [0], [1], [0, 0, 1, 1], [], []>} : vector<16x8xbf16>, vector<8x256xbf16>, vector<16x256xf32> -> vector<16x256xf32>
    %32 = arith.addf %24, %31 : vector<16x256xf32>
    %c0_28 = arith.constant 0 : index
    %c127 = arith.constant 127 : index
    %33 = vector.load %arg13[%c0_28, %c127] : memref<64x512xbf16, #tpu.memory_space<vmem>>, vector<8x256xbf16>
    %c3 = arith.constant 3 : index
    %c0_29 = arith.constant 0 : index
    %34 = vector.load %arg3[%c3, %c0_29] : memref<9x256xbf16, #tpu.memory_space<vmem>>, vector<1x256xbf16>
    %35 = vector.broadcast %34 : vector<1x256xbf16> to vector<8x256xbf16>
    %36 = arith.mulf %33, %35 : vector<8x256xbf16>
    %c3_30 = arith.constant 3 : index
    %c0_31 = arith.constant 0 : index
    %c0_32 = arith.constant 0 : index
    %37 = vector.load %arg4[%c3_30, %c0_31, %c0_32] : memref<9x16x8xbf16, #tpu.memory_space<vmem>>, vector<1x16x8xbf16>
    %38 = vector.shape_cast %37 : vector<1x16x8xbf16> to vector<16x8xbf16>
    %cst_33 = arith.constant dense<0.000000e+00> : vector<16x256xf32>
    %39 = tpu.matmul %38, %36, %cst_33 {dimension_numbers = #tpu.dot_dimension_numbers<[1], [0], [0], [1], [0, 0, 1, 1], [], []>} : vector<16x8xbf16>, vector<8x256xbf16>, vector<16x256xf32> -> vector<16x256xf32>
    %40 = arith.addf %32, %39 : vector<16x256xf32>
    %c0_34 = arith.constant 0 : index
    %c128_35 = arith.constant 128 : index
    %41 = vector.load %arg13[%c0_34, %c128_35] : memref<64x512xbf16, #tpu.memory_space<vmem>>, vector<8x256xbf16>
    %c4 = arith.constant 4 : index
    %c0_36 = arith.constant 0 : index
    %c0_37 = arith.constant 0 : index
    %42 = vector.load %arg4[%c4, %c0_36, %c0_37] : memref<9x16x8xbf16, #tpu.memory_space<vmem>>, vector<1x16x8xbf16>
    %43 = vector.shape_cast %42 : vector<1x16x8xbf16> to vector<16x8xbf16>
    %cst_38 = arith.constant dense<0.000000e+00> : vector<16x256xf32>
    %44 = tpu.matmul %43, %41, %cst_38 {dimension_numbers = #tpu.dot_dimension_numbers<[1], [0], [0], [1], [0, 0, 1, 1], [], []>} : vector<16x8xbf16>, vector<8x256xbf16>, vector<16x256xf32> -> vector<16x256xf32>
    %45 = arith.addf %40, %44 : vector<16x256xf32>
    %c0_39 = arith.constant 0 : index
    %c129 = arith.constant 129 : index
    %46 = vector.load %arg13[%c0_39, %c129] : memref<64x512xbf16, #tpu.memory_space<vmem>>, vector<8x256xbf16>
    %c5 = arith.constant 5 : index
    %c0_40 = arith.constant 0 : index
    %47 = vector.load %arg3[%c5, %c0_40] : memref<9x256xbf16, #tpu.memory_space<vmem>>, vector<1x256xbf16>
    %48 = vector.broadcast %47 : vector<1x256xbf16> to vector<8x256xbf16>
    %49 = arith.mulf %46, %48 : vector<8x256xbf16>
    %c5_41 = arith.constant 5 : index
    %c0_42 = arith.constant 0 : index
    %c0_43 = arith.constant 0 : index
    %50 = vector.load %arg4[%c5_41, %c0_42, %c0_43] : memref<9x16x8xbf16, #tpu.memory_space<vmem>>, vector<1x16x8xbf16>
    %51 = vector.shape_cast %50 : vector<1x16x8xbf16> to vector<16x8xbf16>
    %cst_44 = arith.constant dense<0.000000e+00> : vector<16x256xf32>
    %52 = tpu.matmul %51, %49, %cst_44 {dimension_numbers = #tpu.dot_dimension_numbers<[1], [0], [0], [1], [0, 0, 1, 1], [], []>} : vector<16x8xbf16>, vector<8x256xbf16>, vector<16x256xf32> -> vector<16x256xf32>
    %53 = arith.addf %45, %52 : vector<16x256xf32>
    %c0_45 = arith.constant 0 : index
    %c143 = arith.constant 143 : index
    %54 = vector.load %arg13[%c0_45, %c143] : memref<64x512xbf16, #tpu.memory_space<vmem>>, vector<8x256xbf16>
    %c6 = arith.constant 6 : index
    %c0_46 = arith.constant 0 : index
    %55 = vector.load %arg3[%c6, %c0_46] : memref<9x256xbf16, #tpu.memory_space<vmem>>, vector<1x256xbf16>
    %56 = vector.broadcast %55 : vector<1x256xbf16> to vector<8x256xbf16>
    %57 = arith.mulf %54, %56 : vector<8x256xbf16>
    %c6_47 = arith.constant 6 : index
    %c0_48 = arith.constant 0 : index
    %c0_49 = arith.constant 0 : index
    %58 = vector.load %arg4[%c6_47, %c0_48, %c0_49] : memref<9x16x8xbf16, #tpu.memory_space<vmem>>, vector<1x16x8xbf16>
    %59 = vector.shape_cast %58 : vector<1x16x8xbf16> to vector<16x8xbf16>
    %cst_50 = arith.constant dense<0.000000e+00> : vector<16x256xf32>
    %60 = tpu.matmul %59, %57, %cst_50 {dimension_numbers = #tpu.dot_dimension_numbers<[1], [0], [0], [1], [0, 0, 1, 1], [], []>} : vector<16x8xbf16>, vector<8x256xbf16>, vector<16x256xf32> -> vector<16x256xf32>
    %61 = arith.addf %53, %60 : vector<16x256xf32>
    %c0_51 = arith.constant 0 : index
    %c144 = arith.constant 144 : index
    %62 = vector.load %arg13[%c0_51, %c144] : memref<64x512xbf16, #tpu.memory_space<vmem>>, vector<8x256xbf16>
    %c7 = arith.constant 7 : index
    %c0_52 = arith.constant 0 : index
    %63 = vector.load %arg3[%c7, %c0_52] : memref<9x256xbf16, #tpu.memory_space<vmem>>, vector<1x256xbf16>
    %64 = vector.broadcast %63 : vector<1x256xbf16> to vector<8x256xbf16>
    %65 = arith.mulf %62, %64 : vector<8x256xbf16>
    %c7_53 = arith.constant 7 : index
    %c0_54 = arith.constant 0 : index
    %c0_55 = arith.constant 0 : index
    %66 = vector.load %arg4[%c7_53, %c0_54, %c0_55] : memref<9x16x8xbf16, #tpu.memory_space<vmem>>, vector<1x16x8xbf16>
    %67 = vector.shape_cast %66 : vector<1x16x8xbf16> to vector<16x8xbf16>
    %cst_56 = arith.constant dense<0.000000e+00> : vector<16x256xf32>
    %68 = tpu.matmul %67, %65, %cst_56 {dimension_numbers = #tpu.dot_dimension_numbers<[1], [0], [0], [1], [0, 0, 1, 1], [], []>} : vector<16x8xbf16>, vector<8x256xbf16>, vector<16x256xf32> -> vector<16x256xf32>
    %69 = arith.addf %61, %68 : vector<16x256xf32>
    %c0_57 = arith.constant 0 : index
    %c145 = arith.constant 145 : index
    %70 = vector.load %arg13[%c0_57, %c145] : memref<64x512xbf16, #tpu.memory_space<vmem>>, vector<8x256xbf16>
    %c8 = arith.constant 8 : index
    %c0_58 = arith.constant 0 : index
    %71 = vector.load %arg3[%c8, %c0_58] : memref<9x256xbf16, #tpu.memory_space<vmem>>, vector<1x256xbf16>
    %72 = vector.broadcast %71 : vector<1x256xbf16> to vector<8x256xbf16>
    %73 = arith.mulf %70, %72 : vector<8x256xbf16>
    %c8_59 = arith.constant 8 : index
    %c0_60 = arith.constant 0 : index
    %c0_61 = arith.constant 0 : index
    %74 = vector.load %arg4[%c8_59, %c0_60, %c0_61] : memref<9x16x8xbf16, #tpu.memory_space<vmem>>, vector<1x16x8xbf16>
    %75 = vector.shape_cast %74 : vector<1x16x8xbf16> to vector<16x8xbf16>
    %cst_62 = arith.constant dense<0.000000e+00> : vector<16x256xf32>
    %76 = tpu.matmul %75, %73, %cst_62 {dimension_numbers = #tpu.dot_dimension_numbers<[1], [0], [0], [1], [0, 0, 1, 1], [], []>} : vector<16x8xbf16>, vector<8x256xbf16>, vector<16x256xf32> -> vector<16x256xf32>
    %77 = arith.addf %69, %76 : vector<16x256xf32>
    %78 = vector.broadcast %5 : vector<16x1xf32> to vector<16x256xf32>
    %79 = arith.addf %77, %78 : vector<16x256xf32>
    %c0_63 = arith.constant 0 : index
    %c0_64 = arith.constant 0 : index
    %80 = vector.load %arg14[%c0_63, %c0_64] : memref<16x256xf32, #tpu.memory_space<vmem>>, vector<16x256xf32>
    tpu.vector_store %arg14[%c0_63, %c0_64], %79 {strides = array<i32>} : memref<16x256xf32, #tpu.memory_space<vmem>>, vector<16x256xf32>,
    %c0_i32 = arith.constant 0 : i32
    %c8_i32 = arith.constant 8 : i32
    %81 = arith.addi %c0_i32, %c8_i32 : i32
    %c1_i32 = arith.constant 1 : i32
    scf.for %arg15 = %c0_i32 to %81 step %c1_i32  : i32 {
      %c1_i32_149 = arith.constant 1 : i32
      %165 = arith.muli %arg15, %c1_i32_149 : i32
      %c0_i32_150 = arith.constant 0 : i32
      %166 = arith.addi %c0_i32_150, %165 : i32
      %c0_151 = arith.constant 0 : index
      %c0_152 = arith.constant 0 : index
      %167 = vector.load %arg14[%c0_151, %c0_152] : memref<16x256xf32, #tpu.memory_space<vmem>>, vector<16x256xf32>
      %168 = arith.index_cast %166 : i32 to index
      %c0_153 = arith.constant 0 : index
      %c0_154 = arith.constant 0 : index
      %169 = vector.load %arg7[%168, %c0_153, %c0_154] : memref<8x64x1xf32, #tpu.memory_space<vmem>>, vector<1x64x1xf32>
      %170 = vector.shape_cast %169 : vector<1x64x1xf32> to vector<64x1xf32>
      %171 = arith.truncf %167 : vector<16x256xf32> to vector<16x256xbf16>
      %c0_155 = arith.constant 0 : index
      %c128_156 = arith.constant 128 : index
      %172 = vector.load %arg13[%c0_155, %c128_156] : memref<64x512xbf16, #tpu.memory_space<vmem>>, vector<16x256xbf16>
      tpu.vector_store %arg13[%c0_155, %c128_156], %171 {strides = array<i32>} : memref<64x512xbf16, #tpu.memory_space<vmem>>, vector<16x256xbf16>,
      %cst_157 = arith.constant 0.000000e+00 : f32
      %173 = vector.broadcast %cst_157 : f32 to vector<64x256xf32>
      %c0_158 = arith.constant 0 : index
      %c111_159 = arith.constant 111 : index
      %174 = vector.load %arg13[%c0_158, %c111_159] : memref<64x512xbf16, #tpu.memory_space<vmem>>, vector<16x256xbf16>
      %c0_160 = arith.constant 0 : index
      %c0_161 = arith.constant 0 : index
      %175 = vector.load %arg3[%c0_160, %c0_161] : memref<9x256xbf16, #tpu.memory_space<vmem>>, vector<1x256xbf16>
      %176 = vector.broadcast %175 : vector<1x256xbf16> to vector<16x256xbf16>
      %177 = arith.mulf %174, %176 : vector<16x256xbf16>
      %c9_i32 = arith.constant 9 : i32
      %178 = arith.muli %166, %c9_i32 : i32
      %c0_i32_162 = arith.constant 0 : i32
      %179 = arith.addi %178, %c0_i32_162 : i32
      %180 = arith.index_cast %179 : i32 to index
      %c0_163 = arith.constant 0 : index
      %c0_164 = arith.constant 0 : index
      %181 = vector.load %arg6[%180, %c0_163, %c0_164] : memref<72x64x16xbf16, #tpu.memory_space<vmem>>, vector<1x64x16xbf16>
      %182 = vector.shape_cast %181 : vector<1x64x16xbf16> to vector<64x16xbf16>
      %cst_165 = arith.constant dense<0.000000e+00> : vector<64x256xf32>
      %183 = tpu.matmul %182, %177, %cst_165 {dimension_numbers = #tpu.dot_dimension_numbers<[1], [0], [0], [1], [0, 0, 1, 1], [], []>} : vector<64x16xbf16>, vector<16x256xbf16>, vector<64x256xf32> -> vector<64x256xf32>
      %184 = arith.addf %173, %183 : vector<64x256xf32>
      %c0_166 = arith.constant 0 : index
      %c112_167 = arith.constant 112 : index
      %185 = vector.load %arg13[%c0_166, %c112_167] : memref<64x512xbf16, #tpu.memory_space<vmem>>, vector<16x256xbf16>
      %c1_168 = arith.constant 1 : index
      %c0_169 = arith.constant 0 : index
      %186 = vector.load %arg3[%c1_168, %c0_169] : memref<9x256xbf16, #tpu.memory_space<vmem>>, vector<1x256xbf16>
      %187 = vector.broadcast %186 : vector<1x256xbf16> to vector<16x256xbf16>
      %188 = arith.mulf %185, %187 : vector<16x256xbf16>
      %c9_i32_170 = arith.constant 9 : i32
      %189 = arith.muli %166, %c9_i32_170 : i32
      %c1_i32_171 = arith.constant 1 : i32
      %190 = arith.addi %189, %c1_i32_171 : i32
      %191 = arith.index_cast %190 : i32 to index
      %c0_172 = arith.constant 0 : index
      %c0_173 = arith.constant 0 : index
      %192 = vector.load %arg6[%191, %c0_172, %c0_173] : memref<72x64x16xbf16, #tpu.memory_space<vmem>>, vector<1x64x16xbf16>
      %193 = vector.shape_cast %192 : vector<1x64x16xbf16> to vector<64x16xbf16>
      %cst_174 = arith.constant dense<0.000000e+00> : vector<64x256xf32>
      %194 = tpu.matmul %193, %188, %cst_174 {dimension_numbers = #tpu.dot_dimension_numbers<[1], [0], [0], [1], [0, 0, 1, 1], [], []>} : vector<64x16xbf16>, vector<16x256xbf16>, vector<64x256xf32> -> vector<64x256xf32>
      %195 = arith.addf %184, %194 : vector<64x256xf32>
      %c0_175 = arith.constant 0 : index
      %c113_176 = arith.constant 113 : index
      %196 = vector.load %arg13[%c0_175, %c113_176] : memref<64x512xbf16, #tpu.memory_space<vmem>>, vector<16x256xbf16>
      %c2_177 = arith.constant 2 : index
      %c0_178 = arith.constant 0 : index
      %197 = vector.load %arg3[%c2_177, %c0_178] : memref<9x256xbf16, #tpu.memory_space<vmem>>, vector<1x256xbf16>
      %198 = vector.broadcast %197 : vector<1x256xbf16> to vector<16x256xbf16>
      %199 = arith.mulf %196, %198 : vector<16x256xbf16>
      %c9_i32_179 = arith.constant 9 : i32
      %200 = arith.muli %166, %c9_i32_179 : i32
      %c2_i32 = arith.constant 2 : i32
      %201 = arith.addi %200, %c2_i32 : i32
      %202 = arith.index_cast %201 : i32 to index
      %c0_180 = arith.constant 0 : index
      %c0_181 = arith.constant 0 : index
      %203 = vector.load %arg6[%202, %c0_180, %c0_181] : memref<72x64x16xbf16, #tpu.memory_space<vmem>>, vector<1x64x16xbf16>
      %204 = vector.shape_cast %203 : vector<1x64x16xbf16> to vector<64x16xbf16>
      %cst_182 = arith.constant dense<0.000000e+00> : vector<64x256xf32>
      %205 = tpu.matmul %204, %199, %cst_182 {dimension_numbers = #tpu.dot_dimension_numbers<[1], [0], [0], [1], [0, 0, 1, 1], [], []>} : vector<64x16xbf16>, vector<16x256xbf16>, vector<64x256xf32> -> vector<64x256xf32>
      %206 = arith.addf %195, %205 : vector<64x256xf32>
      %c0_183 = arith.constant 0 : index
      %c127_184 = arith.constant 127 : index
      %207 = vector.load %arg13[%c0_183, %c127_184] : memref<64x512xbf16, #tpu.memory_space<vmem>>, vector<16x256xbf16>
      %c3_185 = arith.constant 3 : index
      %c0_186 = arith.constant 0 : index
      %208 = vector.load %arg3[%c3_185, %c0_186] : memref<9x256xbf16, #tpu.memory_space<vmem>>, vector<1x256xbf16>
      %209 = vector.broadcast %208 : vector<1x256xbf16> to vector<16x256xbf16>
      %210 = arith.mulf %207, %209 : vector<16x256xbf16>
      %c9_i32_187 = arith.constant 9 : i32
      %211 = arith.muli %166, %c9_i32_187 : i32
      %c3_i32 = arith.constant 3 : i32
      %212 = arith.addi %211, %c3_i32 : i32
      %213 = arith.index_cast %212 : i32 to index
      %c0_188 = arith.constant 0 : index
      %c0_189 = arith.constant 0 : index
      %214 = vector.load %arg6[%213, %c0_188, %c0_189] : memref<72x64x16xbf16, #tpu.memory_space<vmem>>, vector<1x64x16xbf16>
      %215 = vector.shape_cast %214 : vector<1x64x16xbf16> to vector<64x16xbf16>
      %cst_190 = arith.constant dense<0.000000e+00> : vector<64x256xf32>
      %216 = tpu.matmul %215, %210, %cst_190 {dimension_numbers = #tpu.dot_dimension_numbers<[1], [0], [0], [1], [0, 0, 1, 1], [], []>} : vector<64x16xbf16>, vector<16x256xbf16>, vector<64x256xf32> -> vector<64x256xf32>
      %217 = arith.addf %206, %216 : vector<64x256xf32>
      %c0_191 = arith.constant 0 : index
      %c128_192 = arith.constant 128 : index
      %218 = vector.load %arg13[%c0_191, %c128_192] : memref<64x512xbf16, #tpu.memory_space<vmem>>, vector<16x256xbf16>
      %c9_i32_193 = arith.constant 9 : i32
      %219 = arith.muli %166, %c9_i32_193 : i32
      %c4_i32 = arith.constant 4 : i32
      %220 = arith.addi %219, %c4_i32 : i32
      %221 = arith.index_cast %220 : i32 to index
      %c0_194 = arith.constant 0 : index
      %c0_195 = arith.constant 0 : index
      %222 = vector.load %arg6[%221, %c0_194, %c0_195] : memref<72x64x16xbf16, #tpu.memory_space<vmem>>, vector<1x64x16xbf16>
      %223 = vector.shape_cast %222 : vector<1x64x16xbf16> to vector<64x16xbf16>
      %cst_196 = arith.constant dense<0.000000e+00> : vector<64x256xf32>
      %224 = tpu.matmul %223, %218, %cst_196 {dimension_numbers = #tpu.dot_dimension_numbers<[1], [0], [0], [1], [0, 0, 1, 1], [], []>} : vector<64x16xbf16>, vector<16x256xbf16>, vector<64x256xf32> -> vector<64x256xf32>
      %225 = arith.addf %217, %224 : vector<64x256xf32>
      %c0_197 = arith.constant 0 : index
      %c129_198 = arith.constant 129 : index
      %226 = vector.load %arg13[%c0_197, %c129_198] : memref<64x512xbf16, #tpu.memory_space<vmem>>, vector<16x256xbf16>
      %c5_199 = arith.constant 5 : index
      %c0_200 = arith.constant 0 : index
      %227 = vector.load %arg3[%c5_199, %c0_200] : memref<9x256xbf16, #tpu.memory_space<vmem>>, vector<1x256xbf16>
      %228 = vector.broadcast %227 : vector<1x256xbf16> to vector<16x256xbf16>
      %229 = arith.mulf %226, %228 : vector<16x256xbf16>
      %c9_i32_201 = arith.constant 9 : i32
      %230 = arith.muli %166, %c9_i32_201 : i32
      %c5_i32 = arith.constant 5 : i32
      %231 = arith.addi %230, %c5_i32 : i32
      %232 = arith.index_cast %231 : i32 to index
      %c0_202 = arith.constant 0 : index
      %c0_203 = arith.constant 0 : index
      %233 = vector.load %arg6[%232, %c0_202, %c0_203] : memref<72x64x16xbf16, #tpu.memory_space<vmem>>, vector<1x64x16xbf16>
      %234 = vector.shape_cast %233 : vector<1x64x16xbf16> to vector<64x16xbf16>
      %cst_204 = arith.constant dense<0.000000e+00> : vector<64x256xf32>
      %235 = tpu.matmul %234, %229, %cst_204 {dimension_numbers = #tpu.dot_dimension_numbers<[1], [0], [0], [1], [0, 0, 1, 1], [], []>} : vector<64x16xbf16>, vector<16x256xbf16>, vector<64x256xf32> -> vector<64x256xf32>
      %236 = arith.addf %225, %235 : vector<64x256xf32>
      %c0_205 = arith.constant 0 : index
      %c143_206 = arith.constant 143 : index
      %237 = vector.load %arg13[%c0_205, %c143_206] : memref<64x512xbf16, #tpu.memory_space<vmem>>, vector<16x256xbf16>
      %c6_207 = arith.constant 6 : index
      %c0_208 = arith.constant 0 : index
      %238 = vector.load %arg3[%c6_207, %c0_208] : memref<9x256xbf16, #tpu.memory_space<vmem>>, vector<1x256xbf16>
      %239 = vector.broadcast %238 : vector<1x256xbf16> to vector<16x256xbf16>
      %240 = arith.mulf %237, %239 : vector<16x256xbf16>
      %c9_i32_209 = arith.constant 9 : i32
      %241 = arith.muli %166, %c9_i32_209 : i32
      %c6_i32 = arith.constant 6 : i32
      %242 = arith.addi %241, %c6_i32 : i32
      %243 = arith.index_cast %242 : i32 to index
      %c0_210 = arith.constant 0 : index
      %c0_211 = arith.constant 0 : index
      %244 = vector.load %arg6[%243, %c0_210, %c0_211] : memref<72x64x16xbf16, #tpu.memory_space<vmem>>, vector<1x64x16xbf16>
      %245 = vector.shape_cast %244 : vector<1x64x16xbf16> to vector<64x16xbf16>
      %cst_212 = arith.constant dense<0.000000e+00> : vector<64x256xf32>
      %246 = tpu.matmul %245, %240, %cst_212 {dimension_numbers = #tpu.dot_dimension_numbers<[1], [0], [0], [1], [0, 0, 1, 1], [], []>} : vector<64x16xbf16>, vector<16x256xbf16>, vector<64x256xf32> -> vector<64x256xf32>
      %247 = arith.addf %236, %246 : vector<64x256xf32>
      %c0_213 = arith.constant 0 : index
      %c144_214 = arith.constant 144 : index
      %248 = vector.load %arg13[%c0_213, %c144_214] : memref<64x512xbf16, #tpu.memory_space<vmem>>, vector<16x256xbf16>
      %c7_215 = arith.constant 7 : index
      %c0_216 = arith.constant 0 : index
      %249 = vector.load %arg3[%c7_215, %c0_216] : memref<9x256xbf16, #tpu.memory_space<vmem>>, vector<1x256xbf16>
      %250 = vector.broadcast %249 : vector<1x256xbf16> to vector<16x256xbf16>
      %251 = arith.mulf %248, %250 : vector<16x256xbf16>
      %c9_i32_217 = arith.constant 9 : i32
      %252 = arith.muli %166, %c9_i32_217 : i32
      %c7_i32 = arith.constant 7 : i32
      %253 = arith.addi %252, %c7_i32 : i32
      %254 = arith.index_cast %253 : i32 to index
      %c0_218 = arith.constant 0 : index
      %c0_219 = arith.constant 0 : index
      %255 = vector.load %arg6[%254, %c0_218, %c0_219] : memref<72x64x16xbf16, #tpu.memory_space<vmem>>, vector<1x64x16xbf16>
      %256 = vector.shape_cast %255 : vector<1x64x16xbf16> to vector<64x16xbf16>
      %cst_220 = arith.constant dense<0.000000e+00> : vector<64x256xf32>
      %257 = tpu.matmul %256, %251, %cst_220 {dimension_numbers = #tpu.dot_dimension_numbers<[1], [0], [0], [1], [0, 0, 1, 1], [], []>} : vector<64x16xbf16>, vector<16x256xbf16>, vector<64x256xf32> -> vector<64x256xf32>
      %258 = arith.addf %247, %257 : vector<64x256xf32>
      %c0_221 = arith.constant 0 : index
      %c145_222 = arith.constant 145 : index
      %259 = vector.load %arg13[%c0_221, %c145_222] : memref<64x512xbf16, #tpu.memory_space<vmem>>, vector<16x256xbf16>
      %c8_223 = arith.constant 8 : index
      %c0_224 = arith.constant 0 : index
      %260 = vector.load %arg3[%c8_223, %c0_224] : memref<9x256xbf16, #tpu.memory_space<vmem>>, vector<1x256xbf16>
      %261 = vector.broadcast %260 : vector<1x256xbf16> to vector<16x256xbf16>
      %262 = arith.mulf %259, %261 : vector<16x256xbf16>
      %c9_i32_225 = arith.constant 9 : i32
      %263 = arith.muli %166, %c9_i32_225 : i32
      %c8_i32_226 = arith.constant 8 : i32
      %264 = arith.addi %263, %c8_i32_226 : i32
      %265 = arith.index_cast %264 : i32 to index
      %c0_227 = arith.constant 0 : index
      %c0_228 = arith.constant 0 : index
      %266 = vector.load %arg6[%265, %c0_227, %c0_228] : memref<72x64x16xbf16, #tpu.memory_space<vmem>>, vector<1x64x16xbf16>
      %267 = vector.shape_cast %266 : vector<1x64x16xbf16> to vector<64x16xbf16>
      %cst_229 = arith.constant dense<0.000000e+00> : vector<64x256xf32>
      %268 = tpu.matmul %267, %262, %cst_229 {dimension_numbers = #tpu.dot_dimension_numbers<[1], [0], [0], [1], [0, 0, 1, 1], [], []>} : vector<64x16xbf16>, vector<16x256xbf16>, vector<64x256xf32> -> vector<64x256xf32>
      %269 = arith.addf %258, %268 : vector<64x256xf32>
      %270 = vector.broadcast %170 : vector<64x1xf32> to vector<64x256xf32>
      %271 = arith.addf %269, %270 : vector<64x256xf32>
      %cst_230 = arith.constant 2.000000e+01 : f32
      %272 = vector.broadcast %cst_230 : f32 to vector<64x256xf32>
      %273 = arith.minimumf %271, %272 : vector<64x256xf32>
      %274 = math.exp %273 : vector<64x256xf32>
      %cst_231 = arith.constant 2.000000e+00 : f32
      %275 = vector.broadcast %cst_231 : f32 to vector<64x256xf32>
      %276 = arith.addf %274, %275 : vector<64x256xf32>
      %277 = arith.mulf %274, %276 : vector<64x256xf32>
      %278 = arith.mulf %271, %277 : vector<64x256xf32>
      %cst_232 = arith.constant 2.000000e+00 : f32
      %279 = vector.broadcast %cst_232 : f32 to vector<64x256xf32>
      %280 = arith.addf %277, %279 : vector<64x256xf32>
      %281 = tpu.reciprocal %280 {approx = true} : vector<64x256xf32> -> vector<64x256xf32>
      %282 = arith.mulf %278, %281 : vector<64x256xf32>
      %c0_233 = arith.constant 0 : index
      %c0_234 = arith.constant 0 : index
      %283 = vector.load %arg14[%c0_233, %c0_234] : memref<16x256xf32, #tpu.memory_space<vmem>>, vector<16x256xf32>
      %284 = arith.index_cast %166 : i32 to index
      %c0_235 = arith.constant 0 : index
      %c0_236 = arith.constant 0 : index
      %285 = vector.load %arg9[%284, %c0_235, %c0_236] : memref<8x16x1xf32, #tpu.memory_space<vmem>>, vector<1x16x1xf32>
      %286 = vector.shape_cast %285 : vector<1x16x1xf32> to vector<16x1xf32>
      %287 = arith.truncf %282 : vector<64x256xf32> to vector<64x256xbf16>
      %c0_237 = arith.constant 0 : index
      %c128_238 = arith.constant 128 : index
      %288 = vector.load %arg13[%c0_237, %c128_238] : memref<64x512xbf16, #tpu.memory_space<vmem>>, vector<64x256xbf16>
      tpu.vector_store %arg13[%c0_237, %c128_238], %287 {strides = array<i32>} : memref<64x512xbf16, #tpu.memory_space<vmem>>, vector<64x256xbf16>,
      %cst_239 = arith.constant 0.000000e+00 : f32
      %289 = vector.broadcast %cst_239 : f32 to vector<16x256xf32>
      %c0_240 = arith.constant 0 : index
      %c111_241 = arith.constant 111 : index
      %290 = vector.load %arg13[%c0_240, %c111_241] : memref<64x512xbf16, #tpu.memory_space<vmem>>, vector<64x256xbf16>
      %c0_242 = arith.constant 0 : index
      %c0_243 = arith.constant 0 : index
      %291 = vector.load %arg3[%c0_242, %c0_243] : memref<9x256xbf16, #tpu.memory_space<vmem>>, vector<1x256xbf16>
      %292 = vector.broadcast %291 : vector<1x256xbf16> to vector<64x256xbf16>
      %293 = arith.mulf %290, %292 : vector<64x256xbf16>
      %c9_i32_244 = arith.constant 9 : i32
      %294 = arith.muli %166, %c9_i32_244 : i32
      %c0_i32_245 = arith.constant 0 : i32
      %295 = arith.addi %294, %c0_i32_245 : i32
      %296 = arith.index_cast %295 : i32 to index
      %c0_246 = arith.constant 0 : index
      %c0_247 = arith.constant 0 : index
      %297 = vector.load %arg8[%296, %c0_246, %c0_247] : memref<72x16x64xbf16, #tpu.memory_space<vmem>>, vector<1x16x64xbf16>
      %298 = vector.shape_cast %297 : vector<1x16x64xbf16> to vector<16x64xbf16>
      %cst_248 = arith.constant dense<0.000000e+00> : vector<16x256xf32>
      %299 = tpu.matmul %298, %293, %cst_248 {dimension_numbers = #tpu.dot_dimension_numbers<[1], [0], [0], [1], [0, 0, 1, 1], [], []>} : vector<16x64xbf16>, vector<64x256xbf16>, vector<16x256xf32> -> vector<16x256xf32>
      %300 = arith.addf %289, %299 : vector<16x256xf32>
      %c0_249 = arith.constant 0 : index
      %c112_250 = arith.constant 112 : index
      %301 = vector.load %arg13[%c0_249, %c112_250] : memref<64x512xbf16, #tpu.memory_space<vmem>>, vector<64x256xbf16>
      %c1_251 = arith.constant 1 : index
      %c0_252 = arith.constant 0 : index
      %302 = vector.load %arg3[%c1_251, %c0_252] : memref<9x256xbf16, #tpu.memory_space<vmem>>, vector<1x256xbf16>
      %303 = vector.broadcast %302 : vector<1x256xbf16> to vector<64x256xbf16>
      %304 = arith.mulf %301, %303 : vector<64x256xbf16>
      %c9_i32_253 = arith.constant 9 : i32
      %305 = arith.muli %166, %c9_i32_253 : i32
      %c1_i32_254 = arith.constant 1 : i32
      %306 = arith.addi %305, %c1_i32_254 : i32
      %307 = arith.index_cast %306 : i32 to index
      %c0_255 = arith.constant 0 : index
      %c0_256 = arith.constant 0 : index
      %308 = vector.load %arg8[%307, %c0_255, %c0_256] : memref<72x16x64xbf16, #tpu.memory_space<vmem>>, vector<1x16x64xbf16>
      %309 = vector.shape_cast %308 : vector<1x16x64xbf16> to vector<16x64xbf16>
      %cst_257 = arith.constant dense<0.000000e+00> : vector<16x256xf32>
      %310 = tpu.matmul %309, %304, %cst_257 {dimension_numbers = #tpu.dot_dimension_numbers<[1], [0], [0], [1], [0, 0, 1, 1], [], []>} : vector<16x64xbf16>, vector<64x256xbf16>, vector<16x256xf32> -> vector<16x256xf32>
      %311 = arith.addf %300, %310 : vector<16x256xf32>
      %c0_258 = arith.constant 0 : index
      %c113_259 = arith.constant 113 : index
      %312 = vector.load %arg13[%c0_258, %c113_259] : memref<64x512xbf16, #tpu.memory_space<vmem>>, vector<64x256xbf16>
      %c2_260 = arith.constant 2 : index
      %c0_261 = arith.constant 0 : index
      %313 = vector.load %arg3[%c2_260, %c0_261] : memref<9x256xbf16, #tpu.memory_space<vmem>>, vector<1x256xbf16>
      %314 = vector.broadcast %313 : vector<1x256xbf16> to vector<64x256xbf16>
      %315 = arith.mulf %312, %314 : vector<64x256xbf16>
      %c9_i32_262 = arith.constant 9 : i32
      %316 = arith.muli %166, %c9_i32_262 : i32
      %c2_i32_263 = arith.constant 2 : i32
      %317 = arith.addi %316, %c2_i32_263 : i32
      %318 = arith.index_cast %317 : i32 to index
      %c0_264 = arith.constant 0 : index
      %c0_265 = arith.constant 0 : index
      %319 = vector.load %arg8[%318, %c0_264, %c0_265] : memref<72x16x64xbf16, #tpu.memory_space<vmem>>, vector<1x16x64xbf16>
      %320 = vector.shape_cast %319 : vector<1x16x64xbf16> to vector<16x64xbf16>
      %cst_266 = arith.constant dense<0.000000e+00> : vector<16x256xf32>
      %321 = tpu.matmul %320, %315, %cst_266 {dimension_numbers = #tpu.dot_dimension_numbers<[1], [0], [0], [1], [0, 0, 1, 1], [], []>} : vector<16x64xbf16>, vector<64x256xbf16>, vector<16x256xf32> -> vector<16x256xf32>
      %322 = arith.addf %311, %321 : vector<16x256xf32>
      %c0_267 = arith.constant 0 : index
      %c127_268 = arith.constant 127 : index
      %323 = vector.load %arg13[%c0_267, %c127_268] : memref<64x512xbf16, #tpu.memory_space<vmem>>, vector<64x256xbf16>
      %c3_269 = arith.constant 3 : index
      %c0_270 = arith.constant 0 : index
      %324 = vector.load %arg3[%c3_269, %c0_270] : memref<9x256xbf16, #tpu.memory_space<vmem>>, vector<1x256xbf16>
      %325 = vector.broadcast %324 : vector<1x256xbf16> to vector<64x256xbf16>
      %326 = arith.mulf %323, %325 : vector<64x256xbf16>
      %c9_i32_271 = arith.constant 9 : i32
      %327 = arith.muli %166, %c9_i32_271 : i32
      %c3_i32_272 = arith.constant 3 : i32
      %328 = arith.addi %327, %c3_i32_272 : i32
      %329 = arith.index_cast %328 : i32 to index
      %c0_273 = arith.constant 0 : index
      %c0_274 = arith.constant 0 : index
      %330 = vector.load %arg8[%329, %c0_273, %c0_274] : memref<72x16x64xbf16, #tpu.memory_space<vmem>>, vector<1x16x64xbf16>
      %331 = vector.shape_cast %330 : vector<1x16x64xbf16> to vector<16x64xbf16>
      %cst_275 = arith.constant dense<0.000000e+00> : vector<16x256xf32>
      %332 = tpu.matmul %331, %326, %cst_275 {dimension_numbers = #tpu.dot_dimension_numbers<[1], [0], [0], [1], [0, 0, 1, 1], [], []>} : vector<16x64xbf16>, vector<64x256xbf16>, vector<16x256xf32> -> vector<16x256xf32>
      %333 = arith.addf %322, %332 : vector<16x256xf32>
      %c0_276 = arith.constant 0 : index
      %c128_277 = arith.constant 128 : index
      %334 = vector.load %arg13[%c0_276, %c128_277] : memref<64x512xbf16, #tpu.memory_space<vmem>>, vector<64x256xbf16>
      %c9_i32_278 = arith.constant 9 : i32
      %335 = arith.muli %166, %c9_i32_278 : i32
      %c4_i32_279 = arith.constant 4 : i32
      %336 = arith.addi %335, %c4_i32_279 : i32
      %337 = arith.index_cast %336 : i32 to index
      %c0_280 = arith.constant 0 : index
      %c0_281 = arith.constant 0 : index
      %338 = vector.load %arg8[%337, %c0_280, %c0_281] : memref<72x16x64xbf16, #tpu.memory_space<vmem>>, vector<1x16x64xbf16>
      %339 = vector.shape_cast %338 : vector<1x16x64xbf16> to vector<16x64xbf16>
      %cst_282 = arith.constant dense<0.000000e+00> : vector<16x256xf32>
      %340 = tpu.matmul %339, %334, %cst_282 {dimension_numbers = #tpu.dot_dimension_numbers<[1], [0], [0], [1], [0, 0, 1, 1], [], []>} : vector<16x64xbf16>, vector<64x256xbf16>, vector<16x256xf32> -> vector<16x256xf32>
      %341 = arith.addf %333, %340 : vector<16x256xf32>
      %c0_283 = arith.constant 0 : index
      %c129_284 = arith.constant 129 : index
      %342 = vector.load %arg13[%c0_283, %c129_284] : memref<64x512xbf16, #tpu.memory_space<vmem>>, vector<64x256xbf16>
      %c5_285 = arith.constant 5 : index
      %c0_286 = arith.constant 0 : index
      %343 = vector.load %arg3[%c5_285, %c0_286] : memref<9x256xbf16, #tpu.memory_space<vmem>>, vector<1x256xbf16>
      %344 = vector.broadcast %343 : vector<1x256xbf16> to vector<64x256xbf16>
      %345 = arith.mulf %342, %344 : vector<64x256xbf16>
      %c9_i32_287 = arith.constant 9 : i32
      %346 = arith.muli %166, %c9_i32_287 : i32
      %c5_i32_288 = arith.constant 5 : i32
      %347 = arith.addi %346, %c5_i32_288 : i32
      %348 = arith.index_cast %347 : i32 to index
      %c0_289 = arith.constant 0 : index
      %c0_290 = arith.constant 0 : index
      %349 = vector.load %arg8[%348, %c0_289, %c0_290] : memref<72x16x64xbf16, #tpu.memory_space<vmem>>, vector<1x16x64xbf16>
      %350 = vector.shape_cast %349 : vector<1x16x64xbf16> to vector<16x64xbf16>
      %cst_291 = arith.constant dense<0.000000e+00> : vector<16x256xf32>
      %351 = tpu.matmul %350, %345, %cst_291 {dimension_numbers = #tpu.dot_dimension_numbers<[1], [0], [0], [1], [0, 0, 1, 1], [], []>} : vector<16x64xbf16>, vector<64x256xbf16>, vector<16x256xf32> -> vector<16x256xf32>
      %352 = arith.addf %341, %351 : vector<16x256xf32>
      %c0_292 = arith.constant 0 : index
      %c143_293 = arith.constant 143 : index
      %353 = vector.load %arg13[%c0_292, %c143_293] : memref<64x512xbf16, #tpu.memory_space<vmem>>, vector<64x256xbf16>
      %c6_294 = arith.constant 6 : index
      %c0_295 = arith.constant 0 : index
      %354 = vector.load %arg3[%c6_294, %c0_295] : memref<9x256xbf16, #tpu.memory_space<vmem>>, vector<1x256xbf16>
      %355 = vector.broadcast %354 : vector<1x256xbf16> to vector<64x256xbf16>
      %356 = arith.mulf %353, %355 : vector<64x256xbf16>
      %c9_i32_296 = arith.constant 9 : i32
      %357 = arith.muli %166, %c9_i32_296 : i32
      %c6_i32_297 = arith.constant 6 : i32
      %358 = arith.addi %357, %c6_i32_297 : i32
      %359 = arith.index_cast %358 : i32 to index
      %c0_298 = arith.constant 0 : index
      %c0_299 = arith.constant 0 : index
      %360 = vector.load %arg8[%359, %c0_298, %c0_299] : memref<72x16x64xbf16, #tpu.memory_space<vmem>>, vector<1x16x64xbf16>
      %361 = vector.shape_cast %360 : vector<1x16x64xbf16> to vector<16x64xbf16>
      %cst_300 = arith.constant dense<0.000000e+00> : vector<16x256xf32>
      %362 = tpu.matmul %361, %356, %cst_300 {dimension_numbers = #tpu.dot_dimension_numbers<[1], [0], [0], [1], [0, 0, 1, 1], [], []>} : vector<16x64xbf16>, vector<64x256xbf16>, vector<16x256xf32> -> vector<16x256xf32>
      %363 = arith.addf %352, %362 : vector<16x256xf32>
      %c0_301 = arith.constant 0 : index
      %c144_302 = arith.constant 144 : index
      %364 = vector.load %arg13[%c0_301, %c144_302] : memref<64x512xbf16, #tpu.memory_space<vmem>>, vector<64x256xbf16>
      %c7_303 = arith.constant 7 : index
      %c0_304 = arith.constant 0 : index
      %365 = vector.load %arg3[%c7_303, %c0_304] : memref<9x256xbf16, #tpu.memory_space<vmem>>, vector<1x256xbf16>
      %366 = vector.broadcast %365 : vector<1x256xbf16> to vector<64x256xbf16>
      %367 = arith.mulf %364, %366 : vector<64x256xbf16>
      %c9_i32_305 = arith.constant 9 : i32
      %368 = arith.muli %166, %c9_i32_305 : i32
      %c7_i32_306 = arith.constant 7 : i32
      %369 = arith.addi %368, %c7_i32_306 : i32
      %370 = arith.index_cast %369 : i32 to index
      %c0_307 = arith.constant 0 : index
      %c0_308 = arith.constant 0 : index
      %371 = vector.load %arg8[%370, %c0_307, %c0_308] : memref<72x16x64xbf16, #tpu.memory_space<vmem>>, vector<1x16x64xbf16>
      %372 = vector.shape_cast %371 : vector<1x16x64xbf16> to vector<16x64xbf16>
      %cst_309 = arith.constant dense<0.000000e+00> : vector<16x256xf32>
      %373 = tpu.matmul %372, %367, %cst_309 {dimension_numbers = #tpu.dot_dimension_numbers<[1], [0], [0], [1], [0, 0, 1, 1], [], []>} : vector<16x64xbf16>, vector<64x256xbf16>, vector<16x256xf32> -> vector<16x256xf32>
      %374 = arith.addf %363, %373 : vector<16x256xf32>
      %c0_310 = arith.constant 0 : index
      %c145_311 = arith.constant 145 : index
      %375 = vector.load %arg13[%c0_310, %c145_311] : memref<64x512xbf16, #tpu.memory_space<vmem>>, vector<64x256xbf16>
      %c8_312 = arith.constant 8 : index
      %c0_313 = arith.constant 0 : index
      %376 = vector.load %arg3[%c8_312, %c0_313] : memref<9x256xbf16, #tpu.memory_space<vmem>>, vector<1x256xbf16>
      %377 = vector.broadcast %376 : vector<1x256xbf16> to vector<64x256xbf16>
      %378 = arith.mulf %375, %377 : vector<64x256xbf16>
      %c9_i32_314 = arith.constant 9 : i32
      %379 = arith.muli %166, %c9_i32_314 : i32
      %c8_i32_315 = arith.constant 8 : i32
      %380 = arith.addi %379, %c8_i32_315 : i32
      %381 = arith.index_cast %380 : i32 to index
      %c0_316 = arith.constant 0 : index
      %c0_317 = arith.constant 0 : index
      %382 = vector.load %arg8[%381, %c0_316, %c0_317] : memref<72x16x64xbf16, #tpu.memory_space<vmem>>, vector<1x16x64xbf16>
      %383 = vector.shape_cast %382 : vector<1x16x64xbf16> to vector<16x64xbf16>
      %cst_318 = arith.constant dense<0.000000e+00> : vector<16x256xf32>
      %384 = tpu.matmul %383, %378, %cst_318 {dimension_numbers = #tpu.dot_dimension_numbers<[1], [0], [0], [1], [0, 0, 1, 1], [], []>} : vector<16x64xbf16>, vector<64x256xbf16>, vector<16x256xf32> -> vector<16x256xf32>
      %385 = arith.addf %374, %384 : vector<16x256xf32>
      %386 = vector.broadcast %286 : vector<16x1xf32> to vector<16x256xf32>
      %387 = arith.addf %385, %386 : vector<16x256xf32>
      %388 = arith.addf %283, %387 : vector<16x256xf32>
      %c0_319 = arith.constant 0 : index
      %c0_320 = arith.constant 0 : index
      %389 = vector.load %arg14[%c0_319, %c0_320] : memref<16x256xf32, #tpu.memory_space<vmem>>, vector<16x256xf32>
      tpu.vector_store %arg14[%c0_319, %c0_320], %388 {strides = array<i32>} : memref<16x256xf32, #tpu.memory_space<vmem>>, vector<16x256xf32>,
    }
    %c8_i32_65 = arith.constant 8 : i32
    %c0_66 = arith.constant 0 : index
    %c0_67 = arith.constant 0 : index
    %82 = vector.load %arg14[%c0_66, %c0_67] : memref<16x256xf32, #tpu.memory_space<vmem>>, vector<16x256xf32>
    %c0_68 = arith.constant 0 : index
    %c0_69 = arith.constant 0 : index
    %83 = vector.load %arg11[%c0_68, %c0_69] : memref<8x1xf32, #tpu.memory_space<vmem>>, vector<8x1xf32>
    %84 = arith.truncf %82 : vector<16x256xf32> to vector<16x256xbf16>
    %c0_70 = arith.constant 0 : index
    %c128_71 = arith.constant 128 : index
    %85 = vector.load %arg13[%c0_70, %c128_71] : memref<64x512xbf16, #tpu.memory_space<vmem>>, vector<16x256xbf16>
    tpu.vector_store %arg13[%c0_70, %c128_71], %84 {strides = array<i32>} : memref<64x512xbf16, #tpu.memory_space<vmem>>, vector<16x256xbf16>,
    %cst_72 = arith.constant 0.000000e+00 : f32
    %86 = vector.broadcast %cst_72 : f32 to vector<8x256xf32>
    %c0_73 = arith.constant 0 : index
    %c111_74 = arith.constant 111 : index
    %87 = vector.load %arg13[%c0_73, %c111_74] : memref<64x512xbf16, #tpu.memory_space<vmem>>, vector<16x256xbf16>
    %c0_75 = arith.constant 0 : index
    %c0_76 = arith.constant 0 : index
    %88 = vector.load %arg3[%c0_75, %c0_76] : memref<9x256xbf16, #tpu.memory_space<vmem>>, vector<1x256xbf16>
    %89 = vector.broadcast %88 : vector<1x256xbf16> to vector<16x256xbf16>
    %90 = arith.mulf %87, %89 : vector<16x256xbf16>
    %c0_77 = arith.constant 0 : index
    %c0_78 = arith.constant 0 : index
    %c0_79 = arith.constant 0 : index
    %91 = vector.load %arg10[%c0_77, %c0_78, %c0_79] : memref<9x8x16xbf16, #tpu.memory_space<vmem>>, vector<1x8x16xbf16>
    %92 = vector.shape_cast %91 : vector<1x8x16xbf16> to vector<8x16xbf16>
    %cst_80 = arith.constant dense<0.000000e+00> : vector<8x256xf32>
    %93 = tpu.matmul %92, %90, %cst_80 {dimension_numbers = #tpu.dot_dimension_numbers<[1], [0], [0], [1], [0, 0, 1, 1], [], []>} : vector<8x16xbf16>, vector<16x256xbf16>, vector<8x256xf32> -> vector<8x256xf32>
    %94 = arith.addf %86, %93 : vector<8x256xf32>
    %c0_81 = arith.constant 0 : index
    %c112_82 = arith.constant 112 : index
    %95 = vector.load %arg13[%c0_81, %c112_82] : memref<64x512xbf16, #tpu.memory_space<vmem>>, vector<16x256xbf16>
    %c1_83 = arith.constant 1 : index
    %c0_84 = arith.constant 0 : index
    %96 = vector.load %arg3[%c1_83, %c0_84] : memref<9x256xbf16, #tpu.memory_space<vmem>>, vector<1x256xbf16>
    %97 = vector.broadcast %96 : vector<1x256xbf16> to vector<16x256xbf16>
    %98 = arith.mulf %95, %97 : vector<16x256xbf16>
    %c1_85 = arith.constant 1 : index
    %c0_86 = arith.constant 0 : index
    %c0_87 = arith.constant 0 : index
    %99 = vector.load %arg10[%c1_85, %c0_86, %c0_87] : memref<9x8x16xbf16, #tpu.memory_space<vmem>>, vector<1x8x16xbf16>
    %100 = vector.shape_cast %99 : vector<1x8x16xbf16> to vector<8x16xbf16>
    %cst_88 = arith.constant dense<0.000000e+00> : vector<8x256xf32>
    %101 = tpu.matmul %100, %98, %cst_88 {dimension_numbers = #tpu.dot_dimension_numbers<[1], [0], [0], [1], [0, 0, 1, 1], [], []>} : vector<8x16xbf16>, vector<16x256xbf16>, vector<8x256xf32> -> vector<8x256xf32>
    %102 = arith.addf %94, %101 : vector<8x256xf32>
    %c0_89 = arith.constant 0 : index
    %c113_90 = arith.constant 113 : index
    %103 = vector.load %arg13[%c0_89, %c113_90] : memref<64x512xbf16, #tpu.memory_space<vmem>>, vector<16x256xbf16>
    %c2_91 = arith.constant 2 : index
    %c0_92 = arith.constant 0 : index
    %104 = vector.load %arg3[%c2_91, %c0_92] : memref<9x256xbf16, #tpu.memory_space<vmem>>, vector<1x256xbf16>
    %105 = vector.broadcast %104 : vector<1x256xbf16> to vector<16x256xbf16>
    %106 = arith.mulf %103, %105 : vector<16x256xbf16>
    %c2_93 = arith.constant 2 : index
    %c0_94 = arith.constant 0 : index
    %c0_95 = arith.constant 0 : index
    %107 = vector.load %arg10[%c2_93, %c0_94, %c0_95] : memref<9x8x16xbf16, #tpu.memory_space<vmem>>, vector<1x8x16xbf16>
    %108 = vector.shape_cast %107 : vector<1x8x16xbf16> to vector<8x16xbf16>
    %cst_96 = arith.constant dense<0.000000e+00> : vector<8x256xf32>
    %109 = tpu.matmul %108, %106, %cst_96 {dimension_numbers = #tpu.dot_dimension_numbers<[1], [0], [0], [1], [0, 0, 1, 1], [], []>} : vector<8x16xbf16>, vector<16x256xbf16>, vector<8x256xf32> -> vector<8x256xf32>
    %110 = arith.addf %102, %109 : vector<8x256xf32>
    %c0_97 = arith.constant 0 : index
    %c127_98 = arith.constant 127 : index
    %111 = vector.load %arg13[%c0_97, %c127_98] : memref<64x512xbf16, #tpu.memory_space<vmem>>, vector<16x256xbf16>
    %c3_99 = arith.constant 3 : index
    %c0_100 = arith.constant 0 : index
    %112 = vector.load %arg3[%c3_99, %c0_100] : memref<9x256xbf16, #tpu.memory_space<vmem>>, vector<1x256xbf16>
    %113 = vector.broadcast %112 : vector<1x256xbf16> to vector<16x256xbf16>
    %114 = arith.mulf %111, %113 : vector<16x256xbf16>
    %c3_101 = arith.constant 3 : index
    %c0_102 = arith.constant 0 : index
    %c0_103 = arith.constant 0 : index
    %115 = vector.load %arg10[%c3_101, %c0_102, %c0_103] : memref<9x8x16xbf16, #tpu.memory_space<vmem>>, vector<1x8x16xbf16>
    %116 = vector.shape_cast %115 : vector<1x8x16xbf16> to vector<8x16xbf16>
    %cst_104 = arith.constant dense<0.000000e+00> : vector<8x256xf32>
    %117 = tpu.matmul %116, %114, %cst_104 {dimension_numbers = #tpu.dot_dimension_numbers<[1], [0], [0], [1], [0, 0, 1, 1], [], []>} : vector<8x16xbf16>, vector<16x256xbf16>, vector<8x256xf32> -> vector<8x256xf32>
    %118 = arith.addf %110, %117 : vector<8x256xf32>
    %c0_105 = arith.constant 0 : index
    %c128_106 = arith.constant 128 : index
    %119 = vector.load %arg13[%c0_105, %c128_106] : memref<64x512xbf16, #tpu.memory_space<vmem>>, vector<16x256xbf16>
    %c4_107 = arith.constant 4 : index
    %c0_108 = arith.constant 0 : index
    %c0_109 = arith.constant 0 : index
    %120 = vector.load %arg10[%c4_107, %c0_108, %c0_109] : memref<9x8x16xbf16, #tpu.memory_space<vmem>>, vector<1x8x16xbf16>
    %121 = vector.shape_cast %120 : vector<1x8x16xbf16> to vector<8x16xbf16>
    %cst_110 = arith.constant dense<0.000000e+00> : vector<8x256xf32>
    %122 = tpu.matmul %121, %119, %cst_110 {dimension_numbers = #tpu.dot_dimension_numbers<[1], [0], [0], [1], [0, 0, 1, 1], [], []>} : vector<8x16xbf16>, vector<16x256xbf16>, vector<8x256xf32> -> vector<8x256xf32>
    %123 = arith.addf %118, %122 : vector<8x256xf32>
    %c0_111 = arith.constant 0 : index
    %c129_112 = arith.constant 129 : index
    %124 = vector.load %arg13[%c0_111, %c129_112] : memref<64x512xbf16, #tpu.memory_space<vmem>>, vector<16x256xbf16>
    %c5_113 = arith.constant 5 : index
    %c0_114 = arith.constant 0 : index
    %125 = vector.load %arg3[%c5_113, %c0_114] : memref<9x256xbf16, #tpu.memory_space<vmem>>, vector<1x256xbf16>
    %126 = vector.broadcast %125 : vector<1x256xbf16> to vector<16x256xbf16>
    %127 = arith.mulf %124, %126 : vector<16x256xbf16>
    %c5_115 = arith.constant 5 : index
    %c0_116 = arith.constant 0 : index
    %c0_117 = arith.constant 0 : index
    %128 = vector.load %arg10[%c5_115, %c0_116, %c0_117] : memref<9x8x16xbf16, #tpu.memory_space<vmem>>, vector<1x8x16xbf16>
    %129 = vector.shape_cast %128 : vector<1x8x16xbf16> to vector<8x16xbf16>
    %cst_118 = arith.constant dense<0.000000e+00> : vector<8x256xf32>
    %130 = tpu.matmul %129, %127, %cst_118 {dimension_numbers = #tpu.dot_dimension_numbers<[1], [0], [0], [1], [0, 0, 1, 1], [], []>} : vector<8x16xbf16>, vector<16x256xbf16>, vector<8x256xf32> -> vector<8x256xf32>
    %131 = arith.addf %123, %130 : vector<8x256xf32>
    %c0_119 = arith.constant 0 : index
    %c143_120 = arith.constant 143 : index
    %132 = vector.load %arg13[%c0_119, %c143_120] : memref<64x512xbf16, #tpu.memory_space<vmem>>, vector<16x256xbf16>
    %c6_121 = arith.constant 6 : index
    %c0_122 = arith.constant 0 : index
    %133 = vector.load %arg3[%c6_121, %c0_122] : memref<9x256xbf16, #tpu.memory_space<vmem>>, vector<1x256xbf16>
    %134 = vector.broadcast %133 : vector<1x256xbf16> to vector<16x256xbf16>
    %135 = arith.mulf %132, %134 : vector<16x256xbf16>
    %c6_123 = arith.constant 6 : index
    %c0_124 = arith.constant 0 : index
    %c0_125 = arith.constant 0 : index
    %136 = vector.load %arg10[%c6_123, %c0_124, %c0_125] : memref<9x8x16xbf16, #tpu.memory_space<vmem>>, vector<1x8x16xbf16>
    %137 = vector.shape_cast %136 : vector<1x8x16xbf16> to vector<8x16xbf16>
    %cst_126 = arith.constant dense<0.000000e+00> : vector<8x256xf32>
    %138 = tpu.matmul %137, %135, %cst_126 {dimension_numbers = #tpu.dot_dimension_numbers<[1], [0], [0], [1], [0, 0, 1, 1], [], []>} : vector<8x16xbf16>, vector<16x256xbf16>, vector<8x256xf32> -> vector<8x256xf32>
    %139 = arith.addf %131, %138 : vector<8x256xf32>
    %c0_127 = arith.constant 0 : index
    %c144_128 = arith.constant 144 : index
    %140 = vector.load %arg13[%c0_127, %c144_128] : memref<64x512xbf16, #tpu.memory_space<vmem>>, vector<16x256xbf16>
    %c7_129 = arith.constant 7 : index
    %c0_130 = arith.constant 0 : index
    %141 = vector.load %arg3[%c7_129, %c0_130] : memref<9x256xbf16, #tpu.memory_space<vmem>>, vector<1x256xbf16>
    %142 = vector.broadcast %141 : vector<1x256xbf16> to vector<16x256xbf16>
    %143 = arith.mulf %140, %142 : vector<16x256xbf16>
    %c7_131 = arith.constant 7 : index
    %c0_132 = arith.constant 0 : index
    %c0_133 = arith.constant 0 : index
    %144 = vector.load %arg10[%c7_131, %c0_132, %c0_133] : memref<9x8x16xbf16, #tpu.memory_space<vmem>>, vector<1x8x16xbf16>
    %145 = vector.shape_cast %144 : vector<1x8x16xbf16> to vector<8x16xbf16>
    %cst_134 = arith.constant dense<0.000000e+00> : vector<8x256xf32>
    %146 = tpu.matmul %145, %143, %cst_134 {dimension_numbers = #tpu.dot_dimension_numbers<[1], [0], [0], [1], [0, 0, 1, 1], [], []>} : vector<8x16xbf16>, vector<16x256xbf16>, vector<8x256xf32> -> vector<8x256xf32>
    %147 = arith.addf %139, %146 : vector<8x256xf32>
    %c0_135 = arith.constant 0 : index
    %c145_136 = arith.constant 145 : index
    %148 = vector.load %arg13[%c0_135, %c145_136] : memref<64x512xbf16, #tpu.memory_space<vmem>>, vector<16x256xbf16>
    %c8_137 = arith.constant 8 : index
    %c0_138 = arith.constant 0 : index
    %149 = vector.load %arg3[%c8_137, %c0_138] : memref<9x256xbf16, #tpu.memory_space<vmem>>, vector<1x256xbf16>
    %150 = vector.broadcast %149 : vector<1x256xbf16> to vector<16x256xbf16>
    %151 = arith.mulf %148, %150 : vector<16x256xbf16>
    %c8_139 = arith.constant 8 : index
    %c0_140 = arith.constant 0 : index
    %c0_141 = arith.constant 0 : index
    %152 = vector.load %arg10[%c8_139, %c0_140, %c0_141] : memref<9x8x16xbf16, #tpu.memory_space<vmem>>, vector<1x8x16xbf16>
    %153 = vector.shape_cast %152 : vector<1x8x16xbf16> to vector<8x16xbf16>
    %cst_142 = arith.constant dense<0.000000e+00> : vector<8x256xf32>
    %154 = tpu.matmul %153, %151, %cst_142 {dimension_numbers = #tpu.dot_dimension_numbers<[1], [0], [0], [1], [0, 0, 1, 1], [], []>} : vector<8x16xbf16>, vector<16x256xbf16>, vector<8x256xf32> -> vector<8x256xf32>
    %155 = arith.addf %147, %154 : vector<8x256xf32>
    %156 = vector.broadcast %83 : vector<8x1xf32> to vector<8x256xf32>
    %157 = arith.addf %155, %156 : vector<8x256xf32>
    %158 = vector.extract_strided_slice %157 {offsets = [0, 0], sizes = [1, 256], strides = [1, 1]} : vector<8x256xf32> to vector<1x256xf32>
    %c0_143 = arith.constant 0 : index
    %c0_144 = arith.constant 0 : index
    %c0_145 = arith.constant 0 : index
    %159 = vector.load %arg2[%c0_143, %c0_144, %c0_145] : memref<1x1x256xf32, #tpu.memory_space<vmem>>, vector<1x1x256xf32>
    %160 = vector.shape_cast %159 : vector<1x1x256xf32> to vector<1x256xf32>
    %161 = arith.addf %160, %158 : vector<1x256xf32>
    %c0_146 = arith.constant 0 : index
    %c0_147 = arith.constant 0 : index
    %c0_148 = arith.constant 0 : index
    %162 = vector.load %arg12[%c0_146, %c0_147, %c0_148] : memref<1x1x256xf32, #tpu.memory_space<vmem>>, vector<1x1x256xf32>
    %163 = vector.shape_cast %162 : vector<1x1x256xf32> to vector<1x256xf32>
    %164 = vector.shape_cast %161 : vector<1x256xf32> to vector<1x1x256xf32>
    tpu.vector_store %arg12[%c0_146, %c0_147, %c0_148], %164 {strides = array<i32>} : memref<1x1x256xf32, #tpu.memory_space<vmem>>, vector<1x1x256xf32>,
    return
  }
  func.func @transform_0(%arg0: i32) -> (i32, i32, i32) {
    %c0_i32 = arith.constant 0 : i32
    %c0_i32_0 = arith.constant 0 : i32
    %c0_i32_1 = arith.constant 0 : i32
    return %arg0, %c0_i32, %c0_i32_0 : i32, i32, i32
  }
  func.func @transform_1(%arg0: i32) -> (i32, i32, i32) {
    %c0_i32 = arith.constant 0 : i32
    %c0_i32_0 = arith.constant 0 : i32
    %c0_i32_1 = arith.constant 0 : i32
    return %arg0, %c0_i32, %c0_i32_0 : i32, i32, i32
  }
  func.func @transform_2(%arg0: i32) -> (i32, i32) {
    %c0_i32 = arith.constant 0 : i32
    %c0_i32_0 = arith.constant 0 : i32
    %c0_i32_1 = arith.constant 0 : i32
    return %c0_i32, %c0_i32_0 : i32, i32
  }
  func.func @transform_3(%arg0: i32) -> (i32, i32, i32) {
    %c0_i32 = arith.constant 0 : i32
    %c0_i32_0 = arith.constant 0 : i32
    %c0_i32_1 = arith.constant 0 : i32
    %c0_i32_2 = arith.constant 0 : i32
    return %c0_i32, %c0_i32_0, %c0_i32_1 : i32, i32, i32
  }
  func.func @transform_4(%arg0: i32) -> (i32, i32) {
    %c0_i32 = arith.constant 0 : i32
    %c0_i32_0 = arith.constant 0 : i32
    %c0_i32_1 = arith.constant 0 : i32
    return %c0_i32, %c0_i32_0 : i32, i32
  }
  func.func @transform_5(%arg0: i32) -> (i32, i32, i32) {
    %c0_i32 = arith.constant 0 : i32
    %c0_i32_0 = arith.constant 0 : i32
    %c0_i32_1 = arith.constant 0 : i32
    %c0_i32_2 = arith.constant 0 : i32
    return %c0_i32, %c0_i32_0, %c0_i32_1 : i32, i32, i32
  }
  func.func @transform_6(%arg0: i32) -> (i32, i32, i32) {
    %c0_i32 = arith.constant 0 : i32
    %c0_i32_0 = arith.constant 0 : i32
    %c0_i32_1 = arith.constant 0 : i32
    %c0_i32_2 = arith.constant 0 : i32
    return %c0_i32, %c0_i32_0, %c0_i32_1 : i32, i32, i32
  }
  func.func @transform_7(%arg0: i32) -> (i32, i32, i32) {
    %c0_i32 = arith.constant 0 : i32
    %c0_i32_0 = arith.constant 0 : i32
    %c0_i32_1 = arith.constant 0 : i32
    %c0_i32_2 = arith.constant 0 : i32
    return %c0_i32, %c0_i32_0, %c0_i32_1 : i32, i32, i32
  }
  func.func @transform_8(%arg0: i32) -> (i32, i32, i32) {
    %c0_i32 = arith.constant 0 : i32
    %c0_i32_0 = arith.constant 0 : i32
    %c0_i32_1 = arith.constant 0 : i32
    %c0_i32_2 = arith.constant 0 : i32
    return %c0_i32, %c0_i32_0, %c0_i32_1 : i32, i32, i32
  }
  func.func @transform_9(%arg0: i32) -> (i32, i32, i32) {
    %c0_i32 = arith.constant 0 : i32
    %c0_i32_0 = arith.constant 0 : i32
    %c0_i32_1 = arith.constant 0 : i32
    %c0_i32_2 = arith.constant 0 : i32
    return %c0_i32, %c0_i32_0, %c0_i32_1 : i32, i32, i32
  }
  func.func @transform_10(%arg0: i32) -> (i32, i32) {
    %c0_i32 = arith.constant 0 : i32
    %c0_i32_0 = arith.constant 0 : i32
    %c0_i32_1 = arith.constant 0 : i32
    return %c0_i32, %c0_i32_0 : i32, i32
  }
  func.func @transform_11(%arg0: i32) -> (i32, i32, i32) {
    %c0_i32 = arith.constant 0 : i32
    %c0_i32_0 = arith.constant 0 : i32
    %c0_i32_1 = arith.constant 0 : i32
    return %arg0, %c0_i32, %c0_i32_0 : i32, i32, i32
  }
}

</mosaic_0001>

<bundles_post_ra>
// kernel: refine_forward.1
= control target key start
LH: loop header
LB: loop body
LE: loop exit
PB: predicated region body
PF: predicated region fallthrough
CT: control target
= control target key end

     0   :  { %s6177_s17 = smov 0   ;;  %s8623_s0 = inlined_call_operand.vmem [shape: f32[2,8,256], index: 0, kind: input, shape index: {}]   ;;  %s8624_s1 = inlined_call_operand.vmem [shape: f32[2,1,256], index: 1, kind: input, shape index: {}]   ;;  %s8625_s2 = inlined_call_operand.vmem [shape: bf16[9,256], index: 2, kind: input, shape index: {}]   ;;  %s8626_s3 = inlined_call_operand.vmem [shape: bf16[9,16,8], index: 3, kind: input, shape index: {}]   ;;  %s8627_s4 = inlined_call_operand.vmem [shape: f32[16,1], index: 4, kind: input, shape index: {}]   ;;  %s8628_s5 = inlined_call_operand.vmem [shape: bf16[72,64,16], index: 5, kind: input, shape index: {}]   ;;  %s8629_s6 = inlined_call_operand.vmem [shape: f32[8,64,1], index: 6, kind: input, shape index: {}]   ;;  %s8630_s7 = inlined_call_operand.vmem [shape: bf16[72,16,64], index: 7, kind: input, shape index: {}]   ;;  %s8631_s8 = inlined_call_operand.vmem [shape: f32[8,16,1], index: 8, kind: input, shape index: {}]   ;;  %s8632_s9 = inlined_call_operand.vmem [shape: bf16[9,8,16], index: 9, kind: input, shape index: {}]   ;;  %s8633_s10 = inlined_call_operand.vmem [shape: f32[8,1], index: 10, kind: input, shape index: {}]   ;;  %s8634_s11 = inlined_call_operand.vmem [shape: f32[2,1,256], index: 11, kind: output, shape index: {}]  }
   0x1 LB: > { %s5222_s18 = sadd.s32 4294967295, %s6093_s17   ;;  %p5226_p0 = scmp.ge.s32.totalorder %s6093_s17, 1  ;;  %s6093_s17 = sphi %s6177_s17, %s21_s17  }
   0x2   : > { %p346_p1 = scmp.lt.s32.totalorder %s6093_s17, 3 }
   0x4   : > { %p347_p2 = pnand %p5226_p0, %p346_p1 }
   0x5   : > { %p389_p3 = scmp.lt.s32.totalorder (!%p347_p2), %s5222_s18, 1  ;;  %s8649_s15 = smov (!%p347_p2), 113  }
   0x6   : > { %350 = sbr.rel (%p347_p2) target bundleno = 2460 (0x99c), region = 64  ;;  %s8647_s16 = smov (!%p347_p2), 112  }
   0x7   : > { %s8645_s19 = smov (!%p347_p2), 15   ;;  %s8643_s20 = smov (!%p347_p2), 127  }
   0x8   : > { %s8641_s21 = smov (!%p347_p2), 111   ;;  %s8639_s22 = smov (!%p347_p2), 1  }
   0x9   : > { %s8635_s29 = smov (!%p347_p2), 17  }
   0xb   : > { %v427_v0 = vld [vmem:[%s8625_s2] sm:$0x11]  ;;  %v605_v1 = vld [vmem:[%s8625_s2] sm:$0x22]  ;;  %v943_v6 = vld [vmem:[%s8625_s2] sm:$0x88] }
   0xc   : > { %v429_v2 = vunpack.c.l.b16 %v427_v0  ;;  %v430_v3 = vunpack.c.h.b16 %v427_v0  ;;  %v607_v4 = vunpack.c.l.b16 %v605_v1  ;;  %v608_v5 = vunpack.c.h.b16 %v605_v1  ;;  %v844_v7 = vld [vmem:[%s8625_s2] sm:$0x44]  ;;  %s8895_s18 = smov (!%p389_p3, %s5222_s18), 1 }
   0xd   : > { %v945_v8 = vunpack.c.l.b16 %v943_v6  ;;  %v946_v9 = vunpack.c.h.b16 %v943_v6  ;;  %v846_v10 = vunpack.c.l.b16 %v844_v7  ;;  %v847_v16 = vunpack.c.h.b16 %v844_v7  ;;  %s5229_s27 = sshll.u32 %s8895_s18, 1  ;;  %s5749_s23 = sshll.u32 %s8895_s18, 4 }
   0xe   : > { %v431_v11 = vpack.c.b16 %v429_v2, %v429_v2  ;;  %v432_v12 = vpack.c.b16 %v430_v3, %v430_v3  ;;  %v609_v13 = vpack.c.b16 %v607_v4, %v607_v4  ;;  %v610_v14 = vpack.c.b16 %v608_v5, %v608_v5  ;;  %s6207_s30 = scalar_lea.vmem %s8624_s1, %s5229_s27  ;;  %s6212_s14 = scalar_lea.vmem %s8634_s11, %s5229_s27 }
   0xf   : > { %v6197_v15 = vpack.c.b16 %v945_v8, %v945_v8  ;;  %v6199_v20 = vpack.c.b16 %v946_v9, %v946_v9  ;;  %v848_v28 = vpack.c.b16 %v846_v10, %v846_v10  ;;  %v849_v36 = vpack.c.b16 %v847_v16, %v847_v16  ;;  %s393_s26 = scalar_lea.vmem %s8623_s0, %s5749_s23  ;;  %s8637_s18 = smov 16  }
  0x10   : > { %v465_v17 = vshrl.u32 %v431_v11, 16  ;;  %v469_v18 = vshrl.u32 %v432_v12, 16  ;;  %v434_v19 = vpack.i.b16 %v431_v11, %v431_v11  ;;  %v612_v21 = vpack.i.b16 %v609_v13, %v609_v13  ;;  %v419_v5 = vld [vmem:[%s393_s26] sm:$0xff]  ;;  %v420_v6 = vld [vmem:[%s393_s26 + $0x8] sm:$0xff]  ;;  %s6411_s27 = smov 0  }
  0x11   : > { %v616_v22 = vpack.i.b16 %v610_v14, %v610_v14  ;;  %v699_v23 = vshrl.u32 %v609_v13, 16  ;;  %v703_v24 = vshrl.u32 %v610_v14, 16  ;;  %v438_v27 = vpack.i.b16 %v432_v12, %v432_v12 }
  0x12   : > { %v466_v25 = vpack.i.b16 %v465_v17, %v465_v17  ;;  %v470_v26 = vpack.i.b16 %v469_v18, %v469_v18  ;;  %v614_v29 = vperm.slane %v612_v21, 1  ;;  %v436_v35 = vperm.slane %v434_v19, 0 }
  0x13   : > { %v618_v30 = vperm.slane %v616_v22, 1  ;;  %v700_v31 = vpack.i.b16 %v699_v23, %v699_v23  ;;  %v704_v32 = vpack.i.b16 %v703_v24, %v703_v24  ;;  %v440_v43 = vperm.slane %v438_v27, 0 }
  0x14   : > { %v468_v33 = vperm.slane %v466_v25, 0  ;;  %v472_v34 = vperm.slane %v470_v26, 0  ;;  %v619_v37 = vunpack.c.l.bf16 %v614_v29  ;;  %v950_v44 = vpack.i.b16 %v6197_v15, %v6197_v15 }
  0x15   : > { %v620_v38 = vunpack.c.l.bf16 %v618_v30  ;;  %v702_v39 = vperm.slane %v700_v31, 1  ;;  %v706_v40 = vperm.slane %v704_v32, 1  ;;  %v954_v46 = vpack.i.b16 %v6199_v20, %v6199_v20 }
  0x16   : > { %v473_v41 = vunpack.c.l.bf16 %v468_v33  ;;  %v474_v42 = vunpack.c.l.bf16 %v472_v34  ;;  %v952_v48 = vperm.slane %v950_v44, 3  ;;  %v851_v49 = vshrl.u32 %v848_v28, 16 }
  0x17   : > { %v5862_v45 = vpack.i.bf16 %v620_v38, %v619_v37  ;;  %v856_v50 = vshrl.u32 %v849_v36, 16  ;;  %v444_v51 = vunpack.c.l.bf16 %v436_v35  ;;  %v707_v52 = vunpack.c.l.bf16 %v702_v39  ;;  %v1125_v35 = vld [vmem:[%s8625_s2 + $0x8] sm:$0x11] }
  0x18   : > { %v5852_v47 = vpack.i.bf16 %v474_v42, %v473_v41  ;;  %v708_v53 = vunpack.c.l.bf16 %v706_v40  ;;  %v956_v54 = vperm.slane %v954_v46, 3  ;;  %v445_v55 = vunpack.c.l.bf16 %v440_v43 }
  0x19   : > { %5863 = vrot.lane.b32.xlu1 %v5862_v45, %s8649_s15  ;;  %v957_v56 = vunpack.c.l.bf16 %v952_v48  ;;  %v852_v57 = vpack.i.b16 %v851_v49, %v851_v49  ;;  %v857_v58 = vpack.i.b16 %v856_v50, %v856_v50  ;;  %v8651_v4 = vmov 0  }
  0x1a   : > { %5853 = vrot.lane.b32.xlu0 %v5852_v47, %s8647_s16  ;;  %v958_v59 = vunpack.c.l.bf16 %v956_v54  ;;  %v5867_v62 = vpack.i.bf16 %v708_v53, %v707_v52  ;;  %v5857_v0 = vpack.i.bf16 %v445_v55, %v444_v51  ;;  %403 = vst [vmem:[#allocation2] sm:$0xf] %v8651_v4  ;;  %5892 = vset.pattern.permute.xlu2 %v8651_v4  ;;  %vm452_vm0 = vcmask 908288  }
  0x1b   : > { %v854_v60 = vperm.slane %v852_v57, 2  ;;  %v859_v61 = vperm.slane %v857_v58, 2  ;;  %5893 = vset.pattern.permute.xlu0 %v8651_v4  ;;  %404 = vst [vmem:[#allocation2 + $0x10] sm:$0xf] %v8651_v4  ;;  %v6242_v7 = vpack.c.bf16 %v420_v6, %v419_v5  ;;  %vm627_vm1 = vcmask 924672  }
  0x1c   : > { %v5872_v63 = vpack.i.bf16 %v958_v59, %v957_v56  ;;  %405 = vst [vmem:[#allocation2 + $0x20] sm:$0xf] %v8651_v4  ;;  %vm481_vm2 = vcmask 916480   ;;  %v1037_v26 = vshrl.u32 %v6197_v15, 16  ;;  %v1041_v30 = vshrl.u32 %v6199_v20, 16 }
  0x1d   : > { %v863_v1 = vunpack.c.l.bf16 %v854_v60  ;;  %v864_v2 = vunpack.c.l.bf16 %v859_v61  ;;  %406 = vst [vmem:[#allocation2 + $0x30] sm:$0xf] %v8651_v4  ;;  %v1127_v39 = vunpack.c.l.b16 %v1125_v35  ;;  %v1128_v40 = vunpack.c.h.b16 %v1125_v35 }
  0x1e   : > { %5873 = vrot.lane.b32.xlu2 %v5872_v63, %s8645_s19  ;;  %407 = vst [vmem:[#allocation2 + $0x40] sm:$0xf] %v8651_v4  ;;  %v1038_v37 = vpack.i.b16 %v1037_v26, %v1037_v26  ;;  %v1042_v38 = vpack.i.b16 %v1041_v30, %v1041_v30  ;;  %vm715_vm3 = vcmask 1039360   ;;  %vm743_vm4 = vcmask 7168  }
  0x1f   : > { %v5877_v3 = vpack.i.bf16 %v864_v2, %v863_v1  ;;  %408 = vst [vmem:[#allocation2 + $0x50] sm:$0xf] %v8651_v4  ;;  %v1129_v46 = vpack.c.b16 %v1127_v39, %v1127_v39  ;;  %v1130_v47 = vpack.c.b16 %v1128_v40, %v1128_v40  ;;  %vm655_vm5 = vcmask 121856  }
  0x20   : > { %409 = vst [vmem:[#allocation2 + $0x60] sm:$0xf] %v8651_v4  ;;  %v1040_v43 = vperm.slane %v1038_v37, 3  ;;  %v1044_v44 = vperm.slane %v1042_v38, 3  ;;  %vm565_vm6 = vcmask 138240   ;;  %vm516_vm7 = vcmask 1043456  }
  0x21   : > { %5868 = vrot.lane.b32.xlu1 %v5867_v62, %s8643_s20  ;;  %410 = vst [vmem:[#allocation2 + $0x70] sm:$0xf] %v8651_v4  ;;  %v1132_v53 = vpack.i.b16 %v1129_v46, %v1129_v46  ;;  %v1136_v54 = vpack.i.b16 %v1130_v47, %v1130_v47  ;;  %vm509_vm8 = vcmask 130048   ;;  %vm512_vm9 = vcmask 64512  }
  0x22   : > { %5858 = vrot.lane.b32.xlu0 %v5857_v0, %s8641_s21  ;;  %412 = vst [vmem:[#allocation2 + $0x1c] sm:$0xf] %v8651_v4  ;;  %v1045_v50 = vunpack.c.l.bf16 %v1040_v43  ;;  %v1046_v51 = vunpack.c.l.bf16 %v1044_v44  ;;  %v5750_v44 = vld [vmem:[%s8626_s3] sm:$0xff] }
  0x23   : > { %413 = vst [vmem:[#allocation2 + $0x2c] sm:$0xf] %v8651_v4  ;;  %v1134_v57 = vperm.slane %v1132_v53, 0  ;;  %v1138_v58 = vperm.slane %v1136_v54, 0 }
  0x24   : > { %414 = vst [vmem:[#allocation2 + $0x3c] sm:$0xf] %v8651_v4  ;;  %v5882_v55 = vpack.i.bf16 %v1046_v51, %v1045_v50  ;;  %v5751_v50 = vld [vmem:[%s8626_s3 + $0x8] sm:$0xff] }
  0x25   : > { %415 = vst [vmem:[#allocation2 + $0x4c] sm:$0xf] %v8651_v4  ;;  %v1139_v60 = vunpack.c.l.bf16 %v1134_v57  ;;  %v1140_v61 = vunpack.c.l.bf16 %v1138_v58 }
  0x26   : > { %5878 = vrot.lane.b32.xlu2 %v5877_v3, %s8639_s22  ;;  %416 = vst [vmem:[#allocation2 + $0x5c] sm:$0xf] %v8651_v4 }
  0x27   : > { %417 = vst [vmem:[#allocation2 + $0x6c] sm:$0xf] %v8651_v4  ;;  %v5887_v1 = vpack.i.bf16 %v1140_v61, %v1139_v60 }
  0x28   : > { %418 = vst [vmem:[#allocation2 + $0x7c] sm:$0xf] %v8651_v4 }
  0x29   : > { %424 = vst [vmem:[#allocation2 + $0x4] sm:$0xff] %v6242_v7 }
  0x2a   : > { %411 = vst [vmem:[#allocation2 + $0xc] sm:$0xf] %v8651_v4 }
  0x30   : > { %v425_v8 = vld [vmem:[#allocation2] sm:$0xff]  ;;  %v426_v16 = vld [vmem:[#allocation2 + $0x8] sm:$0xf] }
  0x31   : > { %v6249_v9 = vunpack.c.l.bf16 %v425_v8  ;;  %v6257_v21 = vunpack.c.l.bf16 %v426_v16  ;;  %v442_v25 = vunpack.c.h.bf16 %v425_v8 }
  0x78   : > { %v5874_v5 = vpop.permute.xlu2 %5873 }
  0x79   : > { %v5875_v26 = vunpack.i.l.bf16 %v5874_v5 }
  0x8b   : > { %v6252_v14 = vpop.permute.xlu1 %5863 }
  0x8c   : > { %v5854_v10 = vpop.permute.xlu0 %5853  ;;  %v5866_v18 = vunpack.i.h.bf16 %v6252_v14  ;;  %v5865_v19 = vunpack.i.l.bf16 %v6252_v14 }
  0x8d   : > { %v5855_v11 = vunpack.i.l.bf16 %v5854_v10  ;;  %v5856_v24 = vunpack.i.h.bf16 %v5854_v10 }
  0x8e   : > { %v628_v32 = vsel %vm627_vm1, %v5865_v19, %v5866_v18  ;;  %v632_v52 = vmul.f32 %v5865_v19, %v6249_v9  ;;  %v634_v0 = vmul.f32 %v5866_v18, %v6257_v21  ;;  %v6290_v19 = vunpack.c.h.bf16 %v6242_v7 }
  0x8f   : > { %v486_v12 = vmul.f32 %v5855_v11, %v6249_v9  ;;  %v482_v15 = vsel %vm481_vm2, %v5855_v11, %v5856_v24  ;;  %v633_v20 = vmul.f32 %v628_v32, %v442_v25  ;;  %v488_v42 = vmul.f32 %v5856_v24, %v6257_v21 }
  0x90   : > { %v487_v41 = vmul.f32 %v482_v15, %v442_v25  ;;  %v635_v56 = vpack.c.bf16 %v632_v52, %v632_v52  ;;  %v637_v3 = vpack.c.bf16 %v634_v0, %v634_v0  ;;  %v797_v52 = vunpack.c.l.b16 %v6242_v7 }
  0x91   : > { %v489_v13 = vpack.c.bf16 %v486_v12, %v486_v12  ;;  %v636_v45 = vpack.c.bf16 %v633_v20, %v633_v20  ;;  %v491_v49 = vpack.c.bf16 %v488_v42, %v488_v42  ;;  %v843_v12 = vld [vmem:[#allocation2 + $0xc] sm:$0xf] }
  0x92   : > { %v490_v48 = vpack.c.bf16 %v487_v41, %v487_v41  ;;  %v6286_v14 = vunpack.c.l.bf16 %v843_v12  ;;  %v799_v58 = vpack.c.b16 %v797_v52, %v797_v52 }
  0x93   : > { %503 = vrot.lane.b32.xlu2 %v489_v13, %s8637_s18  ;;  %v5869_v59 = vpop.permute.xlu1 %5868  ;;  %v5879_v13 = vpop.permute.xlu2 %5878 }
  0x94   : > { %v5859_v17 = vpop.permute.xlu0 %5858  ;;  %v5871_v62 = vunpack.i.h.bf16 %v5869_v59  ;;  %v5870_v63 = vunpack.i.l.bf16 %v5869_v59  ;;  %v5881_v16 = vunpack.i.h.bf16 %v5879_v13  ;;  %v798_v59 = vunpack.c.h.b16 %v6242_v7 }
  0x95   : > { %v5861_v22 = vunpack.i.h.bf16 %v5859_v17  ;;  %v5860_v23 = vunpack.i.l.bf16 %v5859_v17  ;;  %v5880_v17 = vunpack.i.l.bf16 %v5879_v13 }
  0x96   : > { %v716_v2 = vsel %vm715_vm3, %v5870_v63, %v5871_v62  ;;  %v722_v8 = vmul.f32 %v5871_v62, %v6257_v21  ;;  %v878_v18 = vmul.f32 %v5881_v16, %v6286_v14 }
  0x97   : > { %v457_v27 = vmul.f32 %v5860_v23, %v6249_v9  ;;  %v459_v28 = vmul.f32 %v5861_v22, %v6257_v21  ;;  %v453_v29 = vsel %vm452_vm0, %v5860_v23, %v5861_v22  ;;  %v721_v6 = vmul.f32 %v716_v2, %v442_v25 }
  0x98   : > { %v458_v31 = vmul.f32 %v453_v29, %v442_v25  ;;  %v725_v11 = vpack.c.bf16 %v722_v8, %v722_v8  ;;  %v872_v21 = vsel %vm743_vm4, %v5880_v17, %v5881_v16  ;;  %v5876_v23 = vunpack.i.h.bf16 %v5874_v5 }
  0x99   : > { %v462_v33 = vpack.c.bf16 %v459_v28, %v459_v28  ;;  %v460_v34 = vpack.c.bf16 %v457_v27, %v457_v27  ;;  %v724_v10 = vpack.c.bf16 %v721_v6, %v721_v6  ;;  %v877_v22 = vmul.f32 %v872_v21, %v6290_v19 }
  0x9a   : > { %v461_v36 = vpack.c.bf16 %v458_v31, %v458_v31  ;;  %v881_v25 = vpack.c.bf16 %v878_v18, %v878_v18  ;;  %v972_v27 = vmul.f32 %v5876_v23, %v6286_v14  ;;  %v720_v28 = vmul.f32 %v5870_v63, %v6249_v9  ;;  %v5752_v18 = vld [vmem:[%s8626_s3 + $0x10] sm:$0xff] }
  0x9b   : > { %563 = vrot.lane.b32.xlu2 %v462_v33, %s8635_s29  ;;  %559 = vrot.lane.b32.xlu0 %v460_v34, %s8635_s29  ;;  %v880_v24 = vpack.c.bf16 %v877_v22, %v877_v22  ;;  %v966_v29 = vsel %vm655_vm5, %v5875_v26, %v5876_v23  ;;  %v6301_v31 = vunpack.c.l.bf16 %v6242_v7  ;;  %v805_v2 = vsel %vm516_vm7, %v799_v58, 0 }
  0x9c   : > { %561 = vrot.lane.b32.xlu1 %v461_v36, %s8635_s29  ;;  %v971_v30 = vmul.f32 %v966_v29, %v6290_v19  ;;  %v975_v33 = vpack.c.bf16 %v972_v27, %v972_v27  ;;  %v723_v34 = vpack.c.bf16 %v720_v28, %v720_v28  ;;  %v800_v6 = vpack.c.b16 %v798_v59, %v798_v59 }
  0x9d   : > { %v876_v35 = vmul.f32 %v5880_v17, %v6301_v31  ;;  %v970_v36 = vmul.f32 %v5875_v26, %v6301_v31 }
  0x9e   : > { %v974_v32 = vpack.c.bf16 %v971_v30, %v971_v30  ;;  %v808_v12 = vsel %vm516_vm7, %v800_v6, 0 }
  0x9f   : > { %v879_v9 = vpack.c.bf16 %v876_v35, %v876_v35  ;;  %v973_v15 = vpack.c.bf16 %v970_v36, %v970_v36  ;;  %v5754_v35 = vld [vmem:[%s8626_s3 + $0x20] sm:$0xff] }
  0xa3   : > { %505 = vrot.lane.b32.xlu0 %v490_v48, %s8637_s18  ;;  %651 = vrot.lane.b32.xlu2 %v636_v45, %s8645_s19 }
  0xa4   : > { %507 = vrot.lane.b32.xlu1 %v491_v49, %s8637_s18 }
  0xab   : > { %5883 = vrot.lane.b32.xlu0 %v5882_v55, %s8637_s18  ;;  %737 = vrot.lane.b32.xlu2 %v723_v34, %s8639_s22 }
  0xac   : > { %649 = vrot.lane.b32.xlu1 %v635_v56, %s8645_s19 }
  0xb3   : > { %653 = vrot.lane.b32.xlu0 %v637_v3, %s8645_s19  ;;  %893 = vrot.lane.b32.xlu2 %v879_v9, %s8643_s20 }
  0xb4   : > { %5888 = vrot.lane.b32.xlu1 %v5887_v1, %s8635_s29 }
  0xbb   : > { %739 = vrot.lane.b32.xlu0 %v724_v10, %s8639_s22  ;;  %987 = vrot.lane.b32.xlu2 %v973_v15, %s8649_s15 }
  0xbc   : > { %741 = vrot.lane.b32.xlu1 %v725_v11, %s8639_s22 }
  0xc3   : > { %895 = vrot.lane.b32.xlu0 %v880_v24, %s8643_s20 }
  0xc4   : > { %897 = vrot.lane.b32.xlu1 %v881_v25, %s8643_s20 }
  0xcb   : > { %989 = vrot.lane.b32.xlu0 %v974_v32, %s8649_s15  ;;  %v5753_v32 = vld [vmem:[%s8626_s3 + $0x18] sm:$0xff] }
  0xcc   : > { %991 = vrot.lane.b32.xlu1 %v975_v33, %s8649_s15 }
  0xed   : > { %v504_v37 = vpop.permute.xlu2 %503 }
  0xf5   : > { %v564_v20 = vpop.permute.xlu2 %563 }
  0xfd   : > { %v652_v54 = vpop.permute.xlu2 %651 }
 0x105   : > { %v738_v27 = vpop.permute.xlu2 %737 }
 0x10d   : > { %v560_v38 = vpop.permute.xlu0 %559  ;;  %v894_v34 = vpop.permute.xlu2 %893 }
 0x10e   : > { %v562_v39 = vpop.permute.xlu1 %561 }
 0x10f   : > { %v566_v40 = vsel %vm565_vm6, %v560_v38, %v562_v39  ;;  %v567_v41 = vsel %vm565_vm6, %v562_v39, %v564_v20  ;;  %v5755_v39 = vld [vmem:[%s8626_s3 + $0x28] sm:$0xff] }
 0x110   : > { %v572_v42 = vsel %vm516_vm7, %v566_v40, 0  ;;  %v575_v43 = vsel %vm516_vm7, %v567_v41, 0 }
 0x111   : > { %584 = vmatpush.bf16.msra.mxu2 %v572_v42  ;;  %598 = vmatpush.bf16.msra.mxu3 %v575_v43 }
 0x114   : > { %5243 = vmatmul.msk.bf16.vlgmr.msra.gmra.mxu2 %vm512_vm9, %v5750_v44  ;;  %5244 = vmatmul.msk.bf16.vlgmr.msra.gmra.mxu3 %vm512_vm9, %v5750_v44 }
 0x115   : > { %v506_v45 = vpop.permute.xlu0 %505  ;;  %v988_v40 = vpop.permute.xlu2 %987 }
 0x116   : > { %v508_v46 = vpop.permute.xlu1 %507  ;;  %v510_v47 = vsel %vm509_vm8, %v504_v37, %v506_v45 }
 0x117   : > { %v518_v48 = vsel %vm516_vm7, %v510_v47, 0  ;;  %v511_v49 = vsel %vm509_vm8, %v506_v45, %v508_v46  ;;  %v5756_v47 = vld [vmem:[%s8626_s3 + $0x30] sm:$0xff] }
 0x118   : > { %530 = vmatpush.bf16.msra.mxu0 %v518_v48  ;;  %v521_v51 = vsel %vm516_vm7, %v511_v49, 0  ;;  %v422_v48 = vld [vmem:[%s8627_s4 + $0x8] sm:$0xff]  ;;  %v421_v49 = vld [vmem:[%s8627_s4] sm:$0xff] }
 0x119   : > { %544 = vmatpush.bf16.msra.mxu1 %v521_v51 }
 0x11b   : > { %5237 = vmatmul.msk.bf16.vlgmr.msra.gmra.mxu0 %vm512_vm9, %v5751_v50 }
 0x11c   : > { %5238 = vmatmul.msk.bf16.vlgmr.msra.gmra.mxu1 %vm512_vm9, %v5751_v50 }
 0x11d   : > { %v5884_v53 = vpop.permute.xlu0 %5883 }
 0x11e   : > { %v5886_v55 = vunpack.i.h.bf16 %v5884_v53  ;;  %v5885_v56 = vunpack.i.l.bf16 %v5884_v53  ;;  %v650_v57 = vpop.permute.xlu1 %649 }
 0x11f   : > { %v656_v60 = vsel %vm655_vm5, %v650_v57, %v652_v54  ;;  %v5757_v57 = vld [vmem:[%s8626_s3 + $0x38] sm:$0xff] }
 0x120   : > { %v1060_v61 = vmul.f32 %v5886_v55, %v6286_v14  ;;  %v1058_v62 = vmul.f32 %v5885_v56, %v6301_v31  ;;  %v662_v63 = vsel %vm516_vm7, %v656_v60, 0  ;;  %v1054_v0 = vsel %vm509_vm8, %v5885_v56, %v5886_v55 }
 0x121   : > { %674 = vmatpush.bf16.msrb.mxu0 %v662_v63  ;;  %v1059_v1 = vmul.f32 %v1054_v0, %v6290_v19 }
 0x122   : > { %v1063_v3 = vpack.c.bf16 %v1060_v61, %v1060_v61  ;;  %v1061_v5 = vpack.c.bf16 %v1058_v62, %v1058_v62 }
 0x123   : > { %v1062_v7 = vpack.c.bf16 %v1059_v1, %v1059_v1  ;;  %v5758_v1 = vld [vmem:[%s8626_s3 + $0x40] sm:$0xff] }
 0x124   : > { %1079 = vrot.lane.b32.xlu1 %v1063_v3, %s8647_s16  ;;  %1075 = vrot.lane.b32.xlu2 %v1061_v5, %s8647_s16 }
 0x125   : > { %817 = vmatpush.bf16.msra.mxu0 %v805_v2  ;;  %v654_v8 = vpop.permute.xlu0 %653  ;;  %1077 = vrot.lane.b32.xlu0 %v1062_v7, %s8647_s16 }
 0x126   : > { %v5889_v10 = vpop.permute.xlu1 %5888  ;;  %v657_v11 = vsel %vm655_vm5, %v652_v54, %v654_v8 }
 0x127   : > { %v5891_v13 = vunpack.i.h.bf16 %v5889_v10  ;;  %v5890_v16 = vunpack.i.l.bf16 %v5889_v10  ;;  %v665_v17 = vsel %vm516_vm7, %v657_v11, 0 }
 0x128   : > { %688 = vmatpush.bf16.msrb.mxu1 %v665_v17 }
 0x129   : > { %v1154_v21 = vmul.f32 %v5891_v13, %v6286_v14  ;;  %v1152_v22 = vmul.f32 %v5890_v16, %v6301_v31  ;;  %v1148_v23 = vsel %vm565_vm6, %v5890_v16, %v5891_v13 }
 0x12a   : > { %v1153_v24 = vmul.f32 %v1148_v23, %v6290_v19 }
 0x12b   : > { %v1157_v25 = vpack.c.bf16 %v1154_v21, %v1154_v21  ;;  %v1155_v26 = vpack.c.bf16 %v1152_v22, %v1152_v22  ;;  %5251 = vmatmul.msk.bf16.vlgmr.msrb.gmra.mxu0 %vm512_vm9, %v5752_v18 }
 0x12c   : > { %831 = vmatpush.bf16.msra.mxu1 %v808_v12  ;;  %v1156_v28 = vpack.c.bf16 %v1153_v24, %v1153_v24 }
 0x12d   : > { %5252 = vmatmul.msk.bf16.vlgmr.msrb.gmra.mxu1 %vm512_vm9, %v5752_v18  ;;  %1173 = vrot.lane.b32.xlu1 %v1157_v25, %s8641_s21  ;;  %v740_v14 = vpop.permute.xlu0 %739 }
 0x12e   : > { %1169 = vrot.lane.b32.xlu2 %v1155_v26, %s8641_s21  ;;  %1171 = vrot.lane.b32.xlu0 %v1156_v28, %s8641_s21  ;;  %v742_v29 = vpop.permute.xlu1 %741  ;;  %v744_v30 = vsel %vm743_vm4, %v738_v27, %v740_v14 }
 0x12f   : > { %v750_v19 = vsel %vm516_vm7, %v744_v30, 0  ;;  %v745_v31 = vsel %vm743_vm4, %v740_v14, %v742_v29 }
 0x130   : > { %762 = vmatpush.bf16.msrb.mxu2 %v750_v19  ;;  %v753_v33 = vsel %vm516_vm7, %v745_v31, 0 }
 0x131   : > { %776 = vmatpush.bf16.msrb.mxu3 %v753_v33 }
 0x133   : > { %5259 = vmatmul.msk.bf16.vlgmr.msrb.gmra.mxu2 %vm512_vm9, %v5753_v32 }
 0x134   : > { %5260 = vmatmul.msk.bf16.vlgmr.msrb.gmra.mxu3 %vm512_vm9, %v5753_v32 }
 0x135   : > { %v896_v9 = vpop.permute.xlu0 %895 }
 0x136   : > { %v898_v36 = vpop.permute.xlu1 %897  ;;  %v900_v15 = vsel %vm715_vm3, %v894_v34, %v896_v9  ;;  %1226 = vperm.xlu0 %5893, %v422_v48   ;;  %1221 = vperm.xlu2 %5892, %v421_v49  }
 0x137   : > { %v901_v37 = vsel %vm715_vm3, %v896_v9, %v898_v36  ;;  %v906_v38 = vsel %vm516_vm7, %v900_v15, 0 }
 0x138   : > { %v909_v20 = vsel %vm516_vm7, %v901_v37, 0  ;;  %918 = vmatpush.bf16.msra.mxu2 %v906_v38 }
 0x139   : > { %932 = vmatpush.bf16.msra.mxu3 %v909_v20 }
 0x13b   : > { %5267 = vmatmul.msk.bf16.vlgmr.msra.gmra.mxu0 %vm512_vm9, %v5754_v35 }
 0x13d   : > { %5268 = vmatmul.msk.bf16.vlgmr.msra.gmra.mxu1 %vm512_vm9, %v5754_v35  ;;  %v990_v41 = vpop.permute.xlu0 %989 }
 0x13e   : > { %v992_v42 = vpop.permute.xlu1 %991  ;;  %v994_v43 = vsel %vm627_vm1, %v988_v40, %v990_v41 }
 0x13f   : > { %v995_v44 = vsel %vm627_vm1, %v990_v41, %v992_v42  ;;  %v1000_v45 = vsel %vm516_vm7, %v994_v43, 0 }
 0x140   : > { %v1003_v46 = vsel %vm516_vm7, %v995_v44, 0  ;;  %1012 = vmatpush.bf16.msrb.mxu0 %v1000_v45 }
 0x141   : > { %1026 = vmatpush.bf16.msrb.mxu1 %v1003_v46 }
 0x143   : > { %5275 = vmatmul.msk.bf16.vlgmr.msra.gmra.mxu2 %vm512_vm9, %v5755_v39 }
 0x144   : > { %5276 = vmatmul.msk.bf16.vlgmr.msra.gmra.mxu3 %vm512_vm9, %v5755_v39 }
 0x14b   : > { %5283 = vmatmul.msk.bf16.vlgmr.msrb.gmra.mxu0 %vm512_vm9, %v5756_v47 }
 0x14d   : > { %5284 = vmatmul.msk.bf16.vlgmr.msrb.gmra.mxu1 %vm512_vm9, %v5756_v47 }
 0x17e   : > { %v1076_v50 = vpop.permute.xlu2 %1075 }
 0x188   : > { %v1170_v59 = vpop.permute.xlu2 %1169 }
 0x196   : > { %v1080_v51 = vpop.permute.xlu1 %1079 }
 0x197   : > { %v1078_v52 = vpop.permute.xlu0 %1077  ;;  %v586_v7 = vpop.f32.mrf.mxu2 }
 0x198   : > { %v1082_v53 = vsel %vm481_vm2, %v1076_v50, %v1078_v52  ;;  %v1083_v54 = vsel %vm481_vm2, %v1078_v52, %v1080_v51  ;;  %v532_v2 = vpop.f32.mrf.mxu0  ;;  %v600_v8 = vpop.f32.mrf.mxu3 }
 0x199   : > { %v1088_v55 = vsel %vm516_vm7, %v1082_v53, 0  ;;  %v1091_v56 = vsel %vm516_vm7, %v1083_v54, 0  ;;  %v546_v3 = vpop.f32.mrf.mxu1  ;;  %v587_v28 = vadd.f32 %v586_v7, %v532_v2 }
 0x19a   : > { %1100 = vmatpush.bf16.msrb.mxu2 %v1088_v55  ;;  %1114 = vmatpush.bf16.msrb.mxu3 %v1091_v56  ;;  %v601_v14 = vadd.f32 %v600_v8, %v546_v3  ;;  %v1222_v55 = vpop.permute.xlu2 %1221 }
 0x19d   : > { %5291 = vmatmul.msk.bf16.vlgmr.msrb.gmra.mxu2 %vm512_vm9, %v5757_v57  ;;  %5292 = vmatmul.msk.bf16.vlgmr.msrb.gmra.mxu3 %vm512_vm9, %v5757_v57 }
 0x19f   : > { %v1174_v58 = vpop.permute.xlu1 %1173  ;;  %v588_v12 = vpop.f32.mrf.mxu2 }
 0x1a0   : > { %v1172_v60 = vpop.permute.xlu0 %1171  ;;  %v534_v5 = vpop.f32.mrf.mxu0 }
 0x1a1   : > { %v1176_v61 = vsel %vm452_vm0, %v1170_v59, %v1172_v60  ;;  %v1177_v62 = vsel %vm452_vm0, %v1172_v60, %v1174_v58  ;;  %v548_v6 = vpop.f32.mrf.mxu1  ;;  %v602_v13 = vpop.f32.mrf.mxu3  ;;  %v589_v34 = vadd.f32 %v588_v12, %v534_v5 }
 0x1a2   : > { %v1182_v63 = vsel %vm516_vm7, %v1176_v61, 0  ;;  %v1185_v0 = vsel %vm516_vm7, %v1177_v62, 0  ;;  %v603_v35 = vadd.f32 %v602_v13, %v548_v6 }
 0x1a3   : > { %1194 = vmatpush.bf16.msra.mxu0 %v1182_v63  ;;  %1208 = vmatpush.bf16.msra.mxu1 %v1185_v0 }
 0x1a6   : > { %5299 = vmatmul.msk.bf16.vlgmr.msra.gmra.mxu0 %vm512_vm9, %v5758_v1  ;;  %5300 = vmatmul.msk.bf16.vlgmr.msra.gmra.mxu1 %vm512_vm9, %v5758_v1 }
 0x1a8   : > { %v676_v10 = vpop.f32.mrf.mxu0  ;;  %v1227_v7 = vpop.permute.xlu0 %1226 }
 0x1a9   : > { %v695_v19 = vadd.f32 %v676_v10, %v587_v28 }
 0x1aa   : > { %v690_v11 = vpop.f32.mrf.mxu1 }
 0x1ab   : > { %v696_v31 = vadd.f32 %v690_v11, %v601_v14 }
 0x1b0   : > { %v678_v16 = vpop.f32.mrf.mxu0 }
 0x1b1   : > { %v697_v15 = vadd.f32 %v678_v16, %v589_v34 }
 0x1b2   : > { %v692_v17 = vpop.f32.mrf.mxu1 }
 0x1b3   : > { %v698_v37 = vadd.f32 %v692_v17, %v603_v35 }
 0x1b6   : > { %v764_v18 = vpop.f32.mrf.mxu2 }
 0x1b7   : > { %v778_v21 = vpop.f32.mrf.mxu3  ;;  %v783_v9 = vadd.f32 %v764_v18, %v695_v19 }
 0x1b8   : > { %v819_v22 = vpop.f32.mrf.mxu0  ;;  %v784_v36 = vadd.f32 %v778_v21, %v696_v31 }
 0x1b9   : > { %v838_v38 = vadd.f32 %v819_v22, %v783_v9 }
 0x1ba   : > { %v833_v23 = vpop.f32.mrf.mxu1 }
 0x1bb   : > { %v839_v20 = vadd.f32 %v833_v23, %v784_v36 }
 0x1be   : > { %v766_v24 = vpop.f32.mrf.mxu2 }
 0x1bf   : > { %v780_v25 = vpop.f32.mrf.mxu3  ;;  %v785_v41 = vadd.f32 %v766_v24, %v697_v15 }
 0x1c0   : > { %v821_v26 = vpop.f32.mrf.mxu0  ;;  %v786_v42 = vadd.f32 %v780_v25, %v698_v37 }
 0x1c1   : > { %v840_v47 = vadd.f32 %v821_v26, %v785_v41 }
 0x1c2   : > { %v835_v27 = vpop.f32.mrf.mxu1 }
 0x1c3   : > { %v841_v48 = vadd.f32 %v835_v27, %v786_v42 }
 0x1c6   : > { %v920_v29 = vpop.f32.mrf.mxu2 }
 0x1c7   : > { %v934_v30 = vpop.f32.mrf.mxu3  ;;  %v939_v43 = vadd.f32 %v920_v29, %v838_v38 }
 0x1c8   : > { %v1014_v32 = vpop.f32.mrf.mxu0  ;;  %v940_v44 = vadd.f32 %v934_v30, %v839_v20 }
 0x1c9   : > { %v1033_v49 = vadd.f32 %v1014_v32, %v939_v43 }
 0x1ca   : > { %v1028_v33 = vpop.f32.mrf.mxu1 }
 0x1cb   : > { %v1034_v50 = vadd.f32 %v1028_v33, %v940_v44 }
 0x1ce   : > { %v922_v39 = vpop.f32.mrf.mxu2 }
 0x1cf   : > { %v936_v40 = vpop.f32.mrf.mxu3  ;;  %v941_v56 = vadd.f32 %v922_v39, %v840_v47 }
 0x1d0   : > { %v1016_v45 = vpop.f32.mrf.mxu0  ;;  %v942_v57 = vadd.f32 %v936_v40, %v841_v48 }
 0x1d1   : > { %v1035_v0 = vadd.f32 %v1016_v45, %v941_v56 }
 0x1d2   : > { %v1030_v46 = vpop.f32.mrf.mxu1 }
 0x1d3   : > { %v1036_v1 = vadd.f32 %v1030_v46, %v942_v57 }
 0x220   : > { %v1102_v51 = vpop.f32.mrf.mxu2  ;;  %v1116_v52 = vpop.f32.mrf.mxu3 }
 0x221   : > { %v1121_v53 = vadd.f32 %v1102_v51, %v1033_v49  ;;  %v1122_v54 = vadd.f32 %v1116_v52, %v1034_v50 }
 0x223   : > { %v1196_v58 = vpop.f32.mrf.mxu0  ;;  %v1210_v59 = vpop.f32.mrf.mxu1 }
 0x224   : > { %v1215_v60 = vadd.f32 %v1196_v58, %v1121_v53  ;;  %v1216_v61 = vadd.f32 %v1210_v59, %v1122_v54 }
 0x226   : > { %v1229_v62 = vadd.f32 %v1222_v55, %v1215_v60  ;;  %v1230_v63 = vadd.f32 %v1222_v55, %v1216_v61 }
 0x228   : > { %1233 = vst [vmem:[#allocation3 + $0x10] sm:$0xff] %v1229_v62  ;;  %v1104_v2 = vpop.f32.mrf.mxu2  ;;  %v1118_v3 = vpop.f32.mrf.mxu3 }
 0x229   : > { %1234 = vst [vmem:[#allocation3] sm:$0xff] %v1230_v63  ;;  %v1123_v5 = vadd.f32 %v1104_v2, %v1035_v0  ;;  %v1124_v6 = vadd.f32 %v1118_v3, %v1036_v1 }
 0x22b   : > { %v1198_v8 = vpop.f32.mrf.mxu0  ;;  %v1212_v10 = vpop.f32.mrf.mxu1 }
 0x22c   : > { %v1217_v11 = vadd.f32 %v1198_v8, %v1123_v5  ;;  %v1218_v12 = vadd.f32 %v1212_v10, %v1124_v6 }
 0x22e   : > { %v1231_v13 = vadd.f32 %v1227_v7, %v1217_v11  ;;  %v1232_v16 = vadd.f32 %v1227_v7, %v1218_v12 }
 0x230   : > { %1235 = vst [vmem:[#allocation3 + $0x18] sm:$0xff] %v1231_v13 }
 0x231   : > { %1236 = vst [vmem:[#allocation3 + $0x8] sm:$0xff] %v1232_v16 }
 0x232 LB: >> { %v1265_v17 = vld [vmem:[%s8625_s2] sm:$0x11]  ;;  %v1565_v18 = vld [vmem:[%s8625_s2] sm:$0x22]  ;;  %s6108_s24 = smov 111   ;;  %s6109_s25 = smov 112   ;;  %s6097_s27 = sphi %s6411_s27, %s1242_s27  }
 0x233   : >> { %v1267_v21 = vunpack.c.l.b16 %v1265_v17  ;;  %v1268_v22 = vunpack.c.h.b16 %v1265_v17  ;;  %v1567_v23 = vunpack.c.l.b16 %v1565_v18  ;;  %v1568_v24 = vunpack.c.h.b16 %v1565_v18  ;;  %s6110_s26 = smov 113   ;;  %v1243_v47 = vld [vmem:[#allocation3 + $0x10] sm:$0xff]  ;;  %v1244_v48 = vld [vmem:[#allocation3] sm:$0xff]  ;;  %s6111_s28 = smov 17  }
 0x234   : >> { %v6433_v51 = vpack.c.bf16 %v1244_v48, %v1243_v47  ;;  %s6112_s12 = smov 15   ;;  %s6113_s13 = smov 16   ;;  %vm3140_vm10 = vcmask 523264  }
 0x235   : >> { %v1269_v25 = vpack.c.b16 %v1267_v21, %v1267_v21  ;;  %v1270_v26 = vpack.c.b16 %v1268_v22, %v1268_v22  ;;  %v6422_v27 = vpack.c.b16 %v1567_v23, %v1567_v23  ;;  %v6424_v28 = vpack.c.b16 %v1568_v24, %v1568_v24  ;;  %s6114_s23 = smov 127   ;;  %s5759_s29 = smul.u32 288, %s6097_s27 }
 0x236   : >> { %1259 = vst [vmem:[#allocation2 + $0x4] sm:$0xff] %v6433_v51  ;;  %s6115_s15 = smov 1   ;;  %s5301_s20 = sshll.u32 %s6097_s27, 6 }
 0x237   : >> { %v1318_v14 = vshrl.u32 %v1269_v25, 16  ;;  %v1322_v29 = vshrl.u32 %v1270_v26, 16  ;;  %v1272_v30 = vpack.i.b16 %v1269_v25, %v1269_v25  ;;  %v1276_v19 = vpack.i.b16 %v1270_v26, %v1270_v26  ;;  %v1245_v49 = vld [vmem:[#allocation3 + $0x18] sm:$0xff]  ;;  %s6495_s21 = scalar_lea.vmem %s8628_s5, %s5759_s29  ;;  %s6805_s29 = scalar_lea.vmem %s8629_s6, %s5301_s20 }
 0x238   : >> { %v1572_v31 = vpack.i.b16 %v6422_v27, %v6422_v27  ;;  %v1576_v32 = vpack.i.b16 %v6424_v28, %v6424_v28  ;;  %v1246_v50 = vld [vmem:[#allocation3 + $0x8] sm:$0xff] }
 0x239   : >> { %v1319_v33 = vpack.i.b16 %v1318_v14, %v1318_v14  ;;  %v1323_v34 = vpack.i.b16 %v1322_v29, %v1322_v29  ;;  %v1274_v35 = vperm.slane %v1272_v30, 0  ;;  %v1278_v9 = vperm.slane %v1276_v19, 0 }
 0x23a   : >> { %v1574_v36 = vperm.slane %v1572_v31, 1  ;;  %v1578_v15 = vperm.slane %v1576_v32, 1  ;;  %v6435_v52 = vpack.c.bf16 %v1246_v50, %v1245_v49  ;;  %v1731_v32 = vshrl.u32 %v6422_v27, 16 }
 0x23b   : >> { %v1321_v37 = vperm.slane %v1319_v33, 0  ;;  %v1325_v38 = vperm.slane %v1323_v34, 0  ;;  %v1285_v20 = vunpack.c.l.bf16 %v1274_v35  ;;  %v1286_v39 = vunpack.c.l.bf16 %v1278_v9 }
 0x23c   : >> { %v1579_v44 = vunpack.c.l.bf16 %v1574_v36  ;;  %v1580_v45 = vunpack.c.l.bf16 %v1578_v15  ;;  %1260 = vst [vmem:[#allocation2 + $0x14] sm:$0xff] %v6435_v52  ;;  %v1735_v33 = vshrl.u32 %v6424_v28, 16  ;;  %v1732_v15 = vpack.i.b16 %v1731_v32, %v1731_v32 }
 0x23d   : >> { %v1326_v40 = vunpack.c.l.bf16 %v1321_v37  ;;  %v1327_v41 = vunpack.c.l.bf16 %v1325_v38  ;;  %v5899_v42 = vpack.i.bf16 %v1286_v39, %v1285_v20  ;;  %v6439_v53 = vld [vmem:[#allocation2 + $0x8] sm:$0xff]   ;;  %v1261_v3 = vld [vmem:[#allocation2] sm:$0xff] }
 0x23e   : >> { %v5904_v46 = vpack.i.bf16 %v1580_v45, %v1579_v44  ;;  %v6444_v57 = vunpack.c.l.bf16 %v6439_v53  ;;  %v6455_v6 = vunpack.c.l.bf16 %v1261_v3  ;;  %v6459_v10 = vunpack.c.h.bf16 %v1261_v3 }
 0x23f   : >> { %v5894_v43 = vpack.i.bf16 %v1327_v41, %v1326_v40  ;;  %5900 = vrot.lane.b32.xlu2 %v5899_v42, %s6108_s24  ;;  %v1736_v37 = vpack.i.b16 %v1735_v33, %v1735_v33  ;;  %v1734_v28 = vperm.slane %v1732_v15, 1 }
 0x241   : >> { %5895 = vrot.lane.b32.xlu0 %v5894_v43, %s6109_s25  ;;  %v1738_v39 = vperm.slane %v1736_v37, 1  ;;  %v1739_v42 = vunpack.c.l.bf16 %v1734_v28 }
 0x243   : >> { %v6441_v54 = vld [vmem:[#allocation2 + $0x18] sm:$0xff]   ;;  %v1263_v5 = vld [vmem:[#allocation2 + $0x10] sm:$0xff]  ;;  %v1740_v43 = vunpack.c.l.bf16 %v1738_v39 }
 0x244   : >> { %v6447_v58 = vunpack.c.l.bf16 %v6441_v54  ;;  %v6457_v7 = vunpack.c.l.bf16 %v1263_v5  ;;  %v6461_v11 = vunpack.c.h.bf16 %v1263_v5 }
 0x247   : >> { %5905 = vrot.lane.b32.xlu2 %v5904_v46, %s6110_s26  ;;  %v5909_v46 = vpack.i.bf16 %v1740_v43, %v1739_v42 }
 0x299   : >> { %v5901_v55 = vpop.permute.xlu2 %5900 }
 0x29a   : >> { %v5903_v56 = vunpack.i.h.bf16 %v5901_v55  ;;  %v5902_v18 = vunpack.i.l.bf16 %v5901_v55  ;;  %v2025_v55 = vld [vmem:[%s8625_s2] sm:$0x44] }
 0x29c   : >> { %v1299_v59 = vmul.f32 %v5903_v56, %v6444_v57  ;;  %v1302_v60 = vmul.f32 %v5903_v56, %v6447_v58  ;;  %v1297_v26 = vmul.f32 %v5902_v18, %v6455_v6  ;;  %v1300_v14 = vmul.f32 %v5902_v18, %v6457_v7 }
 0x29d   : >> { %v1293_v34 = vsel %vm452_vm0, %v5902_v18, %v5903_v56  ;;  %v5764_v56 = vld [vmem:[%s6495_s21 + $0x20] sm:$0xff] }
 0x29e   : >> { %v1305_v61 = vpack.c.bf16 %v1302_v60, %v1299_v59  ;;  %v1303_v19 = vpack.c.bf16 %v1300_v14, %v1297_v26  ;;  %v1298_v38 = vmul.f32 %v1293_v34, %v6459_v10  ;;  %v1301_v20 = vmul.f32 %v1293_v34, %v6461_v11 }
 0x2a0   : >> { %1489 = vrot.lane.b32.xlu2 %v1305_v61, %s6111_s28  ;;  %v1304_v40 = vpack.c.bf16 %v1301_v20, %v1298_v38  ;;  %v2027_v61 = vunpack.c.l.b16 %v2025_v55 }
 0x2a1   : >> { %v5906_v62 = vpop.permute.xlu2 %5905 }
 0x2a2   : >> { %v5908_v63 = vunpack.i.h.bf16 %v5906_v62  ;;  %v5907_v31 = vunpack.i.l.bf16 %v5906_v62 }
 0x2a4   : >> { %v1593_v0 = vmul.f32 %v5908_v63, %v6444_v57  ;;  %v1596_v1 = vmul.f32 %v5908_v63, %v6447_v58  ;;  %v1591_v9 = vmul.f32 %v5907_v31, %v6455_v6  ;;  %v1594_v36 = vmul.f32 %v5907_v31, %v6457_v7 }
 0x2a5   : >> { %v1587_v41 = vsel %vm627_vm1, %v5907_v31, %v5908_v63  ;;  %v2028_v63 = vunpack.c.h.b16 %v2025_v55  ;;  %v5762_v55 = vld [vmem:[%s6495_s21 + $0x10] sm:$0xff] }
 0x2a6   : >> { %v1599_v2 = vpack.c.bf16 %v1596_v1, %v1593_v0  ;;  %v1597_v27 = vpack.c.bf16 %v1594_v36, %v1591_v9  ;;  %v1592_v44 = vmul.f32 %v1587_v41, %v6459_v10  ;;  %v1595_v45 = vmul.f32 %v1587_v41, %v6461_v11  ;;  %v2199_v0 = vld [vmem:[%s8625_s2] sm:$0x88] }
 0x2a7   : >> { %v2029_v1 = vpack.c.b16 %v2027_v61, %v2027_v61  ;;  %v2201_v3 = vunpack.c.l.b16 %v2199_v0  ;;  %v5454_v61 = vld [vmem:[#allocation2 + $0x4] sm:$0xf] }
 0x2a8   : >> { %1639 = vrot.lane.b32.xlu2 %v1599_v2, %s6112_s12  ;;  %v1598_v47 = vpack.c.bf16 %v1595_v45, %v1592_v44  ;;  %v2030_v2 = vpack.c.b16 %v2028_v63, %v2028_v63  ;;  %v5760_v45 = vld [vmem:[%s6495_s21] sm:$0xff]  ;;  %v5776_v63 = vld [vmem:[#allocation2 + $0x8] sm:$0xf] }
 0x2b3   : >> { %v5896_v8 = vpop.permute.xlu0 %5895 }
 0x2b4   : >> { %v5898_v12 = vunpack.i.h.bf16 %v5896_v8  ;;  %v5897_v13 = vunpack.i.l.bf16 %v5896_v8  ;;  %v2202_v8 = vunpack.c.h.b16 %v2199_v0 }
 0x2b6   : >> { %v1338_v16 = vmul.f32 %v5897_v13, %v6455_v6  ;;  %v1341_v17 = vmul.f32 %v5897_v13, %v6457_v7  ;;  %v1334_v21 = vsel %vm481_vm2, %v5897_v13, %v5898_v12  ;;  %v1340_v29 = vmul.f32 %v5898_v12, %v6444_v57 }
 0x2b7   : >> { %v1339_v22 = vmul.f32 %v1334_v21, %v6459_v10  ;;  %v1342_v23 = vmul.f32 %v1334_v21, %v6461_v11  ;;  %v1343_v30 = vmul.f32 %v5898_v12, %v6447_v58  ;;  %v2037_v21 = vshrl.u32 %v2030_v2, 16 }
 0x2b8   : >> { %v1344_v24 = vpack.c.bf16 %v1341_v17, %v1338_v16  ;;  %v2032_v16 = vshrl.u32 %v2029_v1, 16  ;;  %v5456_v1 = vld [vmem:[#allocation2 + $0x14] sm:$0xf0] }
 0x2b9   : >> { %v1345_v25 = vpack.c.bf16 %v1342_v23, %v1339_v22  ;;  %v1346_v35 = vpack.c.bf16 %v1343_v30, %v1340_v29  ;;  %v6509_v22 = vpack.c.b16 %v2201_v3, %v2201_v3  ;;  %v6511_v23 = vpack.c.b16 %v2202_v8, %v2202_v8 }
 0x2ba   : >> { %1382 = vrot.lane.b32.xlu0 %v1344_v24, %s6113_s13  ;;  %v5765_v24 = vld [vmem:[%s6495_s21 + $0x28] sm:$0xff]  ;;  %v2038_v26 = vpack.i.b16 %v2037_v21, %v2037_v21  ;;  %v5459_v2 = vor.u32 %v5776_v63, %v5456_v1  ;;  %v5772_v21 = vld [vmem:[%s6495_s21 + $0x60] sm:$0xff] }
 0x2bb   : >> { %1384 = vrot.lane.b32.xlu1 %v1345_v25, %s6113_s13  ;;  %v2033_v25 = vpack.i.b16 %v2032_v16, %v2032_v16  ;;  %v2206_v14 = vpack.i.b16 %v6509_v22, %v6509_v22  ;;  %v2210_v29 = vpack.i.b16 %v6511_v23, %v6511_v23 }
 0x2bc   : >> { %v2040_v36 = vperm.slane %v2038_v26, 2 }
 0x2bd   : >> { %v2035_v34 = vperm.slane %v2033_v25, 2  ;;  %v2208_v15 = vperm.slane %v2206_v14, 3  ;;  %v2525_v14 = vld [vmem:[%s8625_s2 + $0x8] sm:$0x11] }
 0x2c2   : >> { %1485 = vrot.lane.b32.xlu0 %v1303_v19, %s6111_s28 }
 0x2c3   : >> { %1386 = vrot.lane.b32.xlu1 %v1346_v35, %s6113_s13 }
 0x2ca   : >> { %1635 = vrot.lane.b32.xlu0 %v1597_v27, %s6112_s12  ;;  %v2212_v27 = vperm.slane %v2210_v29, 3  ;;  %v5779_v29 = vld [vmem:[%s6495_s21 + $0x88] sm:$0xff] }
 0x2cb   : >> { %1487 = vrot.lane.b32.xlu1 %v1304_v40, %s6111_s28 }
 0x2d2   : >> { %5910 = vrot.lane.b32.xlu0 %v5909_v46, %s6114_s23  ;;  %v5766_v46 = vld [vmem:[%s6495_s21 + $0x30] sm:$0xff] }
 0x2d3   : >> { %1637 = vrot.lane.b32.xlu1 %v1598_v47, %s6112_s12  ;;  %v5767_v47 = vld [vmem:[%s6495_s21 + $0x38] sm:$0xff] }
 0x2fa   : >> { %v1490_v5 = vpop.permute.xlu2 %1489 }
 0x302   : >> { %v1640_v19 = vpop.permute.xlu2 %1639 }
 0x32c   : >> { %v1383_v48 = vpop.permute.xlu0 %1382 }
 0x32d   : >> { %v1385_v49 = vpop.permute.xlu1 %1384 }
 0x32e   : >> { %v1388_v50 = vsel %vm509_vm8, %v1383_v48, %v1385_v49  ;;  %v5768_v48 = vld [vmem:[%s6495_s21 + $0x40] sm:$0xff] }
 0x32f   : >> { %1411 = vmatpush.bf16.msra.mxu0 %v1388_v50  ;;  %v5769_v50 = vld [vmem:[%s6495_s21 + $0x48] sm:$0xff] }
 0x332   : >> { %5329 = vmatmul.msk.bf16.vlgmr.msra.gmra.mxu0 %vm509_vm8, %v5764_v56 }
 0x334   : >> { %v1486_v59 = vpop.permute.xlu0 %1485 }
 0x335   : >> { %v1387_v60 = vpop.permute.xlu1 %1386 }
 0x336   : >> { %v1389_v62 = vsel %vm509_vm8, %v1385_v49, %v1387_v60  ;;  %v5761_v49 = vld [vmem:[%s6495_s21 + $0x8] sm:$0xff]  ;;  %v5771_v60 = vld [vmem:[%s6495_s21 + $0x58] sm:$0xff] }
 0x337   : >> { %1440 = vmatpush.bf16.msra.mxu1 %v1389_v62  ;;  %v5777_v62 = vld [vmem:[#allocation2 + $0x10] sm:$0xf0] }
 0x338   : >> { %v5455_v0 = vor.u32 %v5777_v62, %v5454_v61 }
 0x33a   : >> { %5333 = vmatmul.msk.bf16.vlgmr.msra.gmra.mxu1 %vm509_vm8, %v5764_v56  ;;  %v5770_v56 = vld [vmem:[%s6495_s21 + $0x50] sm:$0xff] }
 0x33c   : >> { %v1636_v12 = vpop.permute.xlu0 %1635 }
 0x33d   : >> { %v1488_v13 = vpop.permute.xlu1 %1487 }
 0x33e   : >> { %v1491_v17 = vsel %vm565_vm6, %v1486_v59, %v1488_v13  ;;  %v1492_v18 = vsel %vm565_vm6, %v1488_v13, %v1490_v5  ;;  %v5763_v59 = vld [vmem:[%s6495_s21 + $0x18] sm:$0xff]  ;;  %v5778_v5 = vld [vmem:[%s6495_s21 + $0x80] sm:$0xff] }
 0x33f   : >> { %1514 = vmatpush.bf16.msra.mxu2 %v1491_v17  ;;  %1543 = vmatpush.bf16.msra.mxu3 %v1492_v18 }
 0x342   : >> { %5330 = vmatmul.msk.bf16.gmra.mxu0 %vm509_vm8, %v5765_v24  ;;  %5353 = vmatmul.msk.bf16.vlgmr.msra.gmra.mxu2 %vm509_vm8, %v5760_v45 }
 0x343   : >> { %5357 = vmatmul.msk.bf16.vlgmr.msra.gmra.mxu3 %vm509_vm8, %v5760_v45 }
 0x344   : >> { %v5911_v30 = vpop.permute.xlu0 %5910 }
 0x345   : >> { %v5913_v31 = vunpack.i.h.bf16 %v5911_v30  ;;  %v5912_v32 = vunpack.i.l.bf16 %v5911_v30  ;;  %v1638_v33 = vpop.permute.xlu1 %1637 }
 0x346   : >> { %v1641_v35 = vsel %vm655_vm5, %v1636_v12, %v1638_v33  ;;  %v1642_v9 = vsel %vm655_vm5, %v1638_v33, %v1640_v19  ;;  %v6587_v33 = vunpack.c.l.bf16 %v6433_v51 }
 0x347   : >> { %v1747_v37 = vsel %vm715_vm3, %v5912_v32, %v5913_v31  ;;  %1664 = vmatpush.bf16.msrb.mxu0 %v1641_v35  ;;  %1693 = vmatpush.bf16.msrb.mxu1 %v1642_v9  ;;  %v1753_v38 = vmul.f32 %v5913_v31, %v6444_v57  ;;  %v1756_v20 = vmul.f32 %v5913_v31, %v6447_v58  ;;  %v2047_v57 = vunpack.c.l.bf16 %v2035_v34 }
 0x348   : >> { %v1751_v28 = vmul.f32 %v5912_v32, %v6455_v6  ;;  %v1754_v39 = vmul.f32 %v5912_v32, %v6457_v7  ;;  %v1752_v40 = vmul.f32 %v1747_v37, %v6459_v10  ;;  %v1755_v41 = vmul.f32 %v1747_v37, %v6461_v11 }
 0x349   : >> { %v1759_v42 = vpack.c.bf16 %v1756_v20, %v1753_v38  ;;  %v2048_v58 = vunpack.c.l.bf16 %v2040_v36  ;;  %v2213_v6 = vunpack.c.l.bf16 %v2208_v15  ;;  %v2214_v7 = vunpack.c.l.bf16 %v2212_v27 }
 0x34a   : >> { %v1757_v43 = vpack.c.bf16 %v1754_v39, %v1751_v28  ;;  %v1758_v44 = vpack.c.bf16 %v1755_v41, %v1752_v40  ;;  %5334 = vmatmul.msk.bf16.gmra.mxu1 %vm509_vm8, %v5765_v24  ;;  %v2527_v32 = vunpack.c.l.b16 %v2525_v14  ;;  %v6590_v34 = vunpack.c.l.bf16 %v6435_v52 }
 0x34b   : >> { %1799 = vrot.lane.b32.xlu0 %v1759_v42, %s6115_s15  ;;  %v5914_v10 = vpack.i.bf16 %v2048_v58, %v2047_v57  ;;  %v5919_v11 = vpack.i.bf16 %v2214_v7, %v2213_v6  ;;  %1954 = vmatpush.bf16.msra.mxu0 %v5455_v0  ;;  %v6593_v35 = vunpack.c.h.bf16 %v6439_v53  ;;  %v6597_v36 = vunpack.c.h.bf16 %v6441_v54  ;;  %v5780_v0 = vld [vmem:[%s6495_s21 + $0x90] sm:$0xff] }
 0x34c   : >> { %1795 = vrot.lane.b32.xlu1 %v1757_v43, %s6115_s15  ;;  %1797 = vrot.lane.b32.xlu2 %v1758_v44, %s6115_s15  ;;  %v6600_v15 = vunpack.c.h.bf16 %v6433_v51  ;;  %v6603_v37 = vunpack.c.h.bf16 %v6435_v52  ;;  %v2528_v38 = vunpack.c.h.b16 %v2525_v14  ;;  %v2365_v39 = vshrl.u32 %v6509_v22, 16 }
 0x34d   : >> { %1983 = vmatpush.bf16.msra.mxu1 %v5459_v2  ;;  %v2369_v40 = vshrl.u32 %v6511_v23, 16  ;;  %v2529_v41 = vpack.c.b16 %v2527_v32, %v2527_v32 }
 0x34e   : >> { %v2530_v57 = vpack.c.b16 %v2528_v38, %v2528_v38 }
 0x352   : >> { %5331 = vmatmul.msk.bf16.gmra.mxu0 %vm509_vm8, %v5766_v46  ;;  %5354 = vmatmul.msk.bf16.gmra.mxu2 %vm509_vm8, %v5761_v49 }
 0x353   : >> { %5358 = vmatmul.msk.bf16.gmra.mxu3 %vm509_vm8, %v5761_v49  ;;  %v2370_v49 = vpack.i.b16 %v2369_v40, %v2369_v40 }
 0x354   : >> { %5915 = vrot.lane.b32.xlu1 %v5914_v10, %s6115_s15  ;;  %5920 = vrot.lane.b32.xlu2 %v5919_v11, %s6112_s12 }
 0x355   : >> { %v2372_v63 = vperm.slane %v2370_v49, 3 }
 0x35a   : >> { %5335 = vmatmul.msk.bf16.gmra.mxu1 %vm509_vm8, %v5766_v46 }
 0x362   : >> { %5332 = vmatmul.msk.bf16.gmra.mxu0 %vm509_vm8, %v5767_v47  ;;  %5355 = vmatmul.msk.bf16.gmra.mxu2 %vm509_vm8, %v5762_v55 }
 0x363   : >> { %5359 = vmatmul.msk.bf16.gmra.mxu3 %vm509_vm8, %v5762_v55  ;;  %v2532_v55 = vpack.i.b16 %v2529_v41, %v2529_v41 }
 0x36a   : >> { %5336 = vmatmul.msk.bf16.gmra.mxu1 %vm509_vm8, %v5767_v47 }
 0x372   : >> { %5386 = vmatmul.msk.bf16.vlgmr.msrb.gmra.mxu0 %vm509_vm8, %v5768_v48  ;;  %5356 = vmatmul.msk.bf16.gmra.mxu2 %vm509_vm8, %v5763_v59 }
 0x373   : >> { %5360 = vmatmul.msk.bf16.gmra.mxu3 %vm509_vm8, %v5763_v59  ;;  %v5773_v59 = vld [vmem:[%s6495_s21 + $0x68] sm:$0xff] }
 0x37a   : >> { %5390 = vmatmul.msk.bf16.vlgmr.msrb.gmra.mxu1 %vm509_vm8, %v5768_v48  ;;  %v2366_v48 = vpack.i.b16 %v2365_v39, %v2365_v39 }
 0x37c   : >> { %v2368_v62 = vperm.slane %v2366_v48, 3 }
 0x382   : >> { %5387 = vmatmul.msk.bf16.gmra.mxu0 %vm509_vm8, %v5769_v50 }
 0x38a   : >> { %5391 = vmatmul.msk.bf16.gmra.mxu1 %vm509_vm8, %v5769_v50 }
 0x392   : >> { %5388 = vmatmul.msk.bf16.gmra.mxu0 %vm509_vm8, %v5770_v56 }
 0x39a   : >> { %5392 = vmatmul.msk.bf16.gmra.mxu1 %vm509_vm8, %v5770_v56  ;;  %v2536_v56 = vpack.i.b16 %v2530_v57, %v2530_v57 }
 0x3a2   : >> { %5389 = vmatmul.msk.bf16.gmra.mxu0 %vm509_vm8, %v5771_v60 }
 0x3a6   : >> { %v1798_v12 = vpop.permute.xlu2 %1797 }
 0x3aa   : >> { %5393 = vmatmul.msk.bf16.gmra.mxu1 %vm509_vm8, %v5771_v60 }
 0x3ae   : >> { %v5921_v26 = vpop.permute.xlu2 %5920 }
 0x3af   : >> { %v6564_v3 = vpop.f32.mrf.mxu0  ;;  %v5923_v19 = vunpack.i.h.bf16 %v5921_v26  ;;  %v5922_v31 = vunpack.i.l.bf16 %v5921_v26 }
 0x3b1   : >> { %v2221_v53 = vsel %vm655_vm5, %v5922_v31, %v5923_v19  ;;  %v2227_v58 = vmul.f32 %v5923_v19, %v6593_v35  ;;  %v2230_v10 = vmul.f32 %v5923_v19, %v6597_v36  ;;  %v2225_v11 = vmul.f32 %v5922_v31, %v6587_v33 }
 0x3b2   : >> { %5460 = vmatmul.msk.bf16.vlgmr.msra.gmra.mxu0 %vm509_vm8, %v5778_v5  ;;  %v2228_v46 = vmul.f32 %v5922_v31, %v6590_v34  ;;  %v2226_v47 = vmul.f32 %v2221_v53, %v6600_v15  ;;  %v2229_v50 = vmul.f32 %v2221_v53, %v6603_v37  ;;  %v5774_v31 = vld [vmem:[%s6495_s21 + $0x70] sm:$0xff]  ;;  %v5775_v53 = vld [vmem:[%s6495_s21 + $0x78] sm:$0xff] }
 0x3b3   : >> { %v2233_v1 = vpack.c.bf16 %v2230_v10, %v2227_v58 }
 0x3b4   : >> { %v2231_v61 = vpack.c.bf16 %v2228_v46, %v2225_v11  ;;  %v2232_v2 = vpack.c.bf16 %v2229_v50, %v2226_v47 }
 0x3b7   : >> { %v6568_v8 = vpop.f32.mrf.mxu1  ;;  %v6571_v13 = vpop.f32.mrf.mxu0 }
 0x3ba   : >> { %5464 = vmatmul.msk.bf16.vlgmr.msra.gmra.mxu1 %vm509_vm8, %v5778_v5  ;;  %v2534_v5 = vperm.slane %v2532_v55, 0 }
 0x3bd   : >> { %v1800_v16 = vpop.permute.xlu0 %1799 }
 0x3be   : >> { %v1796_v17 = vpop.permute.xlu1 %1795  ;;  %v1802_v18 = vsel %vm743_vm4, %v1798_v12, %v1800_v16 }
 0x3bf   : >> { %v1801_v24 = vsel %vm743_vm4, %v1796_v17, %v1798_v12  ;;  %1853 = vmatpush.bf16.msrb.mxu3 %v1802_v18  ;;  %v6576_v25 = vpop.f32.mrf.mxu1  ;;  %v6583_v30 = vpop.f32.mrf.mxu0  ;;  %v2538_v12 = vperm.slane %v2536_v56, 0  ;;  %v2373_v17 = vunpack.c.l.bf16 %v2368_v62  ;;  %v2374_v18 = vunpack.c.l.bf16 %v2372_v63 }
 0x3c0   : >> { %1824 = vmatpush.bf16.msrb.mxu2 %v1801_v24 }
 0x3c1   : >> { %v2540_v24 = vunpack.c.l.bf16 %v2538_v12  ;;  %v5924_v14 = vpack.i.bf16 %v2374_v18, %v2373_v17 }
 0x3c2   : >> { %5423 = vmatmul.msk.bf16.vlgmr.msrb.gmra.mxu3 %vm509_vm8, %v5772_v21  ;;  %5461 = vmatmul.msk.bf16.gmra.mxu0 %vm509_vm8, %v5779_v29 }
 0x3c3   : >> { %5419 = vmatmul.msk.bf16.vlgmr.msrb.gmra.mxu2 %vm509_vm8, %v5772_v21  ;;  %v2539_v21 = vunpack.c.l.bf16 %v2534_v5 }
 0x3c6   : >> { %v5916_v9 = vpop.permute.xlu1 %5915  ;;  %v1545_v41 = vpop.f32.mrf.mxu3 }
 0x3c7   : >> { %v5918_v20 = vunpack.i.h.bf16 %v5916_v9  ;;  %v5917_v27 = vunpack.i.l.bf16 %v5916_v9  ;;  %v6605_v28 = vpop.f32.mrf.mxu1  ;;  %v6618_v22 = vpop.f32.mrf.mxu0  ;;  %v5781_v9 = vld [vmem:[%s6495_s21 + $0x98] sm:$0xff]  ;;  %v1546_v58 = vadd.f32 %v1545_v41, %v6568_v8 }
 0x3c9   : >> { %v2055_v54 = vsel %vm743_vm4, %v5917_v27, %v5918_v20  ;;  %v2059_v51 = vmul.f32 %v5917_v27, %v6587_v33  ;;  %v2062_v42 = vmul.f32 %v5917_v27, %v6590_v34  ;;  %v2061_v52 = vmul.f32 %v5918_v20, %v6593_v35 }
 0x3ca   : >> { %v2064_v43 = vmul.f32 %v5918_v20, %v6597_v36  ;;  %v2060_v44 = vmul.f32 %v2055_v54, %v6600_v15  ;;  %v2063_v45 = vmul.f32 %v2055_v54, %v6603_v37  ;;  %5465 = vmatmul.msk.bf16.gmra.mxu1 %vm509_vm8, %v5779_v29  ;;  %v5929_v29 = vpack.i.bf16 %v2540_v24, %v2539_v21  ;;  %v1516_v54 = vpop.f32.mrf.mxu2 }
 0x3cb   : >> { %v2065_v23 = vpack.c.bf16 %v2062_v42, %v2059_v51 }
 0x3cc   : >> { %v2067_v6 = vpack.c.bf16 %v2064_v43, %v2061_v52  ;;  %v2066_v7 = vpack.c.bf16 %v2063_v45, %v2060_v44 }
 0x3cd   : >> { %2103 = vrot.lane.b32.xlu0 %v2065_v23, %s6114_s23  ;;  %v1517_v23 = vadd.f32 %v1516_v54, %v6564_v3 }
 0x3ce   : >> { %2107 = vrot.lane.b32.xlu2 %v2067_v6, %s6114_s23  ;;  %2105 = vrot.lane.b32.xlu1 %v2066_v7, %s6114_s23  ;;  %v6661_v52 = vpop.f32.mrf.mxu3 }
 0x3cf   : >> { %v6630_v60 = vpop.f32.mrf.mxu1  ;;  %v1423_v16 = vpop.f32.mrf.mxu0 }
 0x3d2   : >> { %5424 = vmatmul.msk.bf16.gmra.mxu3 %vm509_vm8, %v5773_v59  ;;  %5462 = vmatmul.msk.bf16.gmra.mxu0 %vm509_vm8, %v5780_v0  ;;  %v6665_v44 = vpop.f32.mrf.mxu2 }
 0x3d3   : >> { %5420 = vmatmul.msk.bf16.gmra.mxu2 %vm509_vm8, %v5773_v59 }
 0x3d5   : >> { %2269 = vrot.lane.b32.xlu0 %v2231_v61, %s6110_s26 }
 0x3d6   : >> { %2273 = vrot.lane.b32.xlu2 %v2233_v1, %s6110_s26  ;;  %2271 = vrot.lane.b32.xlu1 %v2232_v2, %s6110_s26  ;;  %v1550_v6 = vpop.f32.mrf.mxu3 }
 0x3d7   : >> { %v1452_v26 = vpop.f32.mrf.mxu1  ;;  %v6640_v19 = vpop.f32.mrf.mxu0  ;;  %v1551_v49 = vadd.f32 %v1550_v6, %v6605_v28  ;;  %v5782_v6 = vld [vmem:[%s6495_s21 + $0xa0] sm:$0xff] }
 0x3d8   : >> { %8707 = vst [vmem:[#allocation4_spill] sm:$0xff] %v6640_v19 }
 0x3da   : >> { %5466 = vmatmul.msk.bf16.gmra.mxu1 %vm509_vm8, %v5780_v0  ;;  %v1521_v11 = vpop.f32.mrf.mxu2 }
 0x3db   : >> { %v1522_v48 = vadd.f32 %v1521_v11, %v6583_v30 }
 0x3dd   : >> { %5925 = vrot.lane.b32.xlu0 %v5924_v14, %s6113_s13 }
 0x3de   : >> { %5930 = vrot.lane.b32.xlu1 %v5929_v29, %s6111_s28  ;;  %v6679_v56 = vpop.f32.mrf.mxu3 }
 0x3df   : >> { %v6645_v32 = vpop.f32.mrf.mxu1  ;;  %v1428_v38 = vpop.f32.mrf.mxu0 }
 0x3e0   : >> { %8708 = vst [vmem:[#allocation5_spill] sm:$0xff] %v6645_v32 }
 0x3e2   : >> { %5425 = vmatmul.msk.bf16.gmra.mxu3 %vm509_vm8, %v5774_v31  ;;  %5463 = vmatmul.msk.bf16.gmra.mxu0 %vm509_vm8, %v5781_v9  ;;  %v6681_v3 = vpop.f32.mrf.mxu2 }
 0x3e3   : >> { %5421 = vmatmul.msk.bf16.gmra.mxu2 %vm509_vm8, %v5774_v31 }
 0x3e6   : >> { %v1555_v61 = vpop.f32.mrf.mxu3 }
 0x3e7   : >> { %v1457_v20 = vpop.f32.mrf.mxu1  ;;  %v6652_v27 = vpop.f32.mrf.mxu0  ;;  %v1556_v30 = vadd.f32 %v1555_v61, %v1452_v26 }
 0x3ea   : >> { %5467 = vmatmul.msk.bf16.gmra.mxu1 %vm509_vm8, %v5781_v9  ;;  %v1526_v62 = vpop.f32.mrf.mxu2 }
 0x3eb   : >> { %v1527_v1 = vadd.f32 %v1526_v62, %v1423_v16 }
 0x3ee   : >> { %v6687_v2 = vpop.f32.mrf.mxu3 }
 0x3ef   : >> { %v6655_v39 = vpop.f32.mrf.mxu1  ;;  %v1666_v40 = vpop.f32.mrf.mxu0  ;;  %8711 = vst [vmem:[#allocation8_spill] sm:$0xff] %v6687_v2 }
 0x3f0   : >> { %v1715_v7 = vadd.f32 %v1666_v40, %v1517_v23 }
 0x3f2   : >> { %5426 = vmatmul.msk.bf16.gmra.mxu3 %vm509_vm8, %v5775_v53  ;;  %v6689_v5 = vpop.f32.mrf.mxu2 }
 0x3f3   : >> { %5422 = vmatmul.msk.bf16.gmra.mxu2 %vm509_vm8, %v5775_v53  ;;  %8712 = vst [vmem:[#allocation9_spill] sm:$0xff] %v6689_v5 }
 0x3f6   : >> { %v1560_v21 = vpop.f32.mrf.mxu3 }
 0x3f7   : >> { %v1695_v51 = vpop.f32.mrf.mxu1  ;;  %v6659_v42 = vpop.f32.mrf.mxu0  ;;  %v1561_v16 = vadd.f32 %v1560_v21, %v1457_v20 }
 0x3f8   : >> { %v1716_v10 = vadd.f32 %v1695_v51, %v1546_v58 }
 0x3fa   : >> { %v1531_v14 = vpop.f32.mrf.mxu2 }
 0x3fb   : >> { %v1532_v31 = vadd.f32 %v1531_v14, %v1428_v38 }
 0x3fe   : >> { %v6703_v53 = vpop.f32.mrf.mxu3 }
 0x3ff   : >> { %v6663_v43 = vpop.f32.mrf.mxu1  ;;  %v1671_v45 = vpop.f32.mrf.mxu0 }
 0x400   : >> { %v6675_v50 = vadd.f32 %v1671_v45, %v1522_v48 }
 0x402   : >> { %v6705_v41 = vpop.f32.mrf.mxu2 }
 0x407   : >> { %v1700_v57 = vpop.f32.mrf.mxu1  ;;  %v6669_v46 = vpop.f32.mrf.mxu0 }
 0x408   : >> { %v6677_v55 = vadd.f32 %v1700_v57, %v1551_v49 }
 0x40f   : >> { %v6671_v47 = vpop.f32.mrf.mxu1  ;;  %v1676_v8 = vpop.f32.mrf.mxu0 }
 0x410   : >> { %v6691_v17 = vadd.f32 %v1676_v8, %v1527_v1 }
 0x417   : >> { %v1705_v59 = vpop.f32.mrf.mxu1  ;;  %v6683_v63 = vpop.f32.mrf.mxu0 }
 0x418   : >> { %8709 = vst [vmem:[#allocation6_spill] sm:$0xff] %v6683_v63  ;;  %v6693_v18 = vadd.f32 %v1705_v59, %v1556_v30 }
 0x41f   : >> { %v6685_v0 = vpop.f32.mrf.mxu1  ;;  %v1681_v12 = vpop.f32.mrf.mxu0 }
 0x420   : >> { %8710 = vst [vmem:[#allocation7_spill] sm:$0xff] %v6685_v0  ;;  %v6699_v26 = vadd.f32 %v1681_v12, %v1532_v31  ;;  %v5786_v12 = vld [vmem:[%s6495_s21 + $0xc0] sm:$0xff] }
 0x427   : >> { %v1710_v28 = vpop.f32.mrf.mxu1  ;;  %v6697_v29 = vpop.f32.mrf.mxu0 }
 0x428   : >> { %v6701_v9 = vadd.f32 %v1710_v28, %v1561_v16  ;;  %v2108_v51 = vpop.permute.xlu2 %2107 }
 0x42f   : >> { %v6695_v24 = vpop.f32.mrf.mxu1  ;;  %v1956_v54 = vpop.f32.mrf.mxu0 }
 0x430   : >> { %v2274_v61 = vpop.permute.xlu2 %2273 }
 0x437   : >> { %v1985_v40 = vpop.f32.mrf.mxu1  ;;  %v6714_v49 = vpop.f32.mrf.mxu0 }
 0x43f   : >> { %v2104_v45 = vpop.permute.xlu0 %2103  ;;  %v6712_v20 = vpop.f32.mrf.mxu1 }
 0x440   : >> { %v2106_v57 = vpop.permute.xlu1 %2105 }
 0x441   : >> { %v2109_v23 = vsel %vm715_vm3, %v2104_v45, %v2106_v57  ;;  %v2110_v58 = vsel %vm715_vm3, %v2106_v57, %v2108_v51  ;;  %v1961_v45 = vpop.f32.mrf.mxu0  ;;  %v5783_v57 = vld [vmem:[%s6495_s21 + $0xa8] sm:$0xff] }
 0x442   : >> { %2132 = vmatpush.bf16.msra.mxu2 %v2109_v23  ;;  %2161 = vmatpush.bf16.msra.mxu3 %v2110_v58 }
 0x445   : >> { %5493 = vmatmul.msk.bf16.vlgmr.msra.gmra.mxu2 %vm509_vm8, %v5782_v6  ;;  %5497 = vmatmul.msk.bf16.vlgmr.msra.gmra.mxu3 %vm509_vm8, %v5782_v6  ;;  %v1855_v38 = vpop.f32.mrf.mxu3 }
 0x446   : >> { %v1826_v11 = vpop.f32.mrf.mxu2  ;;  %v1876_v48 = vadd.f32 %v1855_v38, %v1716_v10 }
 0x447   : >> { %v2270_v8 = vpop.permute.xlu0 %2269  ;;  %v1875_v59 = vadd.f32 %v1826_v11, %v1715_v7  ;;  %v1990_v31 = vpop.f32.mrf.mxu1 }
 0x448   : >> { %v2272_v62 = vpop.permute.xlu1 %2271  ;;  %v6716_v1 = vadd.f32 %v1985_v40, %v1876_v48 }
 0x449   : >> { %v2275_v30 = vsel %vm627_vm1, %v2270_v8, %v2272_v62  ;;  %v2276_v28 = vsel %vm627_vm1, %v2272_v62, %v2274_v61  ;;  %v6721_v21 = vadd.f32 %v1956_v54, %v1875_v59 }
 0x44a   : >> { %2298 = vmatpush.bf16.msrb.mxu0 %v2275_v30  ;;  %2327 = vmatpush.bf16.msrb.mxu1 %v2276_v28 }
 0x44d   : >> { %5526 = vmatmul.msk.bf16.vlgmr.msrb.gmra.mxu0 %vm509_vm8, %v5786_v12  ;;  %5530 = vmatmul.msk.bf16.vlgmr.msrb.gmra.mxu1 %vm509_vm8, %v5786_v12  ;;  %v6725_v10 = vpop.f32.mrf.mxu3 }
 0x44e   : >> { %v6727_v7 = vpop.f32.mrf.mxu2 }
 0x44f   : >> { %v5926_v14 = vpop.permute.xlu0 %5925 }
 0x450   : >> { %v5928_v16 = vunpack.i.h.bf16 %v5926_v14  ;;  %v5927_v40 = vunpack.i.l.bf16 %v5926_v14  ;;  %v5931_v51 = vpop.permute.xlu1 %5930 }
 0x451   : >> { %v5933_v23 = vunpack.i.h.bf16 %v5931_v51  ;;  %v5932_v54 = vunpack.i.l.bf16 %v5931_v51 }
 0x452   : >> { %v2381_v58 = vsel %vm509_vm8, %v5927_v40, %v5928_v16  ;;  %v2385_v6 = vmul.f32 %v5927_v40, %v6587_v33  ;;  %v2388_v38 = vmul.f32 %v5927_v40, %v6590_v34  ;;  %v2387_v11 = vmul.f32 %v5928_v16, %v6593_v35 }
 0x453   : >> { %v2390_v48 = vmul.f32 %v5928_v16, %v6597_v36  ;;  %v2386_v8 = vmul.f32 %v2381_v58, %v6600_v15  ;;  %v2389_v59 = vmul.f32 %v2381_v58, %v6603_v37  ;;  %v2547_v62 = vsel %vm565_vm6, %v5932_v54, %v5933_v23 }
 0x454   : >> { %v2391_v61 = vpack.c.bf16 %v2388_v38, %v2385_v6  ;;  %v2553_v12 = vmul.f32 %v5933_v23, %v6593_v35  ;;  %v2556_v16 = vmul.f32 %v5933_v23, %v6597_v36  ;;  %v2551_v40 = vmul.f32 %v5932_v54, %v6587_v33  ;;  %v5787_v36 = vld [vmem:[%s6495_s21 + $0xc8] sm:$0xff] }
 0x455   : >> { %5494 = vmatmul.msk.bf16.gmra.mxu2 %vm509_vm8, %v5783_v57  ;;  %5498 = vmatmul.msk.bf16.gmra.mxu3 %vm509_vm8, %v5783_v57  ;;  %v2393_v30 = vpack.c.bf16 %v2390_v48, %v2387_v11  ;;  %v2392_v28 = vpack.c.bf16 %v2389_v59, %v2386_v8  ;;  %v1860_v14 = vpop.f32.mrf.mxu3  ;;  %v2554_v51 = vmul.f32 %v5932_v54, %v6590_v34  ;;  %v6756_v34 = vpop.f32.mrf.mxu1 }
 0x456   : >> { %2429 = vrot.lane.b32.xlu2 %v2391_v61, %s6109_s25  ;;  %v1831_v58 = vpop.f32.mrf.mxu2  ;;  %v1880_v6 = vadd.f32 %v1860_v14, %v6677_v55  ;;  %v2552_v57 = vmul.f32 %v2547_v62, %v6600_v15  ;;  %v2555_v35 = vmul.f32 %v2547_v62, %v6603_v37  ;;  %8713 = vst [vmem:[#allocation10_spill] sm:$0xff] %v6756_v34  ;;  %v6758_v55 = vpop.f32.mrf.mxu0 }
 0x457   : >> { %2433 = vrot.lane.b32.xlu1 %v2393_v30, %s6109_s25  ;;  %2431 = vrot.lane.b32.xlu0 %v2392_v28, %s6109_s25  ;;  %v1879_v38 = vadd.f32 %v1831_v58, %v6675_v50  ;;  %v2557_v23 = vpack.c.bf16 %v2554_v51, %v2551_v40  ;;  %8714 = vst [vmem:[#allocation11_spill] sm:$0xff] %v6758_v55  ;;  %v5784_v50 = vld [vmem:[%s6495_s21 + $0xb0] sm:$0xff] }
 0x458   : >> { %v6751_v11 = vadd.f32 %v1990_v31, %v1880_v6  ;;  %v2559_v54 = vpack.c.bf16 %v2556_v16, %v2553_v12  ;;  %v2558_v48 = vpack.c.bf16 %v2555_v35, %v2552_v57  ;;  %v5788_v28 = vld [vmem:[%s6495_s21 + $0xd0] sm:$0xff] }
 0x459   : >> { %v6754_v33 = vadd.f32 %v1961_v45, %v1879_v38 }
 0x45d   : >> { %5527 = vmatmul.msk.bf16.gmra.mxu0 %vm509_vm8, %v5787_v36  ;;  %5531 = vmatmul.msk.bf16.gmra.mxu1 %vm509_vm8, %v5787_v36  ;;  %v6762_v15 = vpop.f32.mrf.mxu3  ;;  %v1995_v31 = vpop.f32.mrf.mxu1 }
 0x45e   : >> { %2595 = vrot.lane.b32.xlu2 %v2557_v23, %s6108_s24  ;;  %v6765_v37 = vpop.f32.mrf.mxu2  ;;  %v1966_v45 = vpop.f32.mrf.mxu0  ;;  %v5789_v23 = vld [vmem:[%s6495_s21 + $0xd8] sm:$0xff] }
 0x45f   : >> { %2599 = vrot.lane.b32.xlu1 %v2559_v54, %s6108_s24  ;;  %2597 = vrot.lane.b32.xlu0 %v2558_v48, %s6108_s24  ;;  %v1256_v48 = vld [vmem:[%s6805_s29 + $0x38] sm:$0xff] }
 0x465   : >> { %5495 = vmatmul.msk.bf16.gmra.mxu2 %vm509_vm8, %v5784_v50  ;;  %5499 = vmatmul.msk.bf16.gmra.mxu3 %vm509_vm8, %v5784_v50  ;;  %v1865_v8 = vpop.f32.mrf.mxu3  ;;  %v6783_v16 = vpop.f32.mrf.mxu1  ;;  %v2931_v50 = vld [vmem:[%s8625_s2] sm:$0x11] }
 0x466   : >> { %v1836_v59 = vpop.f32.mrf.mxu2  ;;  %v1884_v61 = vadd.f32 %v1865_v8, %v6693_v18  ;;  %8718 = vst [vmem:[#allocation15_spill] sm:$0xff] %v6783_v16  ;;  %v6787_v18 = vpop.f32.mrf.mxu0 }
 0x467   : >> { %v1883_v62 = vadd.f32 %v1836_v59, %v6691_v17  ;;  %8720 = vst [vmem:[#allocation17_spill] sm:$0xff] %v6787_v18  ;;  %v5785_v17 = vld [vmem:[%s6495_s21 + $0xb8] sm:$0xff] }
 0x468   : >> { %v6774_v30 = vadd.f32 %v1995_v31, %v1884_v61  ;;  %v2933_v31 = vunpack.c.l.b16 %v2931_v50 }
 0x469   : >> { %v6777_v12 = vadd.f32 %v1966_v45, %v1883_v62  ;;  %v2934_v45 = vunpack.c.h.b16 %v2931_v50 }
 0x46a   : >> { %8715 = vst [vmem:[#allocation12_spill] sm:$0xff] %v6774_v30  ;;  %v6812_v8 = vpack.c.b16 %v2933_v31, %v2933_v31 }
 0x46b   : >> { %8716 = vst [vmem:[#allocation13_spill] sm:$0xff] %v6777_v12  ;;  %v6814_v59 = vpack.c.b16 %v2934_v45, %v2934_v45 }
 0x46c   : >> { %v3022_v61 = vshrl.u32 %v6812_v8, 16 }
 0x46d   : >> { %5528 = vmatmul.msk.bf16.gmra.mxu0 %vm509_vm8, %v5788_v28  ;;  %5532 = vmatmul.msk.bf16.gmra.mxu1 %vm509_vm8, %v5788_v28  ;;  %v6781_v14 = vpop.f32.mrf.mxu3  ;;  %v2000_v35 = vpop.f32.mrf.mxu1  ;;  %v3026_v62 = vshrl.u32 %v6814_v59, 16 }
 0x46e   : >> { %8717 = vst [vmem:[#allocation14_spill] sm:$0xff] %v6781_v14  ;;  %v6785_v40 = vpop.f32.mrf.mxu2  ;;  %v1971_v38 = vpop.f32.mrf.mxu0  ;;  %v3023_v28 = vpack.i.b16 %v3022_v61, %v3022_v61 }
 0x46f   : >> { %8719 = vst [vmem:[#allocation16_spill] sm:$0xff] %v6785_v40 }
 0x475   : >> { %5496 = vmatmul.msk.bf16.gmra.mxu2 %vm509_vm8, %v5785_v17  ;;  %5500 = vmatmul.msk.bf16.gmra.mxu3 %vm509_vm8, %v5785_v17  ;;  %v1870_v51 = vpop.f32.mrf.mxu3  ;;  %v3027_v17 = vpack.i.b16 %v3026_v62, %v3026_v62 }
 0x476   : >> { %v1841_v58 = vpop.f32.mrf.mxu2  ;;  %v1888_v6 = vadd.f32 %v1870_v51, %v6701_v9  ;;  %v6116_v9 = vmov 0   ;;  %v1251_v51 = vld [vmem:[%s6805_s29 + $0x10] sm:$0xff] }
 0x477   : >> { %v1887_v57 = vadd.f32 %v1841_v58, %v6699_v26  ;;  %v1250_v26 = vld [vmem:[%s6805_s29 + $0x8] sm:$0xff]  ;;  %5935 = vset.pattern.permute.xlu0 %v6116_v9  ;;  %5936 = vset.pattern.permute.xlu1 %v6116_v9  ;;  %v3260_v58 = vld [vmem:[%s8625_s2] sm:$0x22] }
 0x478   : >> { %v6794_v36 = vadd.f32 %v2000_v35, %v1888_v6  ;;  %2698 = vperm.xlu0 %5935, %v1250_v26   ;;  %5934 = vset.pattern.permute.xlu2 %v6116_v9  ;;  %v3262_v6 = vunpack.c.l.b16 %v3260_v58  ;;  %v3025_v35 = vperm.slane %v3023_v28, 0  ;;  %v3681_v28 = vld [vmem:[%s8625_s2] sm:$0x44] }
 0x479   : >> { %v6797_v54 = vadd.f32 %v1971_v38, %v1887_v57  ;;  %2703 = vperm.xlu1 %5936, %v1251_v51   ;;  %v3263_v57 = vunpack.c.h.b16 %v3260_v58  ;;  %v3029_v38 = vperm.slane %v3027_v17, 0  ;;  %v1253_v51 = vld [vmem:[%s6805_s29 + $0x20] sm:$0xff]  ;;  %v6831_v17 = vpop.f32.mrf.mxu0  ;;  %v6833_v58 = vpop.f32.mrf.mxu1 }
 0x47a   : >> { %8721 = vst [vmem:[#allocation18_spill] sm:$0xff] %v6794_v36  ;;  %v3030_v9 = vunpack.c.l.bf16 %v3025_v35  ;;  %v3683_v35 = vunpack.c.l.b16 %v3681_v28 }
 0x47b   : >> { %8722 = vst [vmem:[#allocation19_spill] sm:$0xff] %v6797_v54  ;;  %v3265_v26 = vpack.c.b16 %v3263_v57, %v3263_v57 }
 0x47d   : >> { %5529 = vmatmul.msk.bf16.gmra.mxu0 %vm509_vm8, %v5789_v23  ;;  %5533 = vmatmul.msk.bf16.gmra.mxu1 %vm509_vm8, %v5789_v23  ;;  %v3264_v23 = vpack.c.b16 %v3262_v6, %v3262_v6  ;;  %v3271_v31 = vpack.i.b16 %v3265_v26, %v3265_v26  ;;  %v6824_v62 = vpop.f32.mrf.mxu3 }
 0x47e   : >> { %v6822_v61 = vpop.f32.mrf.mxu2 }
 0x47f   : >> { %v3267_v50 = vpack.i.b16 %v3264_v23, %v3264_v23  ;;  %v3273_v36 = vperm.slane %v3271_v31, 1 }
 0x480   : >> { %2728 = vperm.xlu0 %5935, %v1256_v48   ;;  %v3031_v48 = vunpack.c.l.bf16 %v3029_v38  ;;  %v3684_v38 = vunpack.c.h.b16 %v3681_v28 }
 0x481   : >> { %v3269_v4 = vperm.slane %v3267_v50, 1  ;;  %v3275_v57 = vunpack.c.l.bf16 %v3273_v36  ;;  %2713 = vperm.xlu1 %5936, %v1253_v51   ;;  %v1254_v36 = vld [vmem:[%s6805_s29 + $0x28] sm:$0xff] }
 0x482   : >> { %v5942_v45 = vpack.i.bf16 %v3031_v48, %v3030_v9  ;;  %v3685_v9 = vpack.c.b16 %v3683_v35, %v3683_v35  ;;  %v3686_v48 = vpack.c.b16 %v3684_v38, %v3684_v38 }
 0x483   : >> { %v3274_v6 = vunpack.c.l.bf16 %v3269_v4 }
 0x484   : >> { %v3693_v54 = vshrl.u32 %v3686_v48, 16 }
 0x485   : >> { %v5947_v31 = vpack.i.bf16 %v3275_v57, %v3274_v6  ;;  %v5790_v57 = vld [vmem:[%s6495_s21 + $0xe0] sm:$0xff] }
 0x486   : >> { %v3694_v30 = vpack.i.b16 %v3693_v54, %v3693_v54 }
 0x488   : >> { %5943 = vrot.lane.b32.xlu0 %v5942_v45, %s6109_s25  ;;  %v3688_v45 = vshrl.u32 %v3685_v9, 16  ;;  %v3696_v9 = vperm.slane %v3694_v30, 2 }
 0x489   : >> { %2718 = vperm.xlu1 %5936, %v1254_v36  }
 0x48a   : >> { %v3689_v40 = vpack.i.b16 %v3688_v45, %v3688_v45  ;;  %v3722_v48 = vunpack.c.l.bf16 %v3696_v9  ;;  %v3423_v45 = vshrl.u32 %v3265_v26, 16 }
 0x48c   : >> { %v3691_v38 = vperm.slane %v3689_v40, 2 }
 0x48e   : >> { %v3721_v54 = vunpack.c.l.bf16 %v3691_v38 }
 0x490   : >> { %5948 = vrot.lane.b32.xlu0 %v5947_v31, %s6110_s26 }
 0x4b0   : >> { %v2430_v50 = vpop.permute.xlu2 %2429 }
 0x4b8   : >> { %v2596_v31 = vpop.permute.xlu2 %2595 }
 0x4c8   : >> { %v6835_v18 = vpop.f32.mrf.mxu2  ;;  %v6837_v16 = vpop.f32.mrf.mxu3 }
 0x4c9   : >> { %v2434_v12 = vpop.permute.xlu1 %2433  ;;  %v2432_v4 = vpop.permute.xlu0 %2431 }
 0x4ca   : >> { %v2435_v51 = vsel %vm481_vm2, %v2430_v50, %v2432_v4  ;;  %v2436_v28 = vsel %vm481_vm2, %v2432_v4, %v2434_v12  ;;  %v6843_v35 = vpop.f32.mrf.mxu0  ;;  %v6845_v6 = vpop.f32.mrf.mxu1  ;;  %v5957_v50 = vpack.i.bf16 %v3722_v48, %v3721_v54  ;;  %v3419_v12 = vshrl.u32 %v3264_v23, 16  ;;  %v5794_v23 = vld [vmem:[%s6495_s21 + $0x100] sm:$0xff] }
 0x4cb   : >> { %2458 = vmatpush.bf16.msrb.mxu2 %v2435_v51  ;;  %2487 = vmatpush.bf16.msrb.mxu3 %v2436_v28  ;;  %v3424_v51 = vpack.i.b16 %v3423_v45, %v3423_v45  ;;  %v1249_v48 = vld [vmem:[%s6805_s29] sm:$0xff] }
 0x4cc   : >> { %5958 = vrot.lane.b32.xlu0 %v5957_v50, %s6115_s15  ;;  %v3420_v36 = vpack.i.b16 %v3419_v12, %v3419_v12  ;;  %v3866_v50 = vld [vmem:[%s8625_s2] sm:$0x88]  ;;  %2693 = vperm.xlu2 %5934, %v1249_v48  }
 0x4cd   : >> { %v3426_v54 = vperm.slane %v3424_v51, 1 }
 0x4ce   : >> { %5559 = vmatmul.msk.bf16.vlgmr.msrb.gmra.mxu2 %vm509_vm8, %v5790_v57  ;;  %5563 = vmatmul.msk.bf16.vlgmr.msrb.gmra.mxu3 %vm509_vm8, %v5790_v57  ;;  %v3422_v26 = vperm.slane %v3420_v36, 1 }
 0x4cf   : >> { %v3428_v45 = vunpack.c.l.bf16 %v3426_v54 }
 0x4d0   : >> { %v6850_v4 = vpop.f32.mrf.mxu2  ;;  %v6852_v14 = vpop.f32.mrf.mxu3  ;;  %v3427_v12 = vunpack.c.l.bf16 %v3422_v26 }
 0x4d1   : >> { %v2600_v30 = vpop.permute.xlu1 %2599  ;;  %v2598_v40 = vpop.permute.xlu0 %2597 }
 0x4d2   : >> { %v2601_v28 = vsel %vm452_vm0, %v2596_v31, %v2598_v40  ;;  %v2602_v57 = vsel %vm452_vm0, %v2598_v40, %v2600_v30  ;;  %v6857_v38 = vpop.f32.mrf.mxu0  ;;  %v6859_v9 = vpop.f32.mrf.mxu1  ;;  %v4178_v31 = vld [vmem:[%s8625_s2 + $0x8] sm:$0x11]  ;;  %v3868_v30 = vunpack.c.l.b16 %v3866_v50  ;;  %v3869_v40 = vunpack.c.h.b16 %v3866_v50 }
 0x4d3   : >> { %2624 = vmatpush.bf16.msra.mxu0 %v2601_v28  ;;  %2653 = vmatpush.bf16.msra.mxu1 %v2602_v57  ;;  %v4180_v36 = vunpack.c.l.b16 %v4178_v31  ;;  %v4181_v51 = vunpack.c.h.b16 %v4178_v31  ;;  %v5952_v28 = vpack.i.bf16 %v3428_v45, %v3427_v12 }
 0x4d4   : >> { %v3870_v57 = vpack.c.b16 %v3868_v30, %v3868_v30  ;;  %v3871_v63 = vpack.c.b16 %v3869_v40, %v3869_v40  ;;  %v1252_v40 = vld [vmem:[%s6805_s29 + $0x18] sm:$0xff] }
 0x4d5   : >> { %v4182_v34 = vpack.c.b16 %v4180_v36, %v4180_v36  ;;  %v4183_v26 = vpack.c.b16 %v4181_v51, %v4181_v51  ;;  %5953 = vrot.lane.b32.xlu1 %v5952_v28, %s6114_s23  ;;  %2708 = vperm.xlu2 %5934, %v1252_v40  }
 0x4d6   : >> { %5592 = vmatmul.msk.bf16.vlgmr.msra.gmra.mxu0 %vm509_vm8, %v5794_v23  ;;  %5596 = vmatmul.msk.bf16.vlgmr.msra.gmra.mxu1 %vm509_vm8, %v5794_v23  ;;  %v3873_v54 = vpack.i.b16 %v3870_v57, %v3870_v57  ;;  %v3877_v50 = vpack.i.b16 %v3871_v63, %v3871_v63  ;;  %v5791_v23 = vld [vmem:[%s6495_s21 + $0xe8] sm:$0xff] }
 0x4d7   : >> { %v4185_v31 = vpack.i.b16 %v4182_v34, %v4182_v34  ;;  %v4189_v12 = vpack.i.b16 %v4183_v26, %v4183_v26 }
 0x4d8   : >> { %v6871_v48 = vpop.f32.mrf.mxu2  ;;  %v6873_v0 = vpop.f32.mrf.mxu3  ;;  %v3875_v45 = vperm.slane %v3873_v54, 3  ;;  %v3879_v30 = vperm.slane %v3877_v50, 3 }
 0x4d9   : >> { %v4187_v32 = vperm.slane %v4185_v31, 0  ;;  %v4191_v5 = vperm.slane %v4189_v12, 0  ;;  %v5795_v31 = vld [vmem:[%s6495_s21 + $0x108] sm:$0xff]  ;;  %v1255_v12 = vld [vmem:[%s6805_s29 + $0x30] sm:$0xff] }
 0x4da   : >> { %v6876_v55 = vpop.f32.mrf.mxu0  ;;  %v6878_v2 = vpop.f32.mrf.mxu1  ;;  %v3880_v36 = vunpack.c.l.bf16 %v3875_v45  ;;  %v3881_v51 = vunpack.c.l.bf16 %v3879_v30 }
 0x4db   : >> { %8723 = vst [vmem:[#allocation20_spill] sm:$0xff] %v6876_v55  ;;  %v4192_v28 = vunpack.c.l.bf16 %v4187_v32  ;;  %v4193_v19 = vunpack.c.l.bf16 %v4191_v5  ;;  %v2938_v32 = vpack.i.b16 %v6812_v8, %v6812_v8  ;;  %v4029_v5 = vshrl.u32 %v3871_v63, 16 }
 0x4dc   : >> { %8724 = vst [vmem:[#allocation21_spill] sm:$0xff] %v6878_v2  ;;  %v5962_v2 = vpack.i.bf16 %v3881_v51, %v3880_v36 }
 0x4dd   : >> { %v5972_v26 = vpack.i.bf16 %v4193_v19, %v4192_v28  ;;  %2723 = vperm.xlu2 %5934, %v1255_v12   ;;  %v2942_v19 = vpack.i.b16 %v6814_v59, %v6814_v59  ;;  %v2940_v30 = vperm.slane %v2938_v32, 0  ;;  %v4030_v51 = vpack.i.b16 %v4029_v5, %v4029_v5 }
 0x4de   : >> { %5560 = vmatmul.msk.bf16.gmra.mxu2 %vm509_vm8, %v5791_v23  ;;  %5564 = vmatmul.msk.bf16.gmra.mxu3 %vm509_vm8, %v5791_v23 }
 0x4df   : >> { %5963 = vrot.lane.b32.xlu1 %v5962_v2, %s6112_s12  ;;  %5973 = vrot.lane.b32.xlu0 %v5972_v26, %s6111_s28  ;;  %v4025_v2 = vshrl.u32 %v3870_v57, 16  ;;  %v2944_v40 = vperm.slane %v2942_v19, 0  ;;  %v2969_v8 = vunpack.c.l.bf16 %v2940_v30  ;;  %v4032_v59 = vperm.slane %v4030_v51, 3 }
 0x4e0   : >> { %v6884_v55 = vpop.f32.mrf.mxu2  ;;  %v6886_v34 = vpop.f32.mrf.mxu3  ;;  %v1563_v51 = vadd.f32 %v6703_v53, %v6655_v39  ;;  %v5793_v39 = vld [vmem:[%s6495_s21 + $0xf8] sm:$0xff] }
 0x4e1   : >> { %v4026_v36 = vpack.i.b16 %v4025_v2, %v4025_v2  ;;  %v2970_v12 = vunpack.c.l.bf16 %v2944_v40  ;;  %v4034_v32 = vunpack.c.l.bf16 %v4032_v59  ;;  %v5796_v40 = vld [vmem:[%s6495_s21 + $0x110] sm:$0xff] }
 0x4e2   : >> { %v6889_v54 = vpop.f32.mrf.mxu0  ;;  %v6891_v50 = vpop.f32.mrf.mxu1 }
 0x4e3   : >> { %8725 = vst [vmem:[#allocation22_spill] sm:$0xff] %v6891_v50  ;;  %v4028_v50 = vperm.slane %v4026_v36, 3  ;;  %v5937_v57 = vpack.i.bf16 %v2970_v12, %v2969_v8  ;;  %v1534_v36 = vadd.f32 %v6705_v41, %v6652_v27  ;;  %v1730_v8 = vadd.f32 %v6695_v24, %v1563_v51 }
 0x4e5   : >> { %5938 = vrot.lane.b32.xlu2 %v5937_v57, %s6108_s24  ;;  %v4033_v63 = vunpack.c.l.bf16 %v4028_v50  ;;  %v1729_v50 = vadd.f32 %v6697_v29, %v1534_v36  ;;  %v1890_v57 = vadd.f32 %v6824_v62, %v1730_v8  ;;  %v1548_v8 = vadd.f32 %v6661_v52, %v6576_v25 }
 0x4e6   : >> { %5593 = vmatmul.msk.bf16.gmra.mxu0 %vm509_vm8, %v5795_v31  ;;  %5597 = vmatmul.msk.bf16.gmra.mxu1 %vm509_vm8, %v5795_v31  ;;  %v5792_v31 = vld [vmem:[%s6495_s21 + $0xf0] sm:$0xff] }
 0x4e7   : >> { %v1889_v53 = vadd.f32 %v6822_v61, %v1729_v50  ;;  %v2020_v29 = vadd.f32 %v6833_v58, %v1890_v57  ;;  %v1519_v50 = vadd.f32 %v6665_v44, %v6571_v13 }
 0x4e8   : >> { %v6902_v23 = vpop.f32.mrf.mxu2  ;;  %v6904_v45 = vpop.f32.mrf.mxu3 }
 0x4e9   : >> { %v2019_v24 = vadd.f32 %v6831_v17, %v1889_v53  ;;  %v1718_v53 = vadd.f32 %v6663_v43, %v1548_v8 }
 0x4ea   : >> { %v6906_v28 = vpop.f32.mrf.mxu0  ;;  %v6908_v26 = vpop.f32.mrf.mxu1 }
 0x4eb   : >> { %v6954_v62 = vpop.permute.xlu0 %2698 }
 0x4ee   : >> { %5561 = vmatmul.msk.bf16.gmra.mxu2 %vm509_vm8, %v5792_v31  ;;  %5565 = vmatmul.msk.bf16.gmra.mxu3 %vm509_vm8, %v5792_v31  ;;  %v5967_v31 = vpack.i.bf16 %v4034_v32, %v4033_v63 }
 0x4f0   : >> { %v6914_v19 = vpop.f32.mrf.mxu2  ;;  %v6916_v2 = vpop.f32.mrf.mxu3  ;;  %5968 = vrot.lane.b32.xlu2 %v5967_v31, %s6113_s13 }
 0x4f2   : >> { %v6918_v5 = vpop.f32.mrf.mxu0  ;;  %v6920_v30 = vpop.f32.mrf.mxu1 }
 0x4f3   : >> { %v6956_v17 = vpop.permute.xlu0 %2728 }
 0x4f6   : >> { %5594 = vmatmul.msk.bf16.gmra.mxu0 %vm509_vm8, %v5796_v40  ;;  %5598 = vmatmul.msk.bf16.gmra.mxu1 %vm509_vm8, %v5796_v40 }
 0x4f8   : >> { %v6932_v12 = vpop.f32.mrf.mxu2  ;;  %v6934_v59 = vpop.f32.mrf.mxu3 }
 0x4fa   : >> { %v6936_v27 = vpop.f32.mrf.mxu0  ;;  %v6938_v41 = vpop.f32.mrf.mxu1 }
 0x4fb   : >> { %8726 = vst [vmem:[#allocation23_spill] sm:$0xff] %v6936_v27  ;;  %v6958_v58 = vpop.permute.xlu0 %5943 }
 0x4fc   : >> { %8727 = vst [vmem:[#allocation24_spill] sm:$0xff] %v6938_v41  ;;  %v5797_v41 = vld [vmem:[%s6495_s21 + $0x118] sm:$0xff]  ;;  %s5600_s21 = sshll.u32 %s6097_s27, 4 }
 0x4fe   : >> { %5562 = vmatmul.msk.bf16.gmra.mxu2 %vm509_vm8, %v5793_v39  ;;  %5566 = vmatmul.msk.bf16.gmra.mxu3 %vm509_vm8, %v5793_v39  ;;  %v1717_v39 = vadd.f32 %v6659_v42, %v1519_v50 }
 0x500   : >> { %v2151_v63 = vpop.f32.mrf.mxu2  ;;  %v2180_v32 = vpop.f32.mrf.mxu3 }
 0x501   : >> { %v2197_v40 = vadd.f32 %v2151_v63, %v2019_v24  ;;  %v2198_v36 = vadd.f32 %v2180_v32, %v2020_v29  ;;  %v2184_v24 = vadd.f32 %v6837_v16, %v6716_v1  ;;  %v1877_v29 = vadd.f32 %v6727_v7, %v1717_v39 }
 0x502   : >> { %v2317_v51 = vpop.f32.mrf.mxu0  ;;  %v2346_v31 = vpop.f32.mrf.mxu1  ;;  %v1878_v63 = vadd.f32 %v6725_v10, %v1718_v53  ;;  %v1553_v39 = vadd.f32 %v6679_v56, %v6630_v60 }
 0x503   : >> { %v6948_v27 = vadd.f32 %v2317_v51, %v2197_v40  ;;  %v6950_v61 = vadd.f32 %v2346_v31, %v2198_v36  ;;  %v6966_v57 = vpop.permute.xlu0 %5948  ;;  %v2350_v25 = vadd.f32 %v6845_v6, %v2184_v24  ;;  %v2007_v42 = vadd.f32 %v6714_v49, %v1877_v29  ;;  %v3678_v6 = vld [vmem:[#allocation2 + $0x6c] sm:$0xf]  ;;  %v3680_v51 = vld [vmem:[#allocation2 + $0x7c] sm:$0xf]  ;;  %v6987_v31 = vpop.permute.xlu1 %2703 }
 0x504   : >> { %v2008_v52 = vadd.f32 %v6712_v20, %v1878_v63  ;;  %v6993_v50 = vunpack.c.l.bf16 %v3678_v6  ;;  %v6995_v8 = vunpack.c.l.bf16 %v3680_v51 }
 0x506   : >> { %5595 = vmatmul.msk.bf16.gmra.mxu0 %vm509_vm8, %v5797_v41  ;;  %5599 = vmatmul.msk.bf16.gmra.mxu1 %vm509_vm8, %v5797_v41  ;;  %v2183_v41 = vadd.f32 %v6835_v18, %v6721_v21  ;;  %v2185_v21 = vadd.f32 %v6850_v4, %v2007_v42  ;;  %v2186_v1 = vadd.f32 %v6852_v14, %v2008_v52 }
 0x507   : >> { %8728 = vst [vmem:[#allocation25_spill] sm:$0xff] %v6993_v50  ;;  %v2187_v52 = vadd.f32 %v6871_v48, %v6754_v33 }
 0x508   : >> { %v2349_v13 = vadd.f32 %v6843_v35, %v2183_v41  ;;  %v1524_v35 = vadd.f32 %v6681_v3, %v6618_v22  ;;  %8729 = vst [vmem:[#allocation26_spill] sm:$0xff] %v6995_v8  ;;  %v2351_v22 = vadd.f32 %v6857_v38, %v2185_v21  ;;  %v2352_v3 = vadd.f32 %v6859_v9, %v2186_v1 }
 0x509   : >> { %v1722_v9 = vadd.f32 %v6671_v47, %v1553_v39 }
 0x50a   : >> { %v1721_v63 = vadd.f32 %v6669_v46, %v1524_v35 }
 0x50b   : >> { %v1882_v48 = vadd.f32 %v6762_v15, %v1722_v9  ;;  %v8736_v15 = vld [vmem:[#allocation5_spill] sm:$0xff] }
 0x50c   : >> { %v1881_v1 = vadd.f32 %v6765_v37, %v1721_v63  ;;  %v8733_v37 = vld [vmem:[#allocation21_spill] sm:$0xff] }
 0x526   : >> { %v2694_v20 = vpop.permute.xlu2 %2693 }
 0x53e   : >> { %v6980_v36 = vpop.permute.xlu0 %5958 }
 0x53f   : >> { %v6985_v49 = vunpack.i.h.bf16 %v6980_v36 }
 0x541   : >> { %v3753_v24 = vmul.f32 %v6985_v49, %v6993_v50  ;;  %v3756_v29 = vmul.f32 %v6985_v49, %v6995_v8 }
 0x551   : >> { %v2460_v43 = vpop.f32.mrf.mxu2  ;;  %v2489_v44 = vpop.f32.mrf.mxu3 }
 0x552   : >> { %v2509_v32 = vadd.f32 %v2460_v43, %v2349_v13  ;;  %v2510_v40 = vadd.f32 %v2489_v44, %v2350_v25  ;;  %v2188_v43 = vadd.f32 %v6873_v0, %v6751_v11  ;;  %v3768_v44 = vpack.c.bf16 %v3756_v29, %v3753_v24  ;;  %v8738_v29 = vld [vmem:[#allocation11_spill] sm:$0xff] }
 0x553   : >> { %v2626_v16 = vpop.f32.mrf.mxu0  ;;  %v2655_v7 = vpop.f32.mrf.mxu1  ;;  %v2011_v63 = vadd.f32 %v8738_v29, %v1881_v1 }
 0x554   : >> { %v2675_v18 = vadd.f32 %v2626_v16, %v2509_v32  ;;  %v2676_v10 = vadd.f32 %v2655_v7, %v2510_v40  ;;  %3813 = vrot.lane.b32.xlu0 %v3768_v44, %s6114_s23  ;;  %v3674_v16 = vld [vmem:[#allocation2 + $0x4c] sm:$0xf]  ;;  %v3676_v7 = vld [vmem:[#allocation2 + $0x5c] sm:$0xf]  ;;  %v2354_v35 = vadd.f32 %v8733_v37, %v2188_v43  ;;  %v8739_v43 = vld [vmem:[#allocation10_spill] sm:$0xff] }
 0x555   : >> { %v7021_v0 = vunpack.c.l.bf16 %v3674_v16  ;;  %v7023_v11 = vunpack.c.l.bf16 %v3676_v7  ;;  %v2012_v44 = vadd.f32 %v8739_v43, %v1882_v48  ;;  %v8740_v37 = vld [vmem:[#allocation7_spill] sm:$0xff] }
 0x556   : >> { %v6989_v4 = vadd.f32 %v2694_v20, %v2675_v18  ;;  %v6991_v14 = vadd.f32 %v2694_v20, %v2676_v10  ;;  %v8732_v18 = vld [vmem:[#allocation20_spill] sm:$0xff]  ;;  %v7028_v20 = vpop.permute.xlu1 %2713 }
 0x557   : >> { %8730 = vst [vmem:[#allocation27_spill] sm:$0xff] %v7021_v0  ;;  %v2353_v10 = vadd.f32 %v8732_v18, %v2187_v52  ;;  %v3750_v39 = vmul.f32 %v6985_v49, %v7023_v11 }
 0x558   : >> { %v2747_v53 = vmin.f32 %v6989_v4, 20.0  ;;  %v2748_v41 = vmin.f32 %v6991_v14, 20.0  ;;  %8731 = vst [vmem:[#allocation28_spill] sm:$0xff] %v7023_v11 }
 0x559   : >> { %v2462_v13 = vpop.f32.mrf.mxu2  ;;  %v2491_v25 = vpop.f32.mrf.mxu3 }
 0x55a   : >> { %v2763_v42 = vmul.f32 1.442695, %v2747_v53  ;;  %v2765_v60 = vmul.f32 1.442695, %v2748_v41  ;;  %v2511_v56 = vadd.f32 %v2462_v13, %v2351_v22  ;;  %v2512_v38 = vadd.f32 %v2491_v25, %v2352_v3  ;;  %v8734_v22 = vld [vmem:[#allocation4_spill] sm:$0xff]  ;;  %v8735_v3 = vld [vmem:[#allocation9_spill] sm:$0xff] }
 0x55b   : >> { %v2628_v32 = vpop.f32.mrf.mxu0  ;;  %v2657_v40 = vpop.f32.mrf.mxu1  ;;  %v1529_v53 = vadd.f32 %v8735_v3, %v8734_v22  ;;  %v8737_v41 = vld [vmem:[#allocation8_spill] sm:$0xff] }
 0x55c   : >> { %5977 = vpow2.f32 %v2763_v42  ;;  %v2677_v21 = vadd.f32 %v2628_v32, %v2511_v56  ;;  %v2678_v46 = vadd.f32 %v2657_v40, %v2512_v38  ;;  %v1558_v24 = vadd.f32 %v8737_v41, %v8736_v15 }
 0x55d   : >> { %5979 = vpow2.f32 %v2765_v60  ;;  %v2189_v32 = vadd.f32 %v6884_v55, %v2011_v63  ;;  %v8743_v63 = vld [vmem:[#allocation22_spill] sm:$0xff] }
 0x55e   : >> { %v7016_v47 = vadd.f32 %v6954_v62, %v2677_v21  ;;  %v7019_v33 = vadd.f32 %v6954_v62, %v2678_v46  ;;  %v3747_v62 = vmul.f32 %v6985_v49, %v7021_v0  ;;  %v1726_v22 = vadd.f32 %v8740_v37, %v1558_v24  ;;  %v8742_v24 = vld [vmem:[#allocation14_spill] sm:$0xff] }
 0x560   : >> { %v2749_v6 = vmin.f32 %v7016_v47, 20.0  ;;  %v2750_v51 = vmin.f32 %v7019_v33, 20.0  ;;  %v3765_v21 = vpack.c.bf16 %v3750_v39, %v3747_v62  ;;  %v2355_v62 = vadd.f32 %v6889_v54, %v2189_v32 }
 0x561   : >> { %v2465_v13 = vpop.f32.mrf.mxu2  ;;  %v2494_v25 = vpop.f32.mrf.mxu3  ;;  %v1886_v29 = vadd.f32 %v8742_v24, %v1726_v22 }
 0x562   : >> { %v5978_v42 = vpop.eup %5977  ;;  %v2767_v60 = vmul.f32 1.442695, %v2749_v6  ;;  %v2769_v56 = vmul.f32 1.442695, %v2750_v51  ;;  %v2513_v38 = vadd.f32 %v2465_v13, %v2353_v10  ;;  %v2514_v9 = vadd.f32 %v2494_v25, %v2354_v35  ;;  %3807 = vrot.lane.b32.xlu0 %v3765_v21, %s6114_s23  ;;  %v8745_v21 = vld [vmem:[#allocation12_spill] sm:$0xff]  ;;  %v2709_v22 = vpop.permute.xlu2 %2708 }
 0x563   : >> { %v5980_v52 = vpop.eup %5979  ;;  %v2795_v40 = vadd.f32 2.0, %v5978_v42  ;;  %v2631_v46 = vpop.f32.mrf.mxu0  ;;  %v2190_v6 = vadd.f32 %v6886_v34, %v2012_v44  ;;  %v8741_v34 = vld [vmem:[#allocation6_spill] sm:$0xff] }
 0x564   : >> { %v2660_v16 = vpop.f32.mrf.mxu1  ;;  %v2796_v7 = vadd.f32 2.0, %v5980_v52  ;;  %5981 = vpow2.f32 %v2767_v60  ;;  %v2679_v18 = vadd.f32 %v2631_v46, %v2513_v38  ;;  %v1725_v41 = vadd.f32 %v8741_v34, %v1529_v53 }
 0x565   : >> { %v2680_v1 = vadd.f32 %v2660_v16, %v2514_v9  ;;  %v2811_v51 = vmul.f32 %v5978_v42, %v2795_v40  ;;  %5983 = vpow2.f32 %v2769_v56  ;;  %v2356_v13 = vadd.f32 %v8743_v63, %v2190_v6 }
 0x566   : >> { %v2812_v10 = vmul.f32 %v5980_v52, %v2796_v7  ;;  %v7047_v48 = vadd.f32 %v6987_v31, %v2679_v18  ;;  %v8744_v52 = vld [vmem:[#allocation13_spill] sm:$0xff]  ;;  %v2192_v46 = vadd.f32 %v6904_v45, %v8745_v21  ;;  %v8746_v18 = vld [vmem:[#allocation16_spill] sm:$0xff] }
 0x567   : >> { %v7050_v55 = vadd.f32 %v6987_v31, %v2680_v1  ;;  %v2843_v35 = vadd.f32 2.0, %v2811_v51  ;;  %v7058_v31 = vpop.permute.xlu1 %2718  ;;  %v2191_v43 = vadd.f32 %v6902_v23, %v8744_v52  ;;  %v1885_v1 = vadd.f32 %v8746_v18, %v1725_v41 }
 0x568   : >> { %v2844_v39 = vadd.f32 2.0, %v2812_v10  ;;  %v2751_v3 = vmin.f32 %v7047_v48, 20.0  ;;  %v2827_v23 = vmul.f32 %v2811_v51, %v6989_v4  ;;  %v2828_v45 = vmul.f32 %v2812_v10, %v6991_v14 }
 0x569   : >> { %v2752_v15 = vmin.f32 %v7050_v55, 20.0  ;;  %5985 = vrcp.f32 %v2843_v35  ;;  %v2467_v25 = vpop.f32.mrf.mxu2  ;;  %v2496_v42 = vpop.f32.mrf.mxu3  ;;  %v8747_v35 = vld [vmem:[#allocation15_spill] sm:$0xff]  ;;  %v2357_v34 = vadd.f32 %v6906_v28, %v2191_v43 }
 0x56a   : >> { %v5982_v60 = vpop.eup %5981  ;;  %5987 = vrcp.f32 %v2844_v39  ;;  %v2771_v56 = vmul.f32 1.442695, %v2751_v3  ;;  %v2515_v38 = vadd.f32 %v2467_v25, %v2355_v62  ;;  %v2516_v53 = vadd.f32 %v2496_v42, %v2356_v13 }
 0x56b   : >> { %v2773_v54 = vmul.f32 1.442695, %v2752_v15  ;;  %v5984_v9 = vpop.eup %5983  ;;  %v2797_v44 = vadd.f32 2.0, %v5982_v60  ;;  %v2633_v32 = vpop.f32.mrf.mxu0  ;;  %v2016_v62 = vadd.f32 %v8747_v35, %v1886_v29  ;;  %v2358_v13 = vadd.f32 %v6908_v26, %v2192_v46 }
 0x56c   : >> { %v2662_v40 = vpop.f32.mrf.mxu1  ;;  %v2798_v16 = vadd.f32 2.0, %v5984_v9  ;;  %5989 = vpow2.f32 %v2771_v56  ;;  %v2681_v7 = vadd.f32 %v2633_v32, %v2515_v38 }
 0x56d   : >> { %v2813_v37 = vmul.f32 %v5982_v60, %v2797_v44  ;;  %5991 = vpow2.f32 %v2773_v54  ;;  %v2682_v6 = vadd.f32 %v2662_v40, %v2516_v53  ;;  %v8748_v60 = vld [vmem:[#allocation17_spill] sm:$0xff]  ;;  %v2194_v21 = vadd.f32 %v6916_v2, %v2016_v62 }
 0x56e   : >> { %v2814_v39 = vmul.f32 %v5984_v9, %v2798_v16  ;;  %v7067_v3 = vadd.f32 %v2709_v22, %v2681_v7  ;;  %v2015_v4 = vadd.f32 %v8748_v60, %v1885_v1 }
 0x56f   : >> { %v5986_v15 = vpop.eup %5985  ;;  %v2845_v24 = vadd.f32 2.0, %v2813_v37  ;;  %v7071_v63 = vadd.f32 %v2709_v22, %v2682_v6  ;;  %v7081_v16 = vpop.permute.xlu1 %5953 }
 0x570   : >> { %v5988_v41 = vpop.eup %5987  ;;  %v2875_v25 = vmul.f32 %v5986_v15, %v2827_v23  ;;  %v2846_v42 = vadd.f32 2.0, %v2814_v39  ;;  %v2753_v29 = vmin.f32 %v7067_v3, 20.0  ;;  %v2193_v26 = vadd.f32 %v6914_v19, %v2015_v4 }
 0x571   : >> { %v2876_v51 = vmul.f32 %v5988_v41, %v2828_v45  ;;  %5993 = vrcp.f32 %v2845_v24  ;;  %v2754_v56 = vmin.f32 %v7071_v63, 20.0  ;;  %v2470_v54 = vpop.f32.mrf.mxu2  ;;  %v2499_v28 = vpop.f32.mrf.mxu3  ;;  %v2829_v19 = vmul.f32 %v2813_v37, %v7016_v47  ;;  %v8749_v37 = vld [vmem:[#allocation19_spill] sm:$0xff] }
 0x572   : >> { %v5990_v38 = vpop.eup %5989  ;;  %5995 = vrcp.f32 %v2846_v42  ;;  %v2775_v14 = vmul.f32 1.442695, %v2753_v29  ;;  %v2517_v10 = vadd.f32 %v2470_v54, %v2357_v34  ;;  %v2518_v9 = vadd.f32 %v2499_v28, %v2358_v13 }
 0x573   : >> { %v5992_v52 = vpop.eup %5991  ;;  %v7078_v43 = vpack.c.bf16 %v2876_v51, %v2875_v25  ;;  %v2799_v44 = vadd.f32 2.0, %v5990_v38  ;;  %v2777_v53 = vmul.f32 1.442695, %v2754_v56  ;;  %v2636_v32 = vpop.f32.mrf.mxu0  ;;  %v2359_v23 = vadd.f32 %v6918_v5, %v2193_v26  ;;  %v8750_v51 = vld [vmem:[#allocation18_spill] sm:$0xff]  ;;  %v8751_v26 = vld [vmem:[#allocation23_spill] sm:$0xff] }
 0x574   : >> { %v2665_v40 = vpop.f32.mrf.mxu1  ;;  %v2800_v46 = vadd.f32 2.0, %v5992_v52  ;;  %5997 = vpow2.f32 %v2775_v14  ;;  %v2683_v7 = vadd.f32 %v2636_v32, %v2517_v10  ;;  %v2830_v2 = vmul.f32 %v2814_v39, %v7019_v33 }
 0x575   : >> { %2907 = vst [vmem:[#allocation2 + $0x4] sm:$0xff] %v7078_v43  ;;  %v2815_v18 = vmul.f32 %v5990_v38, %v2799_v44  ;;  %5999 = vpow2.f32 %v2777_v53  ;;  %v2684_v1 = vadd.f32 %v2665_v40, %v2518_v9  ;;  %v2360_v45 = vadd.f32 %v6920_v30, %v2194_v21 }
 0x576   : >> { %v2816_v22 = vmul.f32 %v5992_v52, %v2800_v46  ;;  %v7086_v6 = vadd.f32 %v7028_v20, %v2683_v7  ;;  %v2195_v13 = vadd.f32 %v6932_v12, %v8749_v37  ;;  %v2196_v56 = vadd.f32 %v6934_v59, %v8750_v51 }
 0x577   : >> { %v5994_v35 = vpop.eup %5993  ;;  %v2847_v62 = vadd.f32 2.0, %v2815_v18  ;;  %v7091_v15 = vadd.f32 %v7028_v20, %v2684_v1  ;;  %v7098_v20 = vpop.permute.xlu2 %2723  ;;  %v2831_v32 = vmul.f32 %v2815_v18, %v7047_v48  ;;  %v8752_v1 = vld [vmem:[#allocation24_spill] sm:$0xff]  ;;  %v7121_v48 = vunpack.i.l.bf16 %v6958_v58 }
 0x578   : >> { %v5996_v34 = vpop.eup %5995  ;;  %v2877_v24 = vmul.f32 %v5994_v35, %v2829_v19  ;;  %v2848_v41 = vadd.f32 2.0, %v2816_v22  ;;  %v2755_v47 = vmin.f32 %v7086_v6, 20.0  ;;  %v2361_v44 = vadd.f32 %v8751_v26, %v2195_v13  ;;  %v7107_v59 = vpop.permute.xlu1 %5963 }
 0x579   : >> { %v2878_v25 = vmul.f32 %v5996_v34, %v2830_v2  ;;  %6001 = vrcp.f32 %v2847_v62  ;;  %v2756_v5 = vmin.f32 %v7091_v15, 20.0  ;;  %v2472_v42 = vpop.f32.mrf.mxu2  ;;  %v2501_v33 = vpop.f32.mrf.mxu3  ;;  %v2362_v19 = vadd.f32 %v8752_v1, %v2196_v56 }
 0x57a   : >> { %v5998_v39 = vpop.eup %5997  ;;  %6003 = vrcp.f32 %v2848_v41  ;;  %v2779_v29 = vmul.f32 1.442695, %v2755_v47  ;;  %v2519_v60 = vadd.f32 %v2472_v42, %v2359_v23  ;;  %v2520_v30 = vadd.f32 %v2501_v33, %v2360_v45 }
 0x57b   : >> { %v6000_v4 = vpop.eup %5999  ;;  %v7102_v54 = vpack.c.bf16 %v2878_v25, %v2877_v24  ;;  %v2801_v12 = vadd.f32 2.0, %v5998_v39  ;;  %v2781_v28 = vmul.f32 1.442695, %v2756_v5  ;;  %v2638_v38 = vpop.f32.mrf.mxu0  ;;  %v7117_v35 = vunpack.i.h.bf16 %v6958_v58 }
 0x57c   : >> { %v2667_v14 = vpop.f32.mrf.mxu1  ;;  %v2802_v10 = vadd.f32 2.0, %v6000_v4  ;;  %6005 = vpow2.f32 %v2779_v29  ;;  %v2685_v9 = vadd.f32 %v2638_v38, %v2519_v60  ;;  %v2832_v23 = vmul.f32 %v2816_v22, %v7050_v55  ;;  %v2915_v51 = vld [vmem:[#allocation2] sm:$0xff] }
 0x57d   : >> { %v2686_v52 = vadd.f32 %v2667_v14, %v2520_v30  ;;  %2908 = vst [vmem:[#allocation2 + $0x14] sm:$0xff] %v7102_v54  ;;  %v2817_v53 = vmul.f32 %v5998_v39, %v2801_v12  ;;  %6007 = vpow2.f32 %v2781_v28  ;;  %v7125_v41 = vunpack.i.h.bf16 %v7107_v59 }
 0x57e   : >> { %v2818_v40 = vmul.f32 %v6000_v4, %v2802_v10  ;;  %v7110_v21 = vadd.f32 %v7058_v31, %v2685_v9 }
 0x57f   : >> { %v7113_v46 = vadd.f32 %v7058_v31, %v2686_v52  ;;  %v6002_v7 = vpop.eup %6001  ;;  %v2849_v2 = vadd.f32 2.0, %v2817_v53  ;;  %v3672_v31 = vld [vmem:[#allocation2 + $0x3c] sm:$0xf]  ;;  %8753 = vst [vmem:[#allocation20_spill] sm:$0xff] %v7125_v41  ;;  %v5939_v22 = vpop.permute.xlu2 %5938  ;;  %v2833_v9 = vmul.f32 %v2817_v53, %v7067_v3 }
 0x580   : >> { %v6004_v62 = vpop.eup %6003  ;;  %v2879_v18 = vmul.f32 %v6002_v7, %v2831_v32  ;;  %v2850_v34 = vadd.f32 2.0, %v2818_v40  ;;  %v2757_v45 = vmin.f32 %v7110_v21, 20.0  ;;  %v7130_v39 = vunpack.i.h.bf16 %v5939_v22 }
 0x581   : >> { %v2880_v24 = vmul.f32 %v6004_v62, %v2832_v23  ;;  %6009 = vrcp.f32 %v2849_v2  ;;  %v2758_v47 = vmin.f32 %v7113_v46, 20.0  ;;  %v2475_v37 = vpop.f32.mrf.mxu2  ;;  %v2504_v13 = vpop.f32.mrf.mxu3  ;;  %v7132_v56 = vunpack.c.l.bf16 %v3672_v31 }
 0x582   : >> { %v6006_v55 = vpop.eup %6005  ;;  %6011 = vrcp.f32 %v2850_v34  ;;  %v2783_v25 = vmul.f32 1.442695, %v2757_v45  ;;  %v2521_v58 = vadd.f32 %v2475_v37, %v2361_v44  ;;  %v2522_v5 = vadd.f32 %v2504_v13, %v2362_v19 }
 0x583   : >> { %v6008_v42 = vpop.eup %6007  ;;  %v7128_v33 = vpack.c.bf16 %v2880_v24, %v2879_v18  ;;  %v2803_v29 = vadd.f32 2.0, %v6006_v55  ;;  %v2785_v60 = vmul.f32 1.442695, %v2758_v47  ;;  %v2641_v30 = vpop.f32.mrf.mxu0  ;;  %8754 = vst [vmem:[#allocation21_spill] sm:$0xff] %v7132_v56  ;;  %v7135_v38 = vunpack.i.l.bf16 %v5939_v22 }
 0x584   : >> { %v2670_v4 = vpop.f32.mrf.mxu1  ;;  %v2804_v12 = vadd.f32 2.0, %v6008_v42  ;;  %6013 = vpow2.f32 %v2783_v25  ;;  %v2687_v28 = vadd.f32 %v2641_v30, %v2521_v58  ;;  %v7141_v44 = vunpack.c.h.bf16 %v2915_v51  ;;  %v2917_v45 = vld [vmem:[#allocation2 + $0x10] sm:$0xff] }
 0x585   : >> { %2909 = vst [vmem:[#allocation2 + $0x24] sm:$0xff] %v7128_v33  ;;  %v2819_v14 = vmul.f32 %v6006_v55, %v2803_v29  ;;  %6015 = vpow2.f32 %v2785_v60  ;;  %v2688_v10 = vadd.f32 %v2670_v4, %v2522_v5  ;;  %v2834_v7 = vmul.f32 %v2818_v40, %v7071_v63 }
 0x586   : >> { %8755 = vst [vmem:[#allocation4_spill] sm:$0xff] %v7135_v38  ;;  %v2820_v52 = vmul.f32 %v6008_v42, %v2804_v12  ;;  %v7139_v26 = vadd.f32 %v7098_v20, %v2687_v28  ;;  %v7150_v23 = vsel %vm481_vm2, %v7121_v48, %v7117_v35  ;;  %v3744_v3 = vmul.f32 %v6985_v49, %v7132_v56 }
 0x587   : >> { %v6010_v32 = vpop.eup %6009  ;;  %v2851_v1 = vadd.f32 2.0, %v2819_v14  ;;  %v7145_v19 = vadd.f32 %v7098_v20, %v2688_v10  ;;  %8756 = vst [vmem:[#allocation9_spill] sm:$0xff] %v7150_v23  ;;  %v7157_v63 = vmul.f32 %v7125_v41, %v6993_v50  ;;  %v7162_v31 = vmul.f32 %v7125_v41, %v6995_v8 }
 0x588   : >> { %v6012_v2 = vpop.eup %6011  ;;  %v2881_v53 = vmul.f32 %v6010_v32, %v2833_v9  ;;  %v2852_v62 = vadd.f32 2.0, %v2820_v52  ;;  %v2759_v18 = vmin.f32 %v7139_v26, 20.0  ;;  %v3043_v37 = vmul.f32 %v7150_v23, %v7141_v44 }
 0x589   : >> { %v2882_v34 = vmul.f32 %v6012_v2, %v2834_v7  ;;  %6017 = vrcp.f32 %v2851_v1  ;;  %v2760_v20 = vmin.f32 %v7145_v19, 20.0  ;;  %v2477_v40 = vpop.f32.mrf.mxu2  ;;  %v2506_v5 = vpop.f32.mrf.mxu3  ;;  %v7171_v60 = vunpack.c.h.bf16 %v2917_v45 }
 0x58a   : >> { %v6014_v24 = vpop.eup %6013  ;;  %6019 = vrcp.f32 %v2852_v62  ;;  %v2787_v47 = vmul.f32 1.442695, %v2759_v18  ;;  %v2523_v58 = vadd.f32 %v2477_v40, %v6948_v27  ;;  %v7173_v30 = vunpack.c.l.bf16 %v2915_v51 }
 0x58b   : >> { %v6016_v13 = vpop.eup %6015  ;;  %v7166_v55 = vpack.c.bf16 %v2882_v34, %v2881_v53  ;;  %v2805_v22 = vadd.f32 2.0, %v6014_v24  ;;  %v2789_v25 = vmul.f32 1.442695, %v2760_v20  ;;  %v2643_v4 = vpop.f32.mrf.mxu0  ;;  %v2835_v28 = vmul.f32 %v2819_v14, %v7086_v6 }
 0x58c   : >> { %v7169_v42 = vld [vmem:[#allocation2 + $0x28] sm:$0xff]   ;;  %v2806_v29 = vadd.f32 2.0, %v6016_v13  ;;  %6021 = vpow2.f32 %v2787_v47  ;;  %v2524_v9 = vadd.f32 %v2506_v5, %v6950_v61  ;;  %v3046_v32 = vmul.f32 %v7150_v23, %v7171_v60  ;;  %v2672_v18 = vpop.f32.mrf.mxu1  ;;  %v5653_v56 = vld [vmem:[#allocation2 + $0x24] sm:$0xf] }
 0x58d   : >> { %v7176_v12 = vunpack.c.h.bf16 %v7169_v42  ;;  %2910 = vst [vmem:[#allocation2 + $0x34] sm:$0xff] %v7166_v55  ;;  %v2821_v10 = vmul.f32 %v6014_v24, %v2805_v22  ;;  %6023 = vpow2.f32 %v2789_v25  ;;  %v7183_v7 = vunpack.c.l.bf16 %v2917_v45 }
 0x58e   : >> { %v2822_v27 = vmul.f32 %v6016_v13, %v2806_v29  ;;  %v2836_v2 = vmul.f32 %v2820_v52, %v7091_v15  ;;  %v2689_v62 = vadd.f32 %v2643_v4, %v2523_v58  ;;  %v3067_v20 = vpack.c.bf16 %v3046_v32, %v3043_v37  ;;  %v3668_v13 = vld [vmem:[#allocation2 + $0x18] sm:$0xff]  }
 0x58f   : >> { %8757 = vst [vmem:[#allocation5_spill] sm:$0xff] %v7176_v12  ;;  %v6018_v51 = vpop.eup %6017  ;;  %v3741_v1 = vmul.f32 %v6985_v49, %v7176_v12  ;;  %v2853_v53 = vadd.f32 2.0, %v2821_v10  ;;  %v3042_v61 = vmul.f32 %v7121_v48, %v7173_v30  ;;  %v3045_v45 = vmul.f32 %v7121_v48, %v7183_v7 }
 0x590   : >> { %v6020_v6 = vpop.eup %6019  ;;  %v2883_v14 = vmul.f32 %v6018_v51, %v2835_v28  ;;  %v2854_v34 = vadd.f32 2.0, %v2822_v27  ;;  %3102 = vrot.lane.b32.xlu2 %v3067_v20, %s6113_s13  ;;  %v7194_v15 = vadd.f32 %v6956_v17, %v2689_v62  ;;  %v2690_v52 = vadd.f32 %v2672_v18, %v2524_v9 }
 0x591   : >> { %v3762_v40 = vpack.c.bf16 %v3744_v3, %v3741_v1  ;;  %v2884_v24 = vmul.f32 %v6020_v6, %v2836_v2  ;;  %6025 = vrcp.f32 %v2853_v53  ;;  %v3066_v25 = vpack.c.bf16 %v3045_v45, %v3042_v61 }
 0x592   : >> { %v6022_v47 = vpop.eup %6021  ;;  %6027 = vrcp.f32 %v2854_v34  ;;  %v7202_v58 = vsel %vm452_vm0, %v7135_v38, %v7130_v39  ;;  %v3927_v5 = vpack.c.bf16 %v7162_v31, %v7157_v63  ;;  %v2761_v4 = vmin.f32 %v7194_v15, 20.0 }
 0x593   : >> { %v6024_v22 = vpop.eup %6023  ;;  %3801 = vrot.lane.b32.xlu0 %v3762_v40, %s6114_s23  ;;  %v7197_v37 = vpack.c.bf16 %v2884_v24, %v2883_v14  ;;  %v2807_v3 = vadd.f32 2.0, %v6022_v47  ;;  %v7208_v28 = vadd.f32 %v6956_v17, %v2690_v52  ;;  %v7211_v9 = vunpack.c.h.bf16 %v3668_v13  ;;  %3100 = vrot.lane.b32.xlu1 %v3066_v25, %s6113_s13  ;;  %v3666_v17 = vld [vmem:[#allocation2 + $0x8] sm:$0xff]  }
 0x594   : >> { %v2808_v29 = vadd.f32 2.0, %v6024_v22  ;;  %v2837_v32 = vmul.f32 %v2821_v10, %v7110_v21  ;;  %v7214_v1 = vunpack.c.l.bf16 %v3668_v13  ;;  %v2838_v2 = vmul.f32 %v2822_v27, %v7113_v46 }
 0x595   : >> { %2911 = vst [vmem:[#allocation2 + $0x44] sm:$0xff] %v7197_v37  ;;  %v2823_v51 = vmul.f32 %v6022_v47, %v2807_v3  ;;  %v2791_v31 = vmul.f32 1.442695, %v2761_v4  ;;  %v2762_v53 = vmin.f32 %v7208_v28, 20.0  ;;  %v2984_v6 = vmul.f32 %v7135_v38, %v7183_v7 }
 0x596   : >> { %8758 = vst [vmem:[#allocation8_spill] sm:$0xff] %v7211_v9  ;;  %v2824_v63 = vmul.f32 %v6024_v22, %v2808_v29  ;;  %v2982_v21 = vmul.f32 %v7202_v58, %v7141_v44  ;;  %v2985_v10 = vmul.f32 %v7202_v58, %v7171_v60  ;;  %v2981_v46 = vmul.f32 %v7135_v38, %v7173_v30 }
 0x597   : >> { %v6026_v62 = vpop.eup %6025  ;;  %v2855_v18 = vadd.f32 2.0, %v2823_v51  ;;  %6029 = vpow2.f32 %v2791_v31  ;;  %v2793_v61 = vmul.f32 1.442695, %v2762_v53  ;;  %v7228_v24 = vunpack.i.h.bf16 %v6966_v57 }
 0x598   : >> { %v6028_v14 = vpop.eup %6027  ;;  %v2885_v34 = vmul.f32 %v6026_v62, %v2837_v32  ;;  %v2856_v20 = vadd.f32 2.0, %v2824_v63  ;;  %v3006_v40 = vpack.c.bf16 %v2985_v10, %v2982_v21  ;;  %v7230_v45 = vunpack.c.h.bf16 %v3666_v17 }
 0x599   : >> { %v2886_v27 = vmul.f32 %v6028_v14, %v2838_v2  ;;  %6031 = vrcp.f32 %v2855_v18  ;;  %v7235_v13 = vunpack.c.l.bf16 %v3666_v17  ;;  %v3005_v52 = vpack.c.bf16 %v2984_v6, %v2981_v46 }
 0x59a   : >> { %8759 = vst [vmem:[#allocation11_spill] sm:$0xff] %v7230_v45  ;;  %6033 = vrcp.f32 %v2856_v20  ;;  %3191 = vrot.lane.b32.xlu2 %v3006_v40, %s6111_s28  ;;  %v3738_v22 = vmul.f32 %v6985_v49, %v7211_v9  ;;  %v3291_v3 = vmul.f32 %v7228_v24, %v7214_v1  ;;  %v2839_v29 = vmul.f32 %v2823_v51, %v7139_v26 }
 0x59b   : >> { %3972 = vrot.lane.b32.xlu0 %v3927_v5, %s6110_s26  ;;  %v7233_v47 = vpack.c.bf16 %v2886_v27, %v2885_v34  ;;  %6035 = vpow2.f32 %v2793_v61  ;;  %3189 = vrot.lane.b32.xlu1 %v3005_v52, %s6111_s28  ;;  %v3735_v5 = vmul.f32 %v6985_v49, %v7230_v45  ;;  %v2840_v32 = vmul.f32 %v2824_v63, %v7145_v19 }
 0x59c   : >> { %v2986_v31 = vmul.f32 %v7130_v39, %v7214_v1  ;;  %v3288_v53 = vmul.f32 %v7228_v24, %v7235_v13  ;;  %v7253_v17 = vunpack.i.h.bf16 %v7081_v16  ;;  %v7256_v18 = vunpack.i.l.bf16 %v7081_v16  ;;  %v5807_v9 = vld [vmem:[#allocation2 + $0x48] sm:$0xf] }
 0x59d   : >> { %2912 = vst [vmem:[#allocation2 + $0x54] sm:$0xff] %v7233_v47  ;;  %v6030_v25 = vpop.eup %6029  ;;  %v3759_v6 = vpack.c.bf16 %v3738_v22, %v3735_v5  ;;  %v2983_v19 = vmul.f32 %v7130_v39, %v7235_v13  ;;  %v7261_v14 = vunpack.i.l.bf16 %v6966_v57  ;;  %v3906_v34 = vmul.f32 %v7125_v41, %v7021_v0 }
 0x59e   : >> { %v2809_v2 = vadd.f32 2.0, %v6030_v25  ;;  %v3312_v63 = vpack.c.bf16 %v3291_v3, %v3288_v53  ;;  %v3909_v16 = vmul.f32 %v7125_v41, %v7023_v11  ;;  %v7274_v57 = vsel %vm715_vm3, %v7256_v18, %v7253_v17 }
 0x59f   : >> { %v6032_v4 = vpop.eup %6031  ;;  %v3007_v61 = vpack.c.bf16 %v2986_v31, %v2983_v19  ;;  %v3443_v52 = vmul.f32 %v7274_v57, %v7171_v60  ;;  %v7283_v3 = vsel %vm627_vm1, %v7261_v14, %v7228_v24  ;;  %v7295_v31 = vunpack.c.h.bf16 %v7102_v54 }
 0x5a0   : >> { %v6034_v62 = vpop.eup %6033  ;;  %v2887_v21 = vmul.f32 %v6032_v4, %v2839_v29  ;;  %v2825_v10 = vmul.f32 %v6030_v25, %v2809_v2  ;;  %v3924_v25 = vpack.c.bf16 %v3909_v16, %v3906_v34  ;;  %v3290_v5 = vmul.f32 %v7283_v3, %v7171_v60 }
 0x5a1   : >> { %v6036_v26 = vpop.eup %6035  ;;  %v2888_v51 = vmul.f32 %v6034_v62, %v2840_v32  ;;  %v3440_v29 = vmul.f32 %v7274_v57, %v7141_v44  ;;  %v7290_v4 = vunpack.i.l.bf16 %v6980_v36  ;;  %v3287_v32 = vmul.f32 %v7283_v3, %v7141_v44 }
 0x5a2   : >> { %v2810_v20 = vadd.f32 2.0, %v6036_v26  ;;  %v2857_v27 = vadd.f32 2.0, %v2825_v10  ;;  %3348 = vrot.lane.b32.xlu2 %v3312_v63, %s6112_s12  ;;  %v2841_v62 = vmul.f32 %v2825_v10, %v7194_v15  ;;  %v3047_v36 = vmul.f32 %v7117_v35, %v7214_v1  ;;  %v2921_v63 = vld [vmem:[#allocation2 + $0x30] sm:$0xff] }
 0x5a3   : >> { %3795 = vrot.lane.b32.xlu0 %v3759_v6, %s6114_s23  ;;  %v7268_v46 = vpack.c.bf16 %v2888_v51, %v2887_v21  ;;  %3193 = vrot.lane.b32.xlu1 %v3007_v61, %s6111_s28  ;;  %8760 = vst [vmem:[#allocation10_spill] sm:$0xff] %v7290_v4  ;;  %v3464_v2 = vpack.c.bf16 %v3443_v52, %v3440_v29  ;;  %v7301_v6 = vunpack.c.h.bf16 %v7078_v43  ;;  %v7324_v16 = vunpack.i.l.bf16 %v7107_v59 }
 0x5a4   : >> { %v2826_v40 = vmul.f32 %v6036_v26, %v2810_v20  ;;  %6037 = vrcp.f32 %v2857_v27  ;;  %v3311_v60 = vpack.c.bf16 %v3290_v5, %v3287_v32  ;;  %v7308_v44 = vsel %vm743_vm4, %v7290_v4, %v6985_v49  ;;  %v2919_v20 = vld [vmem:[#allocation2 + $0x20] sm:$0xff]  ;;  %v5663_v0 = vld [vmem:[#allocation2 + $0x54] sm:$0xf0] }
 0x5a5   : >> { %2913 = vst [vmem:[#allocation2 + $0x64] sm:$0xff] %v7268_v46  ;;  %v3737_v15 = vmul.f32 %v7308_v44, %v7295_v31  ;;  %v3044_v10 = vmul.f32 %v7117_v35, %v7235_v13  ;;  %v3442_v19 = vmul.f32 %v7256_v18, %v7183_v7  ;;  %v3734_v49 = vmul.f32 %v7308_v44, %v7301_v6 }
 0x5a6   : >> { %v2858_v22 = vadd.f32 2.0, %v2826_v40  ;;  %8761 = vst [vmem:[#allocation7_spill] sm:$0xff] %v7308_v44  ;;  %v2842_v26 = vmul.f32 %v2826_v40, %v7208_v28  ;;  %v7321_v28 = vunpack.c.l.bf16 %v7128_v33  ;;  %v3439_v61 = vmul.f32 %v7256_v18, %v7173_v30 }
 0x5a7   : >> { %v3068_v27 = vpack.c.bf16 %v3047_v36, %v3044_v10  ;;  %v7330_v52 = vunpack.c.h.bf16 %v2921_v63  ;;  %v7335_v29 = vunpack.c.h.bf16 %v2919_v20  ;;  %v7338_v32 = vunpack.c.l.bf16 %v7102_v54 }
 0x5a8   : >> { %6039 = vrcp.f32 %v2858_v22  ;;  %v3758_v22 = vpack.c.bf16 %v3737_v15, %v3734_v49  ;;  %v3463_v5 = vpack.c.bf16 %v3442_v19, %v3439_v61  ;;  %v7345_v59 = vmul.f32 %v7290_v4, %v7321_v28 }
 0x5a9   : >> { %v3289_v54 = vmul.f32 %v7261_v14, %v7183_v7  ;;  %v7366_v36 = vunpack.c.l.bf16 %v7078_v43  ;;  %v3286_v7 = vmul.f32 %v7261_v14, %v7173_v30  ;;  %v3736_v43 = vmul.f32 %v7290_v4, %v7338_v32 }
 0x5aa   : >> { %v6038_v53 = vpop.eup %6037  ;;  %3499 = vrot.lane.b32.xlu2 %v3464_v2, %s6115_s15  ;;  %v3049_v10 = vmul.f32 %v7150_v23, %v7335_v29  ;;  %v3444_v49 = vmul.f32 %v7253_v17, %v7214_v1  ;;  %v7409_v1 = vunpack.c.l.bf16 %v2919_v20  ;;  %v7453_v8 = vunpack.c.l.bf16 %v7233_v47 }
 0x5ab   : >> { %3966 = vrot.lane.b32.xlu0 %v3924_v25, %s6110_s26  ;;  %v2889_v21 = vmul.f32 %v6038_v53, %v2841_v62  ;;  %3346 = vrot.lane.b32.xlu1 %v3311_v60, %s6112_s12  ;;  %v7333_v25 = vunpack.c.l.bf16 %v7166_v55  ;;  %v7359_v62 = vmul.f32 %v7324_v16, %v7321_v28  ;;  %v7362_v60 = vunpack.c.h.bf16 %v7128_v33 }
 0x5ac   : >> { %v7377_v33 = vunpack.c.h.bf16 %v7166_v55  ;;  %v3310_v19 = vpack.c.bf16 %v3289_v54, %v3286_v7  ;;  %v3441_v55 = vmul.f32 %v7253_v17, %v7235_v13  ;;  %v7406_v7 = vsel %vm655_vm5, %v7324_v16, %v7125_v41  ;;  %v5809_v54 = vld [vmem:[#allocation2 + $0x68] sm:$0xf] }
 0x5ad   : >> { %v7349_v2 = vmul.f32 %v7290_v4, %v7333_v25  ;;  %v7353_v53 = vmul.f32 %v7324_v16, %v7333_v25  ;;  %v5666_v50 = vor.u32 %v5807_v9, %v5663_v0  ;;  %v7462_v12 = vmul.f32 %v7406_v7, %v7301_v6 }
 0x5ae   : >> { %v6040_v51 = vpop.eup %6039  ;;  %v7389_v30 = vmul.f32 %v7308_v44, %v7377_v33  ;;  %v3465_v11 = vpack.c.bf16 %v3444_v49, %v3441_v55  ;;  %v7435_v55 = vunpack.c.l.bf16 %v7197_v37  ;;  %v3048_v49 = vmul.f32 %v7121_v48, %v7409_v1 }
 0x5af   : >> { %v2890_v34 = vmul.f32 %v6040_v51, %v2842_v26  ;;  %v2922_v51 = vld [vmem:[#allocation2 + $0x38] sm:$0xf]  ;;  %8766 = vst [vmem:[#allocation12_spill] sm:$0xff] %v7462_v12  ;;  %v3293_v12 = vmul.f32 %v7283_v3, %v7335_v29 }
 0x5b0   : >> { %v7470_v0 = vmul.f32 %v7290_v4, %v7435_v55 }
 0x5b1   : >> { %v7328_v40 = vpack.c.bf16 %v2890_v34, %v2889_v21  ;;  %v3052_v21 = vmul.f32 %v7150_v23, %v7330_v52  ;;  %v7385_v34 = vmul.f32 %v7308_v44, %v7362_v60 }
 0x5b2   : >> { %3793 = vrot.lane.b32.xlu2 %v3758_v22, %s6114_s23  ;;  %v7397_v22 = vunpack.c.l.bf16 %v2922_v51 }
 0x5b3   : >> { %3104 = vrot.lane.b32.xlu0 %v3068_v27, %s6113_s13  ;;  %2914 = vst [vmem:[#allocation2 + $0x74] sm:$0xff] %v7328_v40  ;;  %3497 = vrot.lane.b32.xlu1 %v3463_v5, %s6115_s15  ;;  %v3733_v27 = vmul.f32 %v7290_v4, %v7366_v36  ;;  %v3070_v61 = vpack.c.bf16 %v3052_v21, %v3049_v10  ;;  %v7399_v5 = vunpack.c.l.bf16 %v2921_v63  ;;  %v5669_v21 = vld [vmem:[#allocation2 + $0x64] sm:$0xf] }
 0x5b4   : >> { %v7414_v63 = vmul.f32 %v7406_v7, %v7362_v60  ;;  %v7418_v10 = vmul.f32 %v7406_v7, %v7377_v33 }
 0x5b5   : >> { %v3757_v13 = vpack.c.bf16 %v3736_v43, %v3733_v27  ;;  %v7421_v43 = vunpack.c.l.bf16 %v7169_v42  ;;  %v2990_v42 = vmul.f32 %v7135_v38, %v7399_v5  ;;  %v5969_v27 = vpop.permute.xlu2 %5968 }
 0x5b6   : >> { %8762 = vst [vmem:[#allocation6_spill] sm:$0xff] %v7414_v63  ;;  %v7472_v9 = vunpack.i.l.bf16 %v5969_v27 }
 0x5b7   : >> { %8763 = vst [vmem:[#allocation14_spill] sm:$0xff] %v7418_v10  ;;  %v5655_v10 = vld [vmem:[#allocation2 + $0x34] sm:$0xf0] }
 0x5ba   : >> { %3108 = vrot.lane.b32.xlu2 %v3070_v61, %s6113_s13  ;;  %v5810_v51 = vld [vmem:[#allocation2 + $0x70] sm:$0xf0]  ;;  %v5671_v26 = vld [vmem:[#allocation2 + $0x74] sm:$0xf0]  ;;  %v7428_v61 = vmul.f32 %v7117_v35, %v7397_v22 }
 0x5bb   : >> { %3344 = vrot.lane.b32.xlu0 %v3310_v19, %s6112_s12  ;;  %v5670_v15 = vor.u32 %v5810_v51, %v5669_v21  ;;  %3791 = vrot.lane.b32.xlu1 %v3757_v13, %s6114_s23  ;;  %v5674_v20 = vor.u32 %v5809_v54, %v5671_v26  ;;  %v5808_v19 = vld [vmem:[#allocation2 + $0x50] sm:$0xf0]  ;;  %v3051_v21 = vmul.f32 %v7121_v48, %v7399_v5  ;;  %v5661_v26 = vld [vmem:[#allocation2 + $0x44] sm:$0xf]  ;;  %v7440_v13 = vunpack.c.h.bf16 %v7197_v37 }
 0x5bc   : >> { %v5806_v54 = vld [vmem:[#allocation2 + $0x30] sm:$0xf0]  ;;  %v7448_v51 = vmul.f32 %v7324_v16, %v7338_v32  ;;  %v5662_v45 = vor.u32 %v5808_v19, %v5661_v26  ;;  %v7456_v37 = vunpack.c.h.bf16 %v7233_v47  ;;  %v7466_v19 = vmul.f32 %v7406_v7, %v7295_v31 }
 0x5bd   : >> { %3637 = vmatpush.bf16.msrb.mxu0 %v5670_v15  ;;  %3651 = vmatpush.bf16.msrb.mxu1 %v5674_v20  ;;  %v7444_v15 = vmul.f32 %v7324_v16, %v7366_v36  ;;  %v2987_v20 = vmul.f32 %v7135_v38, %v7409_v1  ;;  %v3069_v26 = vpack.c.bf16 %v3051_v21, %v3048_v49  ;;  %v5805_v21 = vld [vmem:[#allocation2 + $0x28] sm:$0xf] }
 0x5be   : >> { %8765 = vst [vmem:[#allocation13_spill] sm:$0xff] %v7448_v51  ;;  %v5654_v63 = vor.u32 %v5806_v54, %v5653_v56  ;;  %v7477_v47 = vmul.f32 %v7290_v4, %v7453_v8  ;;  %v7485_v56 = vmul.f32 %v7308_v44, %v7440_v13  ;;  %v7502_v49 = vmul.f32 %v7406_v7, %v7456_v37  ;;  %v5647_v51 = vld [vmem:[#allocation2 + $0x14] sm:$0xf0]  ;;  %v5803_v4 = vld [vmem:[#allocation2 + $0x8] sm:$0xf] }
 0x5bf   : >> { %8764 = vst [vmem:[#allocation22_spill] sm:$0xff] %v7444_v15  ;;  %v3008_v23 = vpack.c.bf16 %v2990_v42, %v2987_v20  ;;  %v7490_v42 = vmul.f32 %v7324_v16, %v7453_v8  ;;  %v5658_v54 = vor.u32 %v5805_v21, %v5655_v10  ;;  %v5804_v20 = vld [vmem:[#allocation2 + $0x10] sm:$0xf0]  ;;  %v3296_v21 = vmul.f32 %v7283_v3, %v7330_v52 }
 0x5c0   : >> { %8767 = vst [vmem:[#allocation16_spill] sm:$0xff] %v7466_v19  ;;  %v7527_v15 = vmul.f32 %v7472_v9, %v7453_v8  ;;  %v2989_v10 = vmul.f32 %v7130_v39, %v7421_v43 }
 0x5c1   : >> { %3638 = vmatpush.bf16.msrb.mxu0 %v5662_v45  ;;  %3652 = vmatpush.bf16.msrb.mxu1 %v5666_v50  ;;  %v7481_v45 = vmul.f32 %v7324_v16, %v7435_v55  ;;  %v7494_v50 = vmul.f32 %v7308_v44, %v7456_v37  ;;  %8770 = vst [vmem:[#allocation19_spill] sm:$0xff] %v7502_v49  ;;  %v5974_v49 = vpop.permute.xlu0 %5973 }
 0x5c2   : >> { %3195 = vrot.lane.b32.xlu2 %v3008_v23, %s6111_s28  ;;  %v3050_v23 = vmul.f32 %v7117_v35, %v7421_v43  ;;  %v2992_v44 = vmul.f32 %v7130_v39, %v7397_v22  ;;  %8772 = vst [vmem:[#allocation23_spill] sm:$0xff] %v7527_v15  ;;  %v3295_v15 = vmul.f32 %v7261_v14, %v7399_v5 }
 0x5c3   : >> { %3501 = vrot.lane.b32.xlu0 %v3465_v11, %s6115_s15  ;;  %8768 = vst [vmem:[#allocation15_spill] sm:$0xff] %v7481_v45  ;;  %v7498_v11 = vmul.f32 %v7406_v7, %v7440_v13  ;;  %3106 = vrot.lane.b32.xlu1 %v3069_v26, %s6113_s13  ;;  %v5645_v26 = vld [vmem:[#allocation2 + $0x4] sm:$0xf]  ;;  %v7540_v45 = vunpack.i.h.bf16 %v5969_v27  ;;  %v7568_v27 = vmul.f32 %v7472_v9, %v7366_v36 }
 0x5c4   : >> { %v3071_v38 = vpack.c.bf16 %v7428_v61, %v3050_v23  ;;  %v5646_v41 = vor.u32 %v5804_v20, %v5645_v26  ;;  %v3010_v61 = vpack.c.bf16 %v2992_v44, %v2989_v10  ;;  %v7547_v23 = vmul.f32 %v7472_v9, %v7321_v28 }
 0x5c5   : >> { %8769 = vst [vmem:[#allocation17_spill] sm:$0xff] %v7498_v11  ;;  %3639 = vmatpush.bf16.msrb.mxu0 %v5654_v63  ;;  %3653 = vmatpush.bf16.msrb.mxu1 %v5658_v54  ;;  %v7523_v63 = vmul.f32 %v7472_v9, %v7435_v55  ;;  %v5650_v54 = vor.u32 %v5803_v4, %v5647_v51  ;;  %v7550_v20 = vunpack.i.h.bf16 %v5974_v49  ;;  %v7552_v26 = vunpack.i.l.bf16 %v5974_v49 }
 0x5c6   : >> { %v7538_v11 = vmul.f32 %v7472_v9, %v7333_v25  ;;  %8774 = vst [vmem:[#allocation29_spill] sm:$0xff] %v7540_v45  ;;  %v2991_v4 = vmul.f32 %v7202_v58, %v7330_v52  ;;  %v3314_v51 = vpack.c.bf16 %v3296_v21, %v3293_v12  ;;  %v3297_v12 = vmul.f32 %v7228_v24, %v7397_v22 }
 0x5c7   : >> { %8771 = vst [vmem:[#allocation18_spill] sm:$0xff] %v7523_v63  ;;  %v7564_v44 = vsel %vm509_vm8, %v7472_v9, %v7540_v45  ;;  %v7572_v49 = vmul.f32 %v7472_v9, %v7338_v32  ;;  %v3448_v21 = vmul.f32 %v7256_v18, %v7399_v5  ;;  %v7625_v5 = vsel %vm565_vm6, %v7552_v26, %v7550_v20 }
 0x5c8   : >> { %8773 = vst [vmem:[#allocation24_spill] sm:$0xff] %v7538_v11  ;;  %v7596_v19 = vmul.f32 %v7564_v44, %v7440_v13  ;;  %v7602_v11 = vmul.f32 %v7564_v44, %v7301_v6  ;;  %v7606_v63 = vmul.f32 %v7564_v44, %v7295_v31 }
 0x5c9   : >> { %3640 = vmatpush.bf16.msrb.mxu0 %v5646_v41  ;;  %3654 = vmatpush.bf16.msrb.mxu1 %v5650_v54  ;;  %8775 = vst [vmem:[#allocation30_spill] sm:$0xff] %v7547_v23  ;;  %v2988_v41 = vmul.f32 %v7202_v58, %v7335_v29  ;;  %v7578_v54 = vmul.f32 %v7564_v44, %v7362_v60 }
 0x5ca   : >> { %3199 = vrot.lane.b32.xlu2 %v3010_v61, %s6111_s28  ;;  %8776 = vst [vmem:[#allocation31_spill] sm:$0xff] %v7568_v27  ;;  %v7582_v61 = vmul.f32 %v7564_v44, %v7377_v33  ;;  %v3449_v27 = vmul.f32 %v7274_v57, %v7330_v52  ;;  %v7629_v52 = vmul.f32 %v7552_v26, %v7321_v28 }
 0x5cb   : >> { %3110 = vrot.lane.b32.xlu0 %v3071_v38, %s6113_s13  ;;  %3352 = vrot.lane.b32.xlu1 %v3314_v51, %s6112_s12  ;;  %8777 = vst [vmem:[#allocation32_spill] sm:$0xff] %v7572_v49  ;;  %v3009_v10 = vpack.c.bf16 %v2991_v4, %v2988_v41  ;;  %v3445_v51 = vmul.f32 %v7256_v18, %v7409_v1 }
 0x5cc   : >> { %8778 = vst [vmem:[#allocation33_spill] sm:$0xff] %v7578_v54  ;;  %v3294_v38 = vmul.f32 %v7228_v24, %v7421_v43  ;;  %v7590_v4 = vmul.f32 %v7564_v44, %v7456_v37  ;;  %v7620_v54 = vmul.f32 %v7552_v26, %v7435_v55  ;;  %v7642_v55 = vmul.f32 %v7552_v26, %v7338_v32 }
 0x5cd   : >> { %v3466_v41 = vpack.c.bf16 %v3448_v21, %v3445_v51  ;;  %8779 = vst [vmem:[#allocation34_spill] sm:$0xff] %v7629_v52  ;;  %v7650_v28 = vmul.f32 %v7625_v5, %v7377_v33  ;;  %v7664_v32 = vmul.f32 %v7625_v5, %v7295_v31  ;;  %v3446_v21 = vmul.f32 %v7274_v57, %v7335_v29 }
 0x5ce   : >> { %v3315_v45 = vpack.c.bf16 %v3297_v12, %v3294_v38  ;;  %v7633_v38 = vmul.f32 %v7552_v26, %v7333_v25  ;;  %8782 = vst [vmem:[#allocation37_spill] sm:$0xff] %v7642_v55  ;;  %v7646_v12 = vmul.f32 %v7625_v5, %v7362_v60  ;;  %v7654_v25 = vmul.f32 %v7552_v26, %v7453_v8 }
 0x5cf   : >> { %8784 = vst [vmem:[#allocation39_spill] sm:$0xff] %v7650_v28  ;;  %v3292_v60 = vmul.f32 %v7261_v14, %v7409_v1  ;;  %v3450_v1 = vmul.f32 %v7253_v17, %v7397_v22  ;;  %v8787_v33 = vpack.c.bf16 %v7349_v2, %v7345_v59  ;;  %v7688_v29 = vmul.f32 %v7625_v5, %v7440_v13  ;;  %v2923_v2 = vld [vmem:[#allocation2 + $0x40] sm:$0xff]  ;;  %v8796_v28 = vld [vmem:[#allocation7_spill] sm:$0xff] }
 0x5d0   : >> { %8780 = vst [vmem:[#allocation35_spill] sm:$0xff] %v7633_v38  ;;  %v3715_v13 = vunpack.c.l.bf16 %v7268_v46  ;;  %v3716_v51 = vunpack.c.h.bf16 %v7268_v46  ;;  %v8788_v8 = vpack.c.bf16 %v7389_v30, %v7385_v34  ;;  %v7747_v23 = vunpack.c.h.bf16 %v2923_v2  ;;  %v2930_v38 = vld [vmem:[#allocation2 + $0x78] sm:$0xf] }
 0x5d1   : >> { %8783 = vst [vmem:[#allocation38_spill] sm:$0xff] %v7646_v12  ;;  %v3313_v31 = vpack.c.bf16 %v3295_v15, %v3292_v60  ;;  %v7692_v15 = vmul.f32 %v7625_v5, %v7456_v37  ;;  %v3447_v60 = vmul.f32 %v7253_v17, %v7421_v43  ;;  %v7707_v43 = vunpack.c.l.bf16 %v2923_v2  ;;  %v8795_v12 = vld [vmem:[#allocation9_spill] sm:$0xff] }
 0x5d2   : >> { %3354 = vrot.lane.b32.xlu2 %v3315_v45, %s6112_s12  ;;  %v7638_v45 = vmul.f32 %v7552_v26, %v7366_v36  ;;  %8786 = vst [vmem:[#allocation41_spill] sm:$0xff] %v7664_v32  ;;  %v7723_v46 = vmul.f32 %v7472_v9, %v3715_v13  ;;  %v8792_v32 = vld [vmem:[#allocation14_spill] sm:$0xff]  ;;  %v7762_v52 = vmul.f32 %v8796_v28, %v3716_v51 }
 0x5d3   : >> { %3197 = vrot.lane.b32.xlu0 %v3009_v10, %s6111_s28  ;;  %3503 = vrot.lane.b32.xlu1 %v3466_v41, %s6115_s15  ;;  %v7660_v10 = vmul.f32 %v7625_v5, %v7301_v6  ;;  %v3467_v41 = vpack.c.bf16 %v3449_v27, %v3446_v21  ;;  %v2926_v27 = vld [vmem:[#allocation2 + $0x58] sm:$0xf]  ;;  %v2924_v21 = vld [vmem:[#allocation2 + $0x48] sm:$0xf]  ;;  %v8791_v6 = vld [vmem:[#allocation4_spill] sm:$0xff] }
 0x5d4   : >> { %8781 = vst [vmem:[#allocation36_spill] sm:$0xff] %v7638_v45  ;;  %v7698_v59 = vunpack.c.l.bf16 %v2926_v27  ;;  %v8789_v27 = vpack.c.bf16 %v7353_v53, %v7359_v62  ;;  %v3718_v53 = vunpack.c.l.bf16 %v7328_v40  ;;  %v2993_v49 = vmul.f32 %v8791_v6, %v7707_v43  ;;  %v8793_v45 = vld [vmem:[#allocation6_spill] sm:$0xff] }
 0x5d5   : >> { %8785 = vst [vmem:[#allocation40_spill] sm:$0xff] %v7660_v10  ;;  %v8794_v55 = vpack.c.bf16 %v8792_v32, %v8793_v45 }
 0x5da   : >> { %3505 = vrot.lane.b32.xlu2 %v3467_v41, %s6115_s15  ;;  %v3468_v41 = vpack.c.bf16 %v3450_v1, %v3447_v60  ;;  %v3059_v1 = vmul.f32 %v7117_v35, %v7698_v59  ;;  %v7720_v60 = vmul.f32 %v7324_v16, %v3715_v13 }
 0x5db   : >> { %3350 = vrot.lane.b32.xlu0 %v3313_v31, %s6112_s12  ;;  %3797 = vrot.lane.b32.xlu1 %v8787_v33, %s6114_s23  ;;  %v2925_v31 = vld [vmem:[#allocation2 + $0x50] sm:$0xff]  ;;  %v7702_v33 = vunpack.c.l.bf16 %v2924_v21  ;;  %v7726_v21 = vmul.f32 %v7406_v7, %v3716_v51 }
 0x5dc   : >> { %v7704_v37 = vunpack.c.l.bf16 %v2925_v31  ;;  %v7730_v30 = vunpack.c.h.bf16 %v2925_v31 }
 0x5dd   : >> { %v3056_v34 = vmul.f32 %v7117_v35, %v7702_v33 }
 0x5de   : >> { %v2996_v31 = vmul.f32 %v8791_v6, %v7704_v37  ;;  %v3058_v2 = vmul.f32 %v8795_v12, %v7730_v30 }
 0x5df   : >> { %v3074_v62 = vpack.c.bf16 %v3059_v1, %v3056_v34  ;;  %v2997_v34 = vmul.f32 %v7202_v58, %v7730_v30 }
 0x5e2   : >> { %3799 = vrot.lane.b32.xlu2 %v8788_v8, %s6114_s23  ;;  %v3057_v8 = vmul.f32 %v7121_v48, %v7704_v37 }
 0x5e3   : >> { %3507 = vrot.lane.b32.xlu0 %v3468_v41, %s6115_s15  ;;  %3956 = vrot.lane.b32.xlu1 %v8789_v27, %s6110_s26  ;;  %v3054_v41 = vmul.f32 %v7121_v48, %v7707_v43  ;;  %v8790_v27 = vld [vmem:[#allocation10_spill] sm:$0xff] }
 0x5e4   : >> { %v7738_v36 = vmul.f32 %v8790_v27, %v3715_v13  ;;  %v7741_v22 = vmul.f32 %v8790_v27, %v3718_v53  ;;  %v3719_v27 = vunpack.c.h.bf16 %v7328_v40 }
 0x5e5   : >> { %v3072_v1 = vpack.c.bf16 %v3057_v8, %v3054_v41  ;;  %v7765_v8 = vmul.f32 %v7552_v26, %v3715_v13  ;;  %v7774_v41 = vmul.f32 %v7324_v16, %v3718_v53  ;;  %v7786_v13 = vmul.f32 %v7552_v26, %v3718_v53 }
 0x5e6   : >> { %v7777_v45 = vmul.f32 %v8796_v28, %v3719_v27  ;;  %v7783_v32 = vmul.f32 %v7406_v7, %v3719_v27  ;;  %v7789_v10 = vmul.f32 %v7564_v44, %v3719_v27  ;;  %v7795_v16 = vmul.f32 %v7625_v5, %v3719_v27  ;;  %v7813_v28 = vpop.permute.xlu0 %3813 }
 0x5e7   : >> { %v3011_v27 = vpack.c.bf16 %v2996_v31, %v2993_v49  ;;  %8798 = vst [vmem:[#allocation4_spill] sm:$0xff] %v7813_v28  ;;  %v2994_v7 = vmul.f32 %v7202_v58, %v7747_v23  ;;  %v2998_v49 = vmul.f32 %v7130_v39, %v7698_v59  ;;  %v3299_v31 = vmul.f32 %v7283_v3, %v7747_v23 }
 0x5e9   : >> { %v3012_v26 = vpack.c.bf16 %v2997_v34, %v2994_v7  ;;  %v2995_v34 = vmul.f32 %v7130_v39, %v7702_v33  ;;  %v3300_v7 = vmul.f32 %v7228_v24, %v7702_v33 }
 0x5ea   : >> { %3958 = vrot.lane.b32.xlu2 %v8794_v55, %s6110_s26  ;;  %v7771_v40 = vpop.permute.xlu2 %3102  ;;  %v7780_v55 = vmul.f32 %v7472_v9, %v3718_v53  ;;  %v3456_v53 = vmul.f32 %v7253_v17, %v7698_v59 }
 0x5eb   : >> { %3116 = vrot.lane.b32.xlu0 %v3074_v62, %s6113_s13  ;;  %v7768_v62 = vmul.f32 %v7564_v44, %v3716_v51  ;;  %3112 = vrot.lane.b32.xlu1 %v3072_v1, %s6113_s13  ;;  %v7792_v1 = vmul.f32 %v7625_v5, %v3716_v51  ;;  %v3055_v44 = vmul.f32 %v8795_v12, %v7747_v23 }
 0x5ec   : >> { %v3302_v51 = vmul.f32 %v7283_v3, %v7730_v30 }
 0x5ed   : >> { %8797 = vst [vmem:[#allocation10_spill] sm:$0xff] %v7792_v1  ;;  %v3073_v9 = vpack.c.bf16 %v3058_v2, %v3055_v44  ;;  %v3303_v2 = vmul.f32 %v7228_v24, %v7698_v59  ;;  %v3013_v44 = vpack.c.bf16 %v2998_v49, %v2995_v34  ;;  %v3453_v49 = vmul.f32 %v7253_v17, %v7702_v33 }
 0x5ee   : >> { %v3298_v34 = vmul.f32 %v7261_v14, %v7707_v43  ;;  %v7851_v59 = vunpack.c.l.bf16 %v2930_v38 }
 0x5f2   : >> { %3114 = vrot.lane.b32.xlu2 %v3073_v9, %s6113_s13  ;;  %v3317_v9 = vpack.c.bf16 %v3302_v51, %v3299_v31  ;;  %v3301_v51 = vmul.f32 %v7261_v14, %v7704_v37  ;;  %v3454_v31 = vmul.f32 %v7256_v18, %v7704_v37  ;;  %v3065_v37 = vmul.f32 %v7117_v35, %v7851_v59 }
 0x5f3   : >> { %3201 = vrot.lane.b32.xlu0 %v3011_v27, %s6111_s28  ;;  %3203 = vrot.lane.b32.xlu1 %v3012_v26, %s6111_s28  ;;  %v7835_v26 = vpop.permute.xlu0 %3807  ;;  %v3318_v27 = vpack.c.bf16 %v3303_v2, %v3300_v7  ;;  %v2928_v2 = vld [vmem:[#allocation2 + $0x68] sm:$0xf]  ;;  %v3451_v7 = vmul.f32 %v7256_v18, %v7707_v43  ;;  %v3455_v43 = vmul.f32 %v7274_v57, %v7730_v30 }
 0x5f4   : >> { %v7822_v5 = vpop.permute.xlu2 %3191  ;;  %8799 = vst [vmem:[#allocation14_spill] sm:$0xff] %v7835_v26  ;;  %v8804_v30 = vld [vmem:[#allocation5_spill] sm:$0xff] }
 0x5f5   : >> { %v3469_v26 = vpack.c.bf16 %v3454_v31, %v3451_v7  ;;  %v3452_v31 = vmul.f32 %v7274_v57, %v7747_v23 }
 0x5fa   : >> { %3205 = vrot.lane.b32.xlu2 %v3013_v44, %s6111_s28  ;;  %v3316_v44 = vpack.c.bf16 %v3301_v51, %v3298_v34  ;;  %v3470_v34 = vpack.c.bf16 %v3455_v43, %v3452_v31  ;;  %v2929_v43 = vld [vmem:[#allocation2 + $0x70] sm:$0xff] }
 0x5fb   : >> { %3358 = vrot.lane.b32.xlu0 %v3317_v9, %s6112_s12  ;;  %3360 = vrot.lane.b32.xlu1 %v3318_v27, %s6112_s12  ;;  %v3471_v9 = vpack.c.bf16 %v3456_v53, %v3453_v49  ;;  %v7856_v27 = vunpack.c.l.bf16 %v2928_v2 }
 0x5fc   : >> { %v7841_v28 = vpop.permute.xlu2 %3348 }
 0x5fd   : >> { %8800 = vst [vmem:[#allocation6_spill] sm:$0xff] %v7841_v28  ;;  %v3062_v53 = vmul.f32 %v7117_v35, %v7856_v27  ;;  %v8806_v35 = vld [vmem:[#allocation21_spill] sm:$0xff] }
 0x5ff   : >> { %v3077_v2 = vpack.c.bf16 %v3065_v37, %v3062_v53 }
 0x602   : >> { %3356 = vrot.lane.b32.xlu2 %v3316_v44, %s6112_s12 }
 0x603   : >> { %3513 = vrot.lane.b32.xlu0 %v3471_v9, %s6115_s15  ;;  %3509 = vrot.lane.b32.xlu1 %v3469_v26, %s6115_s15  ;;  %v8805_v9 = vld [vmem:[#allocation20_spill] sm:$0xff] }
 0x604   : >> { %v7864_v38 = vpop.permute.xlu2 %3499  ;;  %v3900_v7 = vmul.f32 %v8805_v9, %v8804_v30  ;;  %v3903_v44 = vmul.f32 %v8805_v9, %v8806_v35 }
 0x605   : >> { %v7859_v33 = vpop.permute.xlu0 %3801  ;;  %v3101_v51 = vpop.permute.xlu1 %3100 }
 0x606   : >> { %8801 = vst [vmem:[#allocation9_spill] sm:$0xff] %v7859_v33  ;;  %v7872_v49 = vsel %vm509_vm8, %v3101_v51, %v7771_v40  ;;  %v8807_v51 = vpack.c.bf16 %v7477_v47, %v7470_v0  ;;  %v3921_v31 = vpack.c.bf16 %v3903_v44, %v3900_v7  ;;  %v8809_v33 = vpack.c.bf16 %v7494_v50, %v7485_v56 }
 0x607   : >> { %8802 = vst [vmem:[#allocation7_spill] sm:$0xff] %v7872_v49  ;;  %v3004_v47 = vmul.f32 %v7130_v39, %v7851_v59 }
 0x60a   : >> { %3511 = vrot.lane.b32.xlu2 %v3470_v34, %s6115_s15  ;;  %v7895_v34 = vunpack.c.l.bf16 %v2929_v43 }
 0x60b   : >> { %3122 = vrot.lane.b32.xlu0 %v3077_v2, %s6113_s13  ;;  %3803 = vrot.lane.b32.xlu1 %v8807_v51, %s6114_s23  ;;  %v2927_v2 = vld [vmem:[#allocation2 + $0x60] sm:$0xff]  ;;  %v8810_v51 = vld [vmem:[#allocation15_spill] sm:$0xff] }
 0x60c   : >> { %v7888_v23 = vpop.permute.xlu2 %3793  ;;  %v7909_v7 = vunpack.c.l.bf16 %v2927_v2  ;;  %v3063_v56 = vmul.f32 %v7121_v48, %v7895_v34  ;;  %v7926_v28 = vunpack.c.h.bf16 %v2927_v2 }
 0x60d   : >> { %v7878_v26 = vpop.permute.xlu0 %3972  ;;  %v3190_v37 = vpop.permute.xlu1 %3189 }
 0x60e   : >> { %8803 = vst [vmem:[#allocation42_spill] sm:$0xff] %v7878_v26  ;;  %v7892_v53 = vsel %vm565_vm6, %v3190_v37, %v7822_v5  ;;  %v8811_v37 = vpack.c.bf16 %v7490_v42, %v8810_v51  ;;  %v3060_v42 = vmul.f32 %v7121_v48, %v7909_v7  ;;  %v7923_v51 = vunpack.c.h.bf16 %v2929_v43 }
 0x60f   : >> { %8808 = vst [vmem:[#allocation5_spill] sm:$0xff] %v7892_v53  ;;  %v8813_v53 = vld [vmem:[#allocation17_spill] sm:$0xff] }
 0x610   : >> { %v3064_v2 = vmul.f32 %v8795_v12, %v7923_v51 }
 0x612   : >> { %3805 = vrot.lane.b32.xlu2 %v8809_v33, %s6114_s23 }
 0x613   : >> { %3960 = vrot.lane.b32.xlu0 %v3921_v31, %s6110_s26  ;;  %3962 = vrot.lane.b32.xlu1 %v8811_v37, %s6110_s26  ;;  %v3001_v31 = vmul.f32 %v7130_v39, %v7856_v27  ;;  %v3075_v37 = vpack.c.bf16 %v3063_v56, %v3060_v42  ;;  %v8812_v39 = vld [vmem:[#allocation19_spill] sm:$0xff]  ;;  %v2999_v42 = vmul.f32 %v8791_v6, %v7909_v7 }
 0x614   : >> { %v7911_v44 = vpop.permute.xlu2 %3108  ;;  %v8814_v49 = vpack.c.bf16 %v8812_v39, %v8813_v53  ;;  %v3061_v53 = vmul.f32 %v8795_v12, %v7926_v28 }
 0x615   : >> { %v7901_v0 = vpop.permute.xlu0 %3795  ;;  %v3194_v26 = vpop.permute.xlu1 %3193  ;;  %v3016_v33 = vpack.c.bf16 %v3004_v47, %v3001_v31  ;;  %v8818_v31 = vld [vmem:[#allocation26_spill] sm:$0xff] }
 0x616   : >> { %v7919_v50 = vsel %vm565_vm6, %v7822_v5, %v3194_v26  ;;  %v8816_v5 = vld [vmem:[#allocation25_spill] sm:$0xff]  ;;  %v3076_v39 = vpack.c.bf16 %v3064_v2, %v3061_v53 }
 0x617   : >> { %v8817_v26 = vld [vmem:[#allocation29_spill] sm:$0xff] }
 0x618   : >> { %v4065_v47 = vmul.f32 %v8817_v26, %v8816_v5  ;;  %v4068_v48 = vmul.f32 %v8817_v26, %v8818_v31 }
 0x61a   : >> { %3964 = vrot.lane.b32.xlu2 %v8814_v49, %s6110_s26  ;;  %v3002_v49 = vmul.f32 %v8791_v6, %v7895_v34  ;;  %v3003_v6 = vmul.f32 %v7202_v58, %v7923_v51 }
 0x61b   : >> { %3211 = vrot.lane.b32.xlu0 %v3016_v33, %s6111_s28  ;;  %3118 = vrot.lane.b32.xlu1 %v3075_v37, %s6113_s13  ;;  %v4080_v33 = vpack.c.bf16 %v4068_v48, %v4065_v47  ;;  %v3305_v47 = vmul.f32 %v7283_v3, %v7926_v28 }
 0x61c   : >> { %v7939_v43 = vpop.permute.xlu2 %3195  ;;  %v3014_v37 = vpack.c.bf16 %v3002_v49, %v2999_v42  ;;  %v3000_v49 = vmul.f32 %v7202_v58, %v7926_v28 }
 0x61d   : >> { %v7932_v1 = vpop.permute.xlu0 %3966  ;;  %8819 = vst [vmem:[#allocation21_spill] sm:$0xff] %v7939_v43  ;;  %v7943_v56 = vpop.permute.xlu1 %3346 }
 0x61e   : >> { %8815 = vst [vmem:[#allocation20_spill] sm:$0xff] %v7932_v1 }
 0x61f   : >> { %8820 = vst [vmem:[#allocation15_spill] sm:$0xff] %v7943_v56  ;;  %v3308_v56 = vmul.f32 %v7283_v3, %v7923_v51  ;;  %v8823_v3 = vld [vmem:[#allocation13_spill] sm:$0xff] }
 0x621   : >> { %v3320_v53 = vpack.c.bf16 %v3308_v56, %v3305_v47 }
 0x622   : >> { %3120 = vrot.lane.b32.xlu2 %v3076_v39, %s6113_s13  ;;  %v8824_v39 = vld [vmem:[#allocation22_spill] sm:$0xff] }
 0x623   : >> { %4125 = vrot.lane.b32.xlu0 %v4080_v33, %s6109_s25  ;;  %3207 = vrot.lane.b32.xlu1 %v3014_v37, %s6111_s28  ;;  %v3015_v33 = vpack.c.bf16 %v3003_v6, %v3000_v49  ;;  %v8825_v37 = vpack.c.bf16 %v8823_v3, %v8824_v39  ;;  %v8829_v49 = vld [vmem:[#allocation16_spill] sm:$0xff]  ;;  %v3462_v39 = vmul.f32 %v7253_v17, %v7851_v59 }
 0x624   : >> { %v3200_v12 = vpop.permute.xlu2 %3199 }
 0x625   : >> { %v3105_v1 = vpop.permute.xlu0 %3104  ;;  %v3498_v48 = vpop.permute.xlu1 %3497 }
 0x626   : >> { %v7958_v43 = vsel %vm509_vm8, %v7771_v40, %v3105_v1  ;;  %v7966_v2 = vsel %vm743_vm4, %v3498_v48, %v7864_v38  ;;  %v8822_v1 = vld [vmem:[#allocation8_spill] sm:$0xff] }
 0x627   : >> { %8821 = vst [vmem:[#allocation19_spill] sm:$0xff] %v7966_v2  ;;  %v3897_v42 = vmul.f32 %v8805_v9, %v8822_v1  ;;  %v8827_v2 = vld [vmem:[#allocation11_spill] sm:$0xff] }
 0x628   : >> { %v3894_v58 = vmul.f32 %v8805_v9, %v8827_v2  ;;  %v8833_v9 = vld [vmem:[#allocation18_spill] sm:$0xff] }
 0x62a   : >> { %3209 = vrot.lane.b32.xlu2 %v3015_v33, %s6111_s28  ;;  %v3918_v47 = vpack.c.bf16 %v3897_v42, %v3894_v58  ;;  %v3307_v58 = vmul.f32 %v7261_v14, %v7895_v34  ;;  %s2896_s28 = scalar_lea.vmem %s8631_s8, %s5600_s21 }
 0x62b   : >> { %3364 = vrot.lane.b32.xlu0 %v3320_v53, %s6112_s12  ;;  %3950 = vrot.lane.b32.xlu1 %v8825_v37, %s6110_s26  ;;  %v8830_v53 = vld [vmem:[#allocation12_spill] sm:$0xff]  ;;  %v8832_v37 = vld [vmem:[#allocation23_spill] sm:$0xff] }
 0x62c   : >> { %v7980_v48 = vpop.permute.xlu2 %3354  ;;  %v8831_v33 = vpack.c.bf16 %v8829_v49, %v8830_v53  ;;  %v3309_v53 = vmul.f32 %v7228_v24, %v7851_v59 }
 0x62d   : >> { %v7972_v40 = vpop.permute.xlu0 %3344  ;;  %8826 = vst [vmem:[#allocation17_spill] sm:$0xff] %v7980_v48  ;;  %v3792_v56 = vpop.permute.xlu1 %3791  ;;  %v8834_v48 = vpack.c.bf16 %v8832_v37, %v8833_v9 }
 0x62e   : >> { %v7986_v6 = vsel %vm715_vm3, %v3792_v56, %v7888_v23 }
 0x62f   : >> { %8828 = vst [vmem:[#allocation25_spill] sm:$0xff] %v7986_v6  ;;  %v8836_v6 = vld [vmem:[#allocation27_spill] sm:$0xff] }
 0x630   : >> { %v4059_v59 = vmul.f32 %v8817_v26, %v8836_v6 }
 0x632   : >> { %3952 = vrot.lane.b32.xlu2 %v8831_v33, %s6110_s26 }
 0x633   : >> { %3954 = vrot.lane.b32.xlu0 %v3918_v47, %s6110_s26  ;;  %4115 = vrot.lane.b32.xlu1 %v8834_v48, %s6109_s25  ;;  %v3459_v47 = vmul.f32 %v7253_v17, %v7856_v27 }
 0x634   : >> { %v8003_v42 = vpop.permute.xlu2 %3505 }
 0x635   : >> { %v3502_v3 = vpop.permute.xlu0 %3501  ;;  %v3107_v49 = vpop.permute.xlu1 %3106  ;;  %v3474_v48 = vpack.c.bf16 %v3462_v39, %v3459_v47  ;;  %v3460_v39 = vmul.f32 %v7256_v18, %v7895_v34  ;;  %v3457_v47 = vmul.f32 %v7256_v18, %v7909_v7  ;;  %v4056_v34 = vmul.f32 %v8817_v26, %v8806_v35 }
 0x636   : >> { %v8001_v56 = vsel %vm743_vm4, %v7864_v38, %v3502_v3  ;;  %v8013_v33 = vsel %vm509_vm8, %v3107_v49, %v7911_v44  ;;  %v3304_v38 = vmul.f32 %v7261_v14, %v7909_v7  ;;  %v3306_v3 = vmul.f32 %v7228_v24, %v7856_v27 }
 0x637   : >> { %8835 = vst [vmem:[#allocation29_spill] sm:$0xff] %v8001_v56  ;;  %v8837_v56 = vld [vmem:[#allocation28_spill] sm:$0xff] }
 0x638   : >> { %v3319_v37 = vpack.c.bf16 %v3307_v58, %v3304_v38  ;;  %v3321_v9 = vpack.c.bf16 %v3309_v53, %v3306_v3  ;;  %v4062_v49 = vmul.f32 %v8817_v26, %v8837_v56  ;;  %v3472_v53 = vpack.c.bf16 %v3460_v39, %v3457_v47 }
 0x639   : >> { %v8838_v38 = vpack.c.bf16 %v7590_v4, %v7596_v19  ;;  %v3461_v19 = vmul.f32 %v7274_v57, %v7923_v51  ;;  %v3458_v3 = vmul.f32 %v7274_v57, %v7926_v28  ;;  %v8839_v51 = vld [vmem:[#allocation24_spill] sm:$0xff] }
 0x63a   : >> { %3362 = vrot.lane.b32.xlu2 %v3319_v37, %s6112_s12  ;;  %v4077_v58 = vpack.c.bf16 %v4062_v49, %v4059_v59  ;;  %v4227_v59 = vmul.f32 %v7550_v20, %v8818_v31  ;;  %v8840_v49 = vld [vmem:[#allocation30_spill] sm:$0xff] }
 0x63b   : >> { %3519 = vrot.lane.b32.xlu0 %v3474_v48, %s6115_s15  ;;  %3366 = vrot.lane.b32.xlu1 %v3321_v9, %s6112_s12  ;;  %v4053_v48 = vmul.f32 %v8817_v26, %v8804_v30  ;;  %v3473_v9 = vpack.c.bf16 %v3461_v19, %v3458_v3  ;;  %v8841_v39 = vpack.c.bf16 %v8839_v51, %v8840_v49  ;;  %s5798_s12 = smul.u32 72, %s6097_s27  ;;  %s1242_s27 = sadd.s32 1, %s6097_s27  }
 0x63c   : >> { %v8030_v24 = vpop.permute.xlu2 %3799  ;;  %v8096_v3 = vsel %vm715_vm3, %v7888_v23, %v7901_v0  ;;  %v8847_v51 = vpack.c.bf16 %v7606_v63, %v7602_v11  ;;  %v4218_v0 = vmul.f32 %v7550_v20, %v8836_v6  ;;  %v8848_v49 = vpack.c.bf16 %v7654_v25, %v7620_v54  ;;  %p1239_p4 = scmp.ge.s32.totalorder %s1242_s27, 8  }
 0x63d   : >> { %v3111_v17 = vpop.permute.xlu0 %3110  ;;  %v8032_v27 = vpop.permute.xlu1 %3352  ;;  %v4074_v37 = vpack.c.bf16 %v4056_v34, %v4053_v48  ;;  %v8844_v48 = vld [vmem:[#allocation32_spill] sm:$0xff]  ;;  %v8845_v34 = vld [vmem:[#allocation31_spill] sm:$0xff]  ;;  %v8849_v11 = vpack.c.bf16 %v7692_v15, %v7688_v29  ;;  %v4212_v6 = vmul.f32 %v7550_v20, %v8804_v30  ;;  %v8850_v54 = vpack.c.bf16 %v7741_v22, %v7738_v36  ;;  %s8886_s21 = smov (%p1239_p4), 113   ;;  %s8891_s13 = smov (%p1239_p4), 1  }
 0x63e   : >> { %v8028_v14 = vsel %vm509_vm8, %v7911_v44, %v3111_v17  ;;  %v8846_v19 = vpack.c.bf16 %v8844_v48, %v8845_v34  ;;  %v8851_v29 = vpack.c.bf16 %v7777_v45, %v7762_v52  ;;  %v4209_v30 = vmul.f32 %v7550_v20, %v8822_v1  ;;  %s8893_s29 = smov (%p1239_p4), 17  }
 0x63f   : >> { %v8852_v36 = vpack.c.bf16 %v7774_v41, %v7720_v60  ;;  %v8853_v60 = vpack.c.bf16 %v7783_v32, %v7726_v21  ;;  %v8855_v34 = vpack.c.bf16 %v7789_v10, %v7768_v62  ;;  %v8856_v21 = vpack.c.bf16 %v7786_v13, %v7765_v8  ;;  %v8857_v62 = vld [vmem:[#allocation10_spill] sm:$0xff]  ;;  %v8859_v13 = vld [vmem:[#allocation35_spill] sm:$0xff] }
 0x640   : > { %vm5071_vm11 = vcmask (%p1239_p4), 1040384  }
 0x642   : >> { %4117 = vrot.lane.b32.xlu2 %v8838_v38, %s6109_s25  ;;  %v4050_v38 = vmul.f32 %v8817_v26, %v8822_v1  ;;  %v8854_v1 = vpack.c.bf16 %v7780_v55, %v7723_v46 }
 0x643   : >> { %4119 = vrot.lane.b32.xlu0 %v4077_v58, %s6109_s25  ;;  %3515 = vrot.lane.b32.xlu1 %v3472_v53, %s6115_s15 }
 0x644   : >> { %v8054_v7 = vpop.permute.xlu2 %3958 }
 0x645   : >> { %v8043_v44 = vpop.permute.xlu0 %3197  ;;  %v8058_v4 = vpop.permute.xlu1 %3503 }
 0x646   : >> { %v8052_v18 = vsel %vm565_vm6, %v8043_v44, %v3200_v12  ;;  %v4224_v12 = vmul.f32 %v7550_v20, %v8816_v5  ;;  %v8842_v5 = vld [vmem:[#allocation33_spill] sm:$0xff] }
 0x647   : >> { %v8843_v53 = vpack.c.bf16 %v7582_v61, %v8842_v5  ;;  %v4047_v61 = vmul.f32 %v8817_v26, %v8827_v2  ;;  %v4221_v26 = vmul.f32 %v7550_v20, %v8837_v56  ;;  %v4215_v56 = vmul.f32 %v7550_v20, %v8806_v35 }
 0x648   : >> { %v4239_v47 = vpack.c.bf16 %v4227_v59, %v4224_v12 }
 0x649   : >> { %v4071_v59 = vpack.c.bf16 %v4050_v38, %v4047_v61  ;;  %v4206_v38 = vmul.f32 %v7550_v20, %v8827_v2 }
 0x64a   : >> { %3517 = vrot.lane.b32.xlu2 %v3473_v9, %s6115_s15  ;;  %s8240_s15 = scalar_lea.vmem %s8630_s7, %s5798_s12  ;;  %s8890_s12 = smov (%p1239_p4), 111  }
 0x64b   : >> { %4113 = vrot.lane.b32.xlu0 %v4074_v37, %s6109_s25  ;;  %4109 = vrot.lane.b32.xlu1 %v8841_v39, %s6109_s25  ;;  %v4230_v45 = vpack.c.bf16 %v4209_v30, %v4206_v38  ;;  %v8869_v38 = vld [vmem:[#allocation40_spill] sm:$0xff] }
 0x64c   : >> { %v8074_v57 = vpop.permute.xlu2 %3114 }
 0x64d   : >> { %v8064_v17 = vpop.permute.xlu0 %3350  ;;  %v3798_v28 = vpop.permute.xlu1 %3797 }
 0x64e   : >> { %v8078_v58 = vsel %vm715_vm3, %v3798_v28, %v8030_v24 }
 0x652   : >> { %4111 = vrot.lane.b32.xlu2 %v8843_v53, %s6109_s25  ;;  %v4233_v53 = vpack.c.bf16 %v4215_v56, %v4212_v6  ;;  %v8866_v6 = vld [vmem:[#allocation36_spill] sm:$0xff] }
 0x653   : >> { %4284 = vrot.lane.b32.xlu0 %v4239_v47, %s6108_s24  ;;  %4103 = vrot.lane.b32.xlu1 %v8846_v19, %s6109_s25  ;;  %v4236_v47 = vpack.c.bf16 %v4221_v26, %v4218_v0 }
 0x654   : >> { %v8098_v37 = vpop.permute.xlu2 %3205 }
 0x655   : >> { %v8085_v31 = vpop.permute.xlu0 %3507  ;;  %v3957_v9 = vpop.permute.xlu1 %3956 }
 0x656   : >> { %v8104_v12 = vsel %vm627_vm1, %v3957_v9, %v8054_v7  ;;  %v8858_v9 = vpack.c.bf16 %v7795_v16, %v8857_v62  ;;  %v8862_v16 = vld [vmem:[#allocation39_spill] sm:$0xff] }
 0x65a   : >> { %4105 = vrot.lane.b32.xlu2 %v8847_v51, %s6109_s25 }
 0x65b   : >> { %4107 = vrot.lane.b32.xlu0 %v4071_v59, %s6109_s25  ;;  %4274 = vrot.lane.b32.xlu1 %v8848_v49, %s6108_s24  ;;  %v8860_v59 = vld [vmem:[#allocation34_spill] sm:$0xff] }
 0x65c   : >> { %v3357_v39 = vpop.permute.xlu2 %3356  ;;  %v8861_v51 = vpack.c.bf16 %v8859_v13, %v8860_v59  ;;  %v8873_v13 = vld [vmem:[#allocation5_spill] sm:$0xff] }
 0x65d   : >> { %v3117_v23 = vpop.permute.xlu0 %3116  ;;  %v3113_v28 = vpop.permute.xlu1 %3112 }
 0x65e   : >> { %v3129_v10 = vsel %vm509_vm8, %v8074_v57, %v3117_v23  ;;  %v3128_v30 = vsel %vm509_vm8, %v3113_v28, %v8074_v57 }
 0x662   : >> { %4276 = vrot.lane.b32.xlu2 %v8849_v11, %s6108_s24 }
 0x663   : >> { %4278 = vrot.lane.b32.xlu0 %v4236_v47, %s6108_s24  ;;  %3809 = vrot.lane.b32.xlu1 %v8850_v54, %s6114_s23 }
 0x664   : >> { %v8134_v25 = vpop.permute.xlu2 %3511 }
 0x665   : >> { %v8124_v63 = vpop.permute.xlu0 %3201  ;;  %v8136_v5 = vpop.permute.xlu1 %3203 }
 0x66a   : >> { %3811 = vrot.lane.b32.xlu2 %v8851_v29, %s6114_s23  ;;  %v3218_v29 = vsel %vm565_vm6, %v8136_v5, %v8098_v37  ;;  %v2898_v37 = vld [vmem:[%s2896_s28 + $0x8] sm:$0xff]  ;;  %s8892_s23 = smov (%p1239_p4), 16  }
 0x66b   : >> { %4272 = vrot.lane.b32.xlu0 %v4233_v53, %s6108_s24  ;;  %3968 = vrot.lane.b32.xlu1 %v8852_v36, %s6110_s26  ;;  %v8868_v36 = vld [vmem:[#allocation41_spill] sm:$0xff] }
 0x66c   : >> { %v8152_v35 = vpop.permute.xlu2 %3805 }
 0x66d   : >> { %v3359_v15 = vpop.permute.xlu0 %3358  ;;  %v3361_v48 = vpop.permute.xlu1 %3360 }
 0x66e   : >> { %v8150_v22 = vsel %vm655_vm5, %v3357_v39, %v3359_v15  ;;  %v8157_v52 = vsel %vm655_vm5, %v3359_v15, %v3361_v48  ;;  %v8863_v39 = vld [vmem:[#allocation38_spill] sm:$0xff]  ;;  %v2897_v15 = vld [vmem:[%s2896_s28] sm:$0xff]  ;;  %v8870_v48 = vpack.c.bf16 %v8868_v36, %v8869_v38  ;;  %v3524_v36 = vsel %vm743_vm4, %v8003_v42, %v8085_v31  ;;  %s8889_s28 = smov (%p1239_p4), 127  }
 0x66f   : >> { %v8864_v47 = vpack.c.bf16 %v8862_v16, %v8863_v39  ;;  %v8874_v16 = vld [vmem:[#allocation15_spill] sm:$0xff]  ;;  %v5811_v38 = vld [vmem:[%s8240_s15 + $0x20] sm:$0xff] }
 0x670   : >> { %5676 = vmatmul.msk.bf16.vlgmr.msrb.gmra.mxu1 %vm3140_vm10, %v5811_v38  ;;  %5675 = vmatmul.msk.bf16.vlgmr.msrb.gmra.mxu0 %vm3140_vm10, %v5811_v38 }
 0x672   : >> { %3970 = vrot.lane.b32.xlu2 %v8853_v60, %s6110_s26  ;;  %s8888_s26 = smov (%p1239_p4), 15  }
 0x673   : >> { %4266 = vrot.lane.b32.xlu0 %v4230_v45, %s6108_s24  ;;  %4121 = vrot.lane.b32.xlu1 %v8854_v1, %s6109_s25 }
 0x674   : >> { %v8170_v20 = vpop.permute.xlu2 %3964 }
 0x675   : >> { %v8164_v41 = vpop.permute.xlu0 %3513  ;;  %v8172_v2 = vpop.permute.xlu1 %3509 }
 0x67a   : >> { %4123 = vrot.lane.b32.xlu2 %v8855_v34, %s6109_s25  ;;  %v8871_v34 = vld [vmem:[#allocation7_spill] sm:$0xff]  ;;  %s8887_s25 = smov (%p1239_p4), 112  }
 0x67b   : >> { %4280 = vrot.lane.b32.xlu1 %v8856_v21, %s6108_s24 }
 0x67c   : >> { %v3121_v32 = vpop.permute.xlu2 %3120 }
 0x67d   : >> { %v3123_v19 = vpop.permute.xlu0 %3122  ;;  %v3804_v61 = vpop.permute.xlu1 %3803 }
 0x67e   : >> { %v3131_v46 = vsel %vm509_vm8, %v3121_v32, %v3123_v19  ;;  %v8185_v55 = vsel %vm715_vm3, %v3804_v61, %v8152_v35  ;;  %v5800_v19 = vld [vmem:[%s8240_s15 + $0x8] sm:$0xff] }
 0x67f   : >> { %3162 = vmatpush.bf16.msra.mxu3 %v3131_v46  ;;  %v8872_v61 = vld [vmem:[#allocation21_spill] sm:$0xff] }
 0x680   : >> { %v3215_v46 = vsel %vm565_vm6, %v8872_v61, %v8043_v44  ;;  %v8883_v61 = vld [vmem:[#allocation20_spill] sm:$0xff] }
 0x682   : >> { %4282 = vrot.lane.b32.xlu2 %v8858_v9, %s6108_s24 }
 0x683   : >> { %3163 = vmatpush.bf16.msra.mxu3 %v3129_v10  ;;  %4268 = vrot.lane.b32.xlu1 %v8861_v51, %s6108_s24 }
 0x684   : >> { %v3210_v26 = vpop.permute.xlu2 %3209 }
 0x685   : >> { %v3961_v8 = vpop.permute.xlu0 %3960  ;;  %v3963_v49 = vpop.permute.xlu1 %3962 }
 0x686   : >> { %v8199_v0 = vsel %vm627_vm1, %v8054_v7, %v3961_v8  ;;  %v8203_v23 = vsel %vm627_vm1, %v3963_v49, %v8170_v20  ;;  %v8865_v7 = vld [vmem:[#allocation37_spill] sm:$0xff] }
 0x687   : >> { %3164 = vmatpush.bf16.msra.mxu3 %v8028_v14  ;;  %v8867_v56 = vpack.c.bf16 %v8865_v7, %v8866_v6  ;;  %v8875_v7 = vld [vmem:[#allocation17_spill] sm:$0xff]  ;;  %v8876_v6 = vld [vmem:[#allocation6_spill] sm:$0xff] }
 0x68a   : >> { %4270 = vrot.lane.b32.xlu2 %v8864_v47, %s6108_s24 }
 0x68b   : >> { %3165 = vmatpush.bf16.msra.mxu3 %v7958_v43  ;;  %4262 = vrot.lane.b32.xlu1 %v8867_v56, %s6108_s24 }
 0x68c   : >> { %v8217_v53 = vpop.permute.xlu2 %3952 }
 0x68d   : >> { %v3212_v11 = vpop.permute.xlu0 %3211  ;;  %v3119_v14 = vpop.permute.xlu1 %3118 }
 0x68e   : >> { %v3220_v54 = vsel %vm565_vm6, %v3210_v26, %v3212_v11  ;;  %v3130_v43 = vsel %vm509_vm8, %v3119_v14, %v3121_v32  ;;  %5611 = vmatmul.msk.bf16.vlgmr.msra.gmra.mxu3 %vm3140_vm10, %v5800_v19  ;;  %v5801_v14 = vld [vmem:[%s8240_s15 + $0x10] sm:$0xff] }
 0x68f   : >> { %3250 = vmatpush.bf16.msrb.mxu3 %v3220_v54  ;;  %3148 = vmatpush.bf16.msra.mxu2 %v3130_v43 }
 0x692   : >> { %4264 = vrot.lane.b32.xlu2 %v8870_v48, %s6108_s24 }
 0x693   : >> { %3251 = vmatpush.bf16.msrb.mxu3 %v3218_v29  ;;  %4339 = vperm.xlu1 %5936, %v2897_v15   ;;  %v3526_v29 = vsel %vm743_vm4, %v8134_v25, %v8164_v41  ;;  %v8879_v41 = vld [vmem:[#allocation29_spill] sm:$0xff] }
 0x694   : >> { %3149 = vmatpush.bf16.msra.mxu2 %v3128_v30  ;;  %v3363_v60 = vpop.permute.xlu2 %3362  ;;  %v8877_v30 = vld [vmem:[#allocation19_spill] sm:$0xff] }
 0x695   : >> { %v8232_v45 = vpop.permute.xlu0 %4125  ;;  %v3208_v1 = vpop.permute.xlu1 %3207 }
 0x696   : >> { %v3219_v28 = vsel %vm565_vm6, %v3208_v1, %v3210_v26  ;;  %v3370_v26 = vsel %vm655_vm5, %v8064_v17, %v8032_v27  ;;  %v3371_v17 = vsel %vm655_vm5, %v8032_v27, %v8875_v7  ;;  %v5802_v1 = vld [vmem:[%s8240_s15 + $0x18] sm:$0xff] }
 0x697   : >> { %3252 = vmatpush.bf16.msrb.mxu3 %v8052_v18 }
 0x698   : >> { %3150 = vmatpush.bf16.msra.mxu2 %v8013_v33 }
 0x69a   : >> { %4344 = vperm.xlu2 %5934, %v2898_v37  }
 0x69b   : >> { %3253 = vmatpush.bf16.msrb.mxu3 %v7919_v50  ;;  %v3217_v50 = vsel %vm565_vm6, %v8124_v63, %v8136_v5  ;;  %v5799_v5 = vld [vmem:[%s8240_s15] sm:$0xff] }
 0x69c   : >> { %3151 = vmatpush.bf16.msra.mxu2 %v8871_v34  ;;  %v8246_v18 = vpop.permute.xlu2 %4117  ;;  %v8881_v34 = vld [vmem:[#allocation42_spill] sm:$0xff] }
 0x69d   : >> { %v3365_v57 = vpop.permute.xlu0 %3364  ;;  %v3951_v33 = vpop.permute.xlu1 %3950 }
 0x69e   : >> { %v8251_v21 = vsel %vm627_vm1, %v3951_v33, %v8217_v53  ;;  %v3374_v8 = vsel %vm655_vm5, %v3363_v60, %v3365_v57  ;;  %5617 = vmatmul.msk.bf16.vlgmr.msrb.gmra.mxu3 %vm3140_vm10, %v5799_v5  ;;  %v8878_v60 = vld [vmem:[#allocation4_spill] sm:$0xff]  ;;  %v8882_v33 = vld [vmem:[#allocation9_spill] sm:$0xff] }
 0x69f   : >> { %5610 = vmatmul.msk.bf16.vlgmr.msra.gmra.mxu2 %vm3140_vm10, %v5800_v19 }
 0x6a0   : >> { %3236 = vmatpush.bf16.msrb.mxu2 %v3219_v28 }
 0x6a4   : >> { %3237 = vmatpush.bf16.msrb.mxu2 %v3217_v50  ;;  %v3518_v10 = vpop.permute.xlu2 %3517  ;;  %v3818_v50 = vsel %vm715_vm3, %v8030_v24, %v8882_v33 }
 0x6a5   : >> { %v8257_v32 = vpop.permute.xlu0 %3954  ;;  %v4116_v62 = vpop.permute.xlu1 %4115 }
 0x6a6   : >> { %v8264_v9 = vsel %vm481_vm2, %v4116_v62, %v8246_v18  ;;  %v3975_v24 = vsel %vm627_vm1, %v8217_v53, %v8257_v32  ;;  %v8884_v32 = vld [vmem:[#allocation25_spill] sm:$0xff] }
 0x6a8   : >> { %3238 = vmatpush.bf16.msrb.mxu2 %v3215_v46 }
 0x6ac   : >> { %3239 = vmatpush.bf16.msrb.mxu2 %v8873_v13  ;;  %v8269_v59 = vpop.permute.xlu2 %4111 }
 0x6ad   : >> { %v3520_v63 = vpop.permute.xlu0 %3519  ;;  %v3367_v51 = vpop.permute.xlu1 %3366 }
 0x6ae   : >> { %v3375_v44 = vsel %vm655_vm5, %v3365_v57, %v3367_v51  ;;  %v3528_v54 = vsel %vm743_vm4, %v3518_v10, %v3520_v63  ;;  %v8880_v57 = vld [vmem:[#allocation14_spill] sm:$0xff] }
 0x6af   : >> { %5616 = vmatmul.msk.bf16.vlgmr.msrb.gmra.mxu2 %vm3140_vm10, %v5799_v5  ;;  %3405 = vmatpush.bf16.msra.mxu3 %v3375_v44  ;;  %v5813_v63 = vld [vmem:[%s8240_s15 + $0x30] sm:$0xff] }
 0x6b0   : >> { %3391 = vmatpush.bf16.msra.mxu2 %v3374_v8 }
 0x6b3   : >> { %3406 = vmatpush.bf16.msra.mxu3 %v8157_v52  ;;  %v3525_v52 = vsel %vm743_vm4, %v8172_v2, %v8134_v25  ;;  %v3523_v2 = vsel %vm743_vm4, %v8058_v4, %v8003_v42  ;;  %v3820_v42 = vsel %vm715_vm3, %v8152_v35, %v8880_v57  ;;  %v3979_v35 = vsel %vm627_vm1, %v8170_v20, %v8883_v61 }
 0x6b4   : >> { %3392 = vmatpush.bf16.msra.mxu2 %v8150_v22  ;;  %v3368_v22 = vsel %vm655_vm5, %v7972_v40, %v8874_v16  ;;  %v8284_v39 = vpop.permute.xlu2 %4105  ;;  %v3369_v40 = vsel %vm655_vm5, %v8874_v16, %v8876_v6 }
 0x6b5   : >> { %v8278_v49 = vpop.permute.xlu0 %4119  ;;  %v3516_v47 = vpop.permute.xlu1 %3515 }
 0x6b6   : >> { %v3527_v11 = vsel %vm743_vm4, %v3516_v47, %v3518_v10  ;;  %v4132_v20 = vsel %vm481_vm2, %v8246_v18, %v8278_v49  ;;  %v5814_v47 = vld [vmem:[%s8240_s15 + $0x38] sm:$0xff] }
 0x6b7   : >> { %3407 = vmatpush.bf16.msra.mxu3 %v3371_v17 }
 0x6b8   : >> { %3393 = vmatpush.bf16.msra.mxu2 %v3370_v26 }
 0x6bb   : >> { %3408 = vmatpush.bf16.msra.mxu3 %v3369_v40 }
 0x6bc   : >> { %3394 = vmatpush.bf16.msra.mxu2 %v3368_v22  ;;  %v8300_v27 = vpop.permute.xlu2 %4276 }
 0x6bd   : >> { %v8296_v56 = vpop.permute.xlu0 %4113  ;;  %v8302_v43 = vpop.permute.xlu1 %4109 }
 0x6be   : >> { %5626 = vmatmul.msk.bf16.vlgmr.msra.gmra.mxu3 %vm3140_vm10, %v5801_v14  ;;  %v4130_v53 = vsel %vm481_vm2, %v8269_v59, %v8296_v56  ;;  %v4129_v17 = vsel %vm481_vm2, %v8302_v43, %v8269_v59 }
 0x6bf   : >> { %3558 = vmatpush.bf16.msrb.mxu3 %v3528_v54  ;;  %5625 = vmatmul.msk.bf16.vlgmr.msra.gmra.mxu2 %vm3140_vm10, %v5801_v14 }
 0x6c0   : >> { %3544 = vmatpush.bf16.msrb.mxu2 %v3527_v11 }
 0x6c3   : >> { %3559 = vmatpush.bf16.msrb.mxu3 %v3526_v29 }
 0x6c4   : >> { %3545 = vmatpush.bf16.msrb.mxu2 %v3525_v52  ;;  %v3812_v4 = vpop.permute.xlu2 %3811 }
 0x6c5   : >> { %v4285_v15 = vpop.permute.xlu0 %4284  ;;  %v8317_v48 = vpop.permute.xlu1 %4103  ;;  %v3822_v25 = vsel %vm715_vm3, %v3812_v4, %v8878_v60 }
 0x6c7   : >> { %3560 = vmatpush.bf16.msrb.mxu3 %v3524_v36 }
 0x6c8   : >> { %3546 = vmatpush.bf16.msrb.mxu2 %v3523_v2 }
 0x6cb   : >> { %3561 = vmatpush.bf16.msrb.mxu3 %v8879_v41 }
 0x6cc   : >> { %3547 = vmatpush.bf16.msrb.mxu2 %v8877_v30  ;;  %v3971_v31 = vpop.permute.xlu2 %3970 }
 0x6cd   : >> { %v4108_v37 = vpop.permute.xlu0 %4107  ;;  %v8328_v28 = vpop.permute.xlu1 %4274  ;;  %v3981_v19 = vsel %vm627_vm1, %v3971_v31, %v8881_v34 }
 0x6ce   : >> { %5635 = vmatmul.msk.bf16.vlgmr.msrb.gmra.mxu3 %vm3140_vm10, %v5802_v1  ;;  %4011 = vmatpush.bf16.msra.mxu1 %v3981_v19  ;;  %v4128_v44 = vsel %vm481_vm2, %v8284_v39, %v4108_v37 }
 0x6cf   : >> { %3852 = vmatpush.bf16.msra.mxu3 %v3822_v25  ;;  %5634 = vmatmul.msk.bf16.vlgmr.msrb.gmra.mxu2 %vm3140_vm10, %v5802_v1 }
 0x6d2   : >> { %4012 = vmatpush.bf16.msra.mxu1 %v3979_v35 }
 0x6d3   : >> { %3853 = vmatpush.bf16.msra.mxu3 %v3820_v42 }
 0x6d4   : >> { %v4124_v46 = vpop.permute.xlu2 %4123 }
 0x6d5   : >> { %v3810_v10 = vpop.permute.xlu1 %3809  ;;  %v4134_v62 = vsel %vm481_vm2, %v4124_v46, %v8232_v45  ;;  %v4279_v8 = vpop.permute.xlu0 %4278 }
 0x6d6   : >> { %v3821_v13 = vsel %vm715_vm3, %v3810_v10, %v3812_v4  ;;  %4013 = vmatpush.bf16.msra.mxu1 %v8199_v0 }
 0x6d7   : >> { %3854 = vmatpush.bf16.msra.mxu3 %v3818_v50  ;;  %3838 = vmatpush.bf16.msra.mxu2 %v3821_v13 }
 0x6da   : >> { %4014 = vmatpush.bf16.msra.mxu1 %v3975_v24 }
 0x6db   : >> { %3855 = vmatpush.bf16.msra.mxu3 %v8096_v3  ;;  %v5812_v3 = vld [vmem:[%s8240_s15 + $0x28] sm:$0xff]  ;;  %3839 = vmatpush.bf16.msra.mxu2 %v8185_v55  ;;  %v4291_v55 = vsel %vm452_vm0, %v8300_v27, %v4279_v8 }
 0x6dc   : >> { %v4283_v45 = vpop.permute.xlu2 %4282 }
 0x6dd   : >> { %v3969_v5 = vpop.permute.xlu1 %3968  ;;  %v4293_v0 = vsel %vm452_vm0, %v4283_v45, %v4285_v15  ;;  %5694 = vmatmul.msk.bf16.vlgmr.msra.gmra.mxu1 %vm3140_vm10, %v5813_v63  ;;  %v4273_v18 = vpop.permute.xlu0 %4272 }
 0x6de   : >> { %v3980_v51 = vsel %vm627_vm1, %v3969_v5, %v3971_v31  ;;  %5685 = vmatmul.msk.bf16.vlgmr.msra.gmra.mxu3 %vm3140_vm10, %v5812_v3  ;;  %4323 = vmatpush.bf16.msrb.mxu1 %v4293_v0 }
 0x6df   : >> { %4164 = vmatpush.bf16.msrb.mxu3 %v4134_v62  ;;  %3840 = vmatpush.bf16.msra.mxu2 %v8078_v58 }
 0x6e0   : >> { %3997 = vmatpush.bf16.msra.mxu0 %v3980_v51 }
 0x6e2   : >> { %4324 = vmatpush.bf16.msrb.mxu1 %v4291_v55 }
 0x6e3   : >> { %4165 = vmatpush.bf16.msrb.mxu3 %v4132_v20  ;;  %3841 = vmatpush.bf16.msra.mxu2 %v8884_v32 }
 0x6e4   : >> { %3998 = vmatpush.bf16.msra.mxu0 %v8203_v23  ;;  %v4271_v58 = vpop.permute.xlu2 %4270 }
 0x6e5   : >> { %v4122_v26 = vpop.permute.xlu1 %4121  ;;  %v4289_v49 = vsel %vm452_vm0, %v4271_v58, %v4273_v18  ;;  %v4267_v22 = vpop.permute.xlu0 %4266 }
 0x6e6   : >> { %v4133_v16 = vsel %vm481_vm2, %v4122_v26, %v4124_v46  ;;  %5684 = vmatmul.msk.bf16.vlgmr.msra.gmra.mxu2 %vm3140_vm10, %v5812_v3  ;;  %4325 = vmatpush.bf16.msrb.mxu1 %v4289_v49 }
 0x6e7   : >> { %4166 = vmatpush.bf16.msrb.mxu3 %v4130_v53  ;;  %4150 = vmatpush.bf16.msrb.mxu2 %v4133_v16 }
 0x6e8   : >> { %3999 = vmatpush.bf16.msra.mxu0 %v8104_v12  ;;  %v5815_v12 = vld [vmem:[%s8240_s15 + $0x40] sm:$0xff] }
 0x6eb   : >> { %4167 = vmatpush.bf16.msrb.mxu3 %v4128_v44  ;;  %4151 = vmatpush.bf16.msrb.mxu2 %v8264_v9  ;;  %v4290_v9 = vsel %vm452_vm0, %v8328_v28, %v8300_v27 }
 0x6ec   : >> { %4000 = vmatpush.bf16.msra.mxu0 %v8251_v21  ;;  %v4265_v23 = vpop.permute.xlu2 %4264  ;;  %v4127_v21 = vsel %vm481_vm2, %v8317_v48, %v8284_v39 }
 0x6ed   : >> { %v4281_v11 = vpop.permute.xlu1 %4280  ;;  %v4287_v7 = vsel %vm452_vm0, %v4265_v23, %v4267_v22  ;;  %v3656_v4 = vpop.f32.mrf.mxu1 }
 0x6ee   : >> { %v4292_v52 = vsel %vm452_vm0, %v4281_v11, %v4283_v45  ;;  %5703 = vmatmul.msk.bf16.vlgmr.msrb.gmra.mxu3 %vm3140_vm10, %v5814_v47  ;;  %4326 = vmatpush.bf16.msrb.mxu1 %v4287_v7  ;;  %v3642_v37 = vpop.f32.mrf.mxu0 }
 0x6ef   : >> { %5693 = vmatmul.msk.bf16.vlgmr.msra.gmra.mxu0 %vm3140_vm10, %v5813_v63  ;;  %4152 = vmatpush.bf16.msrb.mxu2 %v4129_v17 }
 0x6f0   : >> { %4309 = vmatpush.bf16.msrb.mxu0 %v4292_v52 }
 0x6f1   : >> { %5712 = vmatmul.msk.bf16.vlgmr.msrb.gmra.mxu1 %vm3140_vm10, %v5815_v12 }
 0x6f3   : >> { %4153 = vmatpush.bf16.msrb.mxu2 %v4127_v21 }
 0x6f4   : >> { %4310 = vmatpush.bf16.msrb.mxu0 %v4290_v9 }
 0x6f5   : >> { %v4269_v59 = vpop.permute.xlu1 %4268  ;;  %v3658_v25 = vpop.f32.mrf.mxu1 }
 0x6f6   : >> { %v4288_v6 = vsel %vm452_vm0, %v4269_v59, %v4271_v58  ;;  %5702 = vmatmul.msk.bf16.vlgmr.msrb.gmra.mxu2 %vm3140_vm10, %v5814_v47  ;;  %v3644_v19 = vpop.f32.mrf.mxu0  ;;  %v2892_v58 = vld [vmem:[#allocation3] sm:$0xff] }
 0x6f8   : >> { %4311 = vmatpush.bf16.msrb.mxu0 %v4288_v6 }
 0x6fd   : >> { %v4263_v40 = vpop.permute.xlu1 %4262 }
 0x6fe   : >> { %v4286_v56 = vsel %vm452_vm0, %v4263_v40, %v4265_v23  ;;  %v4345_v40 = vpop.permute.xlu2 %4344 }
 0x6ff   : >> { %4312 = vmatpush.bf16.msrb.mxu0 %v4286_v56  ;;  %v2894_v56 = vld [vmem:[#allocation3 + $0x8] sm:$0xff] }
 0x702   : >> { %5711 = vmatmul.msk.bf16.vlgmr.msrb.gmra.mxu0 %vm3140_vm10, %v5815_v12 }
 0x705   : >> { %v4340_v44 = vpop.permute.xlu1 %4339 }
 0x711   : >> { %v3167_v39 = vpop.f32.mrf.mxu3 }
 0x719   : >> { %v3169_v14 = vpop.f32.mrf.mxu3 }
 0x721   : >> { %v3255_v43 = vpop.f32.mrf.mxu3 }
 0x722   : >> { %v3153_v54 = vpop.f32.mrf.mxu2  ;;  %v3256_v28 = vadd.f32 %v3255_v43, %v3167_v39 }
 0x729   : >> { %v3257_v29 = vpop.f32.mrf.mxu3 }
 0x72a   : >> { %v3155_v27 = vpop.f32.mrf.mxu2  ;;  %v3258_v46 = vadd.f32 %v3257_v29, %v3169_v14 }
 0x732   : >> { %v3241_v2 = vpop.f32.mrf.mxu2 }
 0x733   : >> { %v3242_v24 = vadd.f32 %v3241_v2, %v3153_v54 }
 0x73a   : >> { %v3243_v15 = vpop.f32.mrf.mxu2 }
 0x73b   : >> { %v3244_v26 = vadd.f32 %v3243_v15, %v3155_v27  ;;  %v2891_v15 = vld [vmem:[#allocation3 + $0x10] sm:$0xff] }
 0x741   : >> { %v3410_v30 = vpop.f32.mrf.mxu3 }
 0x742   : >> { %v3396_v36 = vpop.f32.mrf.mxu2  ;;  %v3416_v34 = vadd.f32 %v3410_v30, %v3256_v28  ;;  %v8885_v28 = vmov (%p1239_p4), 0  }
 0x743   : >> { %v3415_v63 = vadd.f32 %v3396_v36, %v3242_v24  ;;  %6081 = vset.pattern.permute.xlu2 (%p1239_p4), %v8885_v28  ;;  %6082 = vset.pattern.permute.xlu0 (%p1239_p4), %v8885_v28 }
 0x749   : >> { %v3412_v38 = vpop.f32.mrf.mxu3 }
 0x74a   : >> { %v3398_v48 = vpop.f32.mrf.mxu2  ;;  %v3418_v62 = vadd.f32 %v3412_v38, %v3258_v46 }
 0x74b   : >> { %v3417_v47 = vadd.f32 %v3398_v48, %v3244_v26 }
 0x751   : >> { %v3563_v60 = vpop.f32.mrf.mxu3 }
 0x752   : >> { %v3549_v41 = vpop.f32.mrf.mxu2  ;;  %v3569_v33 = vadd.f32 %v3563_v60, %v3416_v34 }
 0x753   : >> { %v3568_v0 = vadd.f32 %v3549_v41, %v3415_v63  ;;  %v2893_v41 = vld [vmem:[#allocation3 + $0x18] sm:$0xff] }
 0x754   : >> { %v3662_v10 = vadd.f32 %v3656_v4, %v3569_v33 }
 0x755   : >> { %v3661_v49 = vadd.f32 %v3642_v37, %v3568_v0 }
 0x759   : >> { %v3565_v1 = vpop.f32.mrf.mxu3 }
 0x75a   : >> { %v4016_v57 = vpop.f32.mrf.mxu1  ;;  %v3551_v42 = vpop.f32.mrf.mxu2  ;;  %v3571_v20 = vadd.f32 %v3565_v1, %v3418_v62 }
 0x75b   : >> { %v3570_v12 = vadd.f32 %v3551_v42, %v3417_v47  ;;  %v4529_v42 = vld [vmem:[%s8625_s2] sm:$0x22] (%p1239_p4) }
 0x75c   : >> { %v3664_v51 = vadd.f32 %v3658_v25, %v3571_v20  ;;  %v4531_v33 = vunpack.c.l.b16 (%p1239_p4), %v4529_v42 }
 0x75d   : >> { %v3663_v39 = vadd.f32 %v3644_v19, %v3570_v12 }
 0x761   : >> { %v3857_v31 = vpop.f32.mrf.mxu3 }
 0x762   : >> { %v4018_v50 = vpop.f32.mrf.mxu1  ;;  %v3863_v8 = vadd.f32 %v3857_v31, %v3662_v10  ;;  %v4823_v31 = vld [vmem:[%s8625_s2] sm:$0x88] (%p1239_p4) }
 0x763   : > { %v4826_v46 = vunpack.c.h.b16 (%p1239_p4), %v4823_v31 }
 0x764   : >> { %v4022_v3 = vadd.f32 %v4016_v57, %v3863_v8  ;;  %v4372_v57 = vld [vmem:[%s8625_s2] sm:$0x11] (%p1239_p4) }
 0x765   : > { %v4374_v34 = vunpack.c.l.b16 (%p1239_p4), %v4372_v57  ;;  %v4375_v19 = vunpack.c.h.b16 (%p1239_p4), %v4372_v57  ;;  %v8413_v0 = vpack.c.b16 (%p1239_p4), %v4826_v46, %v4826_v46 }
 0x767   : > { %v4376_v62 = vpack.c.b16 (%p1239_p4), %v4374_v34, %v4374_v34  ;;  %v4377_v8 = vpack.c.b16 (%p1239_p4), %v4375_v19, %v4375_v19 }
 0x769   : >> { %v3843_v61 = vpop.f32.mrf.mxu2  ;;  %v3859_v35 = vpop.f32.mrf.mxu3 }
 0x76a   : >> { %v3865_v55 = vadd.f32 %v3859_v35, %v3664_v51  ;;  %v3862_v23 = vadd.f32 %v3843_v61, %v3661_v49  ;;  %v4734_v61 = vld [vmem:[%s8625_s2] sm:$0x44] (%p1239_p4)  ;;  %v4825_v35 = vunpack.c.l.b16 (%p1239_p4), %v4823_v31 }
 0x76b   : > { %v4736_v10 = vunpack.c.l.b16 (%p1239_p4), %v4734_v61  ;;  %v4737_v63 = vunpack.c.h.b16 (%p1239_p4), %v4734_v61 }
 0x76c   : >> { %v4002_v13 = vpop.f32.mrf.mxu0  ;;  %v4024_v11 = vadd.f32 %v4018_v50, %v3865_v55  ;;  %v4532_v50 = vunpack.c.h.b16 (%p1239_p4), %v4529_v42  ;;  %v8411_v20 = vpack.c.b16 (%p1239_p4), %v4825_v35, %v4825_v35 }
 0x76d   : >> { %v4021_v59 = vadd.f32 %v4002_v13, %v3862_v23  ;;  %v4533_v13 = vpack.c.b16 (%p1239_p4), %v4531_v33, %v4531_v33  ;;  %v4738_v26 = vpack.c.b16 (%p1239_p4), %v4736_v10, %v4736_v10 }
 0x76e   : >> { %v4328_v18 = vpop.f32.mrf.mxu1  ;;  %v4534_v24 = vpack.c.b16 (%p1239_p4), %v4532_v50, %v4532_v50 }
 0x76f   : > { %v4536_v51 = vpack.i.b16 (%p1239_p4), %v4533_v13, %v4533_v13 }
 0x770   : > { %v4614_v55 = vshrl.u32 (%p1239_p4), %v4534_v24, 16 }
 0x771   : >> { %v3845_v45 = vpop.f32.mrf.mxu2  ;;  %v4169_v5 = vpop.f32.mrf.mxu3  ;;  %v4538_v49 = vperm.slane (%p1239_p4), %v4536_v51, 1 }
 0x772   : >> { %v4175_v53 = vadd.f32 %v4169_v5, %v4022_v3  ;;  %v3864_v43 = vadd.f32 %v3845_v45, %v3663_v39  ;;  %v4414_v3 = vshrl.u32 (%p1239_p4), %v4376_v62, 16  ;;  %v4418_v45 = vshrl.u32 (%p1239_p4), %v4377_v8, 16 }
 0x773   : > { %v4379_v5 = vpack.i.b16 (%p1239_p4), %v4376_v62, %v4376_v62  ;;  %v4615_v47 = vpack.i.b16 (%p1239_p4), %v4614_v55, %v4614_v55 }
 0x774   : >> { %v4334_v32 = vadd.f32 %v4328_v18, %v4175_v53  ;;  %v4004_v22 = vpop.f32.mrf.mxu0  ;;  %v4540_v53 = vpack.i.b16 (%p1239_p4), %v4534_v24, %v4534_v24  ;;  %v4610_v18 = vshrl.u32 (%p1239_p4), %v4533_v13, 16 }
 0x775   : >> { %v4023_v38 = vadd.f32 %v4004_v22, %v3864_v43  ;;  %v4741_v43 = vshrl.u32 (%p1239_p4), %v4738_v26, 16 }
 0x776   : >> { %v4348_v16 = vadd.f32 %v4340_v44, %v4334_v32  ;;  %v4330_v9 = vpop.f32.mrf.mxu1  ;;  %v4415_v32 = vpack.i.b16 (%p1239_p4), %v4414_v3, %v4414_v3  ;;  %v4611_v22 = vpack.i.b16 (%p1239_p4), %v4610_v18, %v4610_v18 }
 0x778   : >> { %v4352_v7 = vadd.f32 %v4348_v16, %v2892_v58  ;;  %v4383_v58 = vpack.i.b16 (%p1239_p4), %v4377_v8, %v4377_v8  ;;  %v4542_v16 = vperm.slane (%p1239_p4), %v4540_v53, 1  ;;  %v4417_v23 = vperm.slane (%p1239_p4), %v4415_v32, 0 }
 0x779   : >> { %v4155_v17 = vpop.f32.mrf.mxu2  ;;  %v4171_v52 = vpop.f32.mrf.mxu3 }
 0x77a   : >> { %4356 = vst [vmem:[#allocation3] sm:$0xff] %v4352_v7  ;;  %v4177_v21 = vadd.f32 %v4171_v52, %v4024_v11  ;;  %v4174_v54 = vadd.f32 %v4155_v17, %v4021_v59  ;;  %v4381_v7 = vperm.slane (%p1239_p4), %v4379_v5, 0  ;;  %v4739_v17 = vpack.c.b16 (%p1239_p4), %v4737_v63, %v4737_v63 }
 0x77b   : > { %v4543_v52 = vunpack.c.l.bf16 (%p1239_p4), %v4538_v49  ;;  %v4544_v12 = vunpack.c.l.bf16 (%p1239_p4), %v4542_v16  ;;  %v4422_v59 = vunpack.c.l.bf16 (%p1239_p4), %v4417_v23  ;;  %v4904_v23 = vshrl.u32 (%p1239_p4), %v8411_v20, 16 }
 0x77c   : >> { %v4336_v6 = vadd.f32 %v4330_v9, %v4177_v21  ;;  %v4613_v21 = vperm.slane (%p1239_p4), %v4611_v22, 1  ;;  %v4617_v9 = vperm.slane (%p1239_p4), %v4615_v47, 1 }
 0x77d   : > { %v6051_v39 = vpack.i.bf16 (%p1239_p4), %v4544_v12, %v4543_v52 }
 0x77e   : >> { %v4350_v14 = vadd.f32 %v4345_v40, %v4336_v6 }
 0x77f   : >> { %v4314_v27 = vpop.f32.mrf.mxu0  ;;  %6052 = vrot.lane.b32.xlu1 (%p1239_p4), %v6051_v39, %s8886_s21  ;;  %v4905_v39 = vpack.i.b16 (%p1239_p4), %v4904_v23, %v4904_v23 }
 0x780   : >> { %v4354_v2 = vadd.f32 %v4350_v14, %v2894_v56  ;;  %v4333_v29 = vadd.f32 %v4314_v27, %v4174_v54  ;;  %v4830_v56 = vpack.i.b16 (%p1239_p4), %v8411_v20, %v8411_v20  ;;  %v4834_v54 = vpack.i.b16 (%p1239_p4), %v8413_v0, %v8413_v0  ;;  %v4979_v20 = vld [vmem:[%s8625_s2 + $0x8] sm:$0x11] (%p1239_p4) }
 0x781   : >> { %v4157_v36 = vpop.f32.mrf.mxu2  ;;  %v4360_v33 = vld [vmem:[#allocation3] sm:$0xff] (%p1239_p4) }
 0x782   : >> { %4358 = vst [vmem:[#allocation3 + $0x8] sm:$0xff] %v4354_v2  ;;  %v4347_v30 = vadd.f32 %v4340_v44, %v4333_v29  ;;  %v4176_v48 = vadd.f32 %v4157_v36, %v4023_v38  ;;  %v4419_v44 = vpack.i.b16 (%p1239_p4), %v4418_v45, %v4418_v45  ;;  %v4832_v27 = vperm.slane (%p1239_p4), %v4830_v56, 3 }
 0x783   : > { %v4746_v2 = vshrl.u32 (%p1239_p4), %v4739_v17, 16  ;;  %v4392_v29 = vunpack.c.l.bf16 (%p1239_p4), %v4381_v7  ;;  %v4836_v36 = vperm.slane (%p1239_p4), %v4834_v54, 3  ;;  %v4981_v54 = vunpack.c.l.b16 (%p1239_p4), %v4979_v20 }
 0x784   : >> { %v4351_v4 = vadd.f32 %v4347_v30, %v2891_v15  ;;  %v4421_v11 = vperm.slane (%p1239_p4), %v4419_v44, 0  ;;  %v4618_v15 = vunpack.c.l.bf16 (%p1239_p4), %v4613_v21  ;;  %v4619_v30 = vunpack.c.l.bf16 (%p1239_p4), %v4617_v9 }
 0x786   : >> { %4355 = vst [vmem:[#allocation3 + $0x10] sm:$0xff] %v4351_v4  ;;  %v4423_v6 = vunpack.c.l.bf16 (%p1239_p4), %v4421_v11  ;;  %v4837_v4 = vunpack.c.l.bf16 (%p1239_p4), %v4832_v27  ;;  %v4908_v11 = vshrl.u32 (%p1239_p4), %v8413_v0, 16 }
 0x787   : >> { %v4316_v60 = vpop.f32.mrf.mxu0 }
 0x788   : >> { %v4335_v25 = vadd.f32 %v4316_v60, %v4176_v48  ;;  %v6041_v14 = vpack.i.bf16 (%p1239_p4), %v4423_v6, %v4422_v59  ;;  %v4742_v48 = vpack.i.b16 (%p1239_p4), %v4741_v43, %v4741_v43  ;;  %v4747_v60 = vpack.i.b16 (%p1239_p4), %v4746_v2, %v4746_v2 }
 0x789   : > { %v4362_v61 = vld [vmem:[#allocation3 + $0x8] sm:$0xff] (%p1239_p4) }
 0x78a   : >> { %v4349_v1 = vadd.f32 %v4345_v40, %v4335_v25  ;;  %1241 = sbr.rel (!%p1239_p4) target bundleno = 562 (0x232), region = 140  ;;  %v4385_v40 = vperm.slane (%p1239_p4), %v4383_v58, 0  ;;  %6042 = vrot.lane.b32.xlu0 (%p1239_p4), %v6041_v14, %s8887_s25  ;;  %v4838_v25 = vunpack.c.l.bf16 (%p1239_p4), %v4836_v36  ;;  %v4982_v14 = vunpack.c.h.b16 (%p1239_p4), %v4979_v20 }
 0x78c   : >> { %v4353_v37 = vadd.f32 %v4349_v1, %v2893_v41  ;;  %v4393_v38 = vunpack.c.l.bf16 (%p1239_p4), %v4385_v40  ;;  %v4744_v41 = vperm.slane (%p1239_p4), %v4742_v48, 2  ;;  %v4749_v1 = vperm.slane (%p1239_p4), %v4747_v60, 2 }
 0x78d   : > { %v6061_v57 = vpack.i.bf16 (%p1239_p4), %v4838_v25, %v4837_v4  ;;  %v4359_v19 = vld [vmem:[#allocation3 + $0x10] sm:$0xff] (%p1239_p4)  ;;  %v4983_v4 = vpack.c.b16 (%p1239_p4), %v4981_v54, %v4981_v54  ;;  %v4984_v48 = vpack.c.b16 (%p1239_p4), %v4982_v14, %v4982_v14 }
 0x78e   : >> { %4357 = vst [vmem:[#allocation3 + $0x18] sm:$0xff] %v4353_v37  ;;  %v6056_v37 = vpack.i.bf16 (%p1239_p4), %v4619_v30, %v4618_v15  ;;  %v6046_v42 = vpack.i.bf16 (%p1239_p4), %v4393_v38, %v4392_v29  ;;  %v4756_v31 = vunpack.c.l.bf16 (%p1239_p4), %v4744_v41  ;;  %v4757_v28 = vunpack.c.l.bf16 (%p1239_p4), %v4749_v1 }
 0x78f   : > { %6062 = vrot.lane.b32.xlu2 %v6061_v57, %s8888_s26  ;;  %v8425_v35 = vpack.c.bf16 %v4360_v33, %v4359_v19  ;;  %v4909_v29 = vpack.i.b16 %v4908_v11, %v4908_v11  ;;  %v4907_v41 = vperm.slane %v4905_v39, 3 }
 0x790   : > { %6057 = vrot.lane.b32.xlu1 %v6056_v37, %s8889_s28  ;;  %v6066_v34 = vpack.i.bf16 %v4757_v28, %v4756_v31  ;;  %v4986_v28 = vpack.i.b16 %v4983_v4, %v4983_v4 }
 0x791   : > { %4366 = vst [vmem:[#allocation2 + $0x4] sm:$0xff] %v8425_v35  ;;  %v4911_v1 = vperm.slane %v4909_v29, 3  ;;  %v4912_v19 = vunpack.c.l.bf16 %v4907_v41 }
 0x792   : > { %6047 = vrot.lane.b32.xlu0 %v6046_v42, %s8890_s12 }
 0x793   : > { %v4913_v33 = vunpack.c.l.bf16 %v4911_v1 }
 0x795   : > { %v4361_v50 = vld [vmem:[#allocation3 + $0x18] sm:$0xff] }
 0x796   : > { %v8427_v46 = vpack.c.bf16 %v4362_v61, %v4361_v50  ;;  %v4988_v61 = vperm.slane %v4986_v28, 0 }
 0x797   : > { %6067 = vrot.lane.b32.xlu2 %v6066_v34, %s8891_s13  ;;  %v4990_v34 = vpack.i.b16 %v4984_v48, %v4984_v48 }
 0x798   : > { %4367 = vst [vmem:[#allocation2 + $0x14] sm:$0xff] %v8427_v46  ;;  %v4368_v10 = vld [vmem:[#allocation2] sm:$0xff]  ;;  %v8438_v53 = vld [vmem:[#allocation2 + $0x8] sm:$0xff]   ;;  %v8524_v4 = vunpack.c.h.bf16 %v8427_v46 }
 0x799   : > { %v8431_v13 = vunpack.c.h.bf16 %v4368_v10  ;;  %v8444_v44 = vunpack.c.l.bf16 %v8438_v53  ;;  %v8449_v16 = vunpack.c.l.bf16 %v4368_v10  ;;  %v4992_v10 = vperm.slane %v4990_v34, 0  ;;  %v4413_v34 = vld [vmem:[%s8632_s9] sm:$0xf] }
 0x79f   : > { %v4370_v62 = vld [vmem:[#allocation2 + $0x10] sm:$0xff]  ;;  %v8440_v55 = vld [vmem:[#allocation2 + $0x18] sm:$0xff]  }
 0x7a0   : > { %v8433_v24 = vunpack.c.h.bf16 %v4370_v62  ;;  %v8447_v49 = vunpack.c.l.bf16 %v8440_v55  ;;  %v8451_v47 = vunpack.c.l.bf16 %v4370_v62  ;;  %v6071_v62 = vpack.i.bf16 %v4913_v33, %v4912_v19 }
 0x7f1   : > { %v6053_v22 = vpop.permute.xlu1 %6052 }
 0x7f2   : > { %v6055_v6 = vunpack.i.h.bf16 %v6053_v22  ;;  %v6054_v27 = vunpack.i.l.bf16 %v6053_v22 }
 0x7f4   : > { %v4557_v43 = vmul.f32 %v6055_v6, %v8444_v44  ;;  %v4560_v2 = vmul.f32 %v6055_v6, %v8447_v49  ;;  %v4551_v60 = vsel %vm627_vm1, %v6054_v27, %v6055_v6 }
 0x7f5   : > { %v4556_v42 = vmul.f32 %v4551_v60, %v8431_v13  ;;  %v4559_v31 = vmul.f32 %v4551_v60, %v8433_v24 }
 0x7f6   : > { %v4563_v25 = vpack.c.bf16 %v4560_v2, %v4557_v43 }
 0x7f7   : > { %v4562_v50 = vpack.c.bf16 %v4559_v31, %v4556_v42 }
 0x7fc   : > { %v6043_v8 = vpop.permute.xlu0 %6042 }
 0x7fd   : > { %v6045_v63 = vunpack.i.h.bf16 %v6043_v8  ;;  %v6044_v3 = vunpack.i.l.bf16 %v6043_v8  ;;  %v4993_v8 = vunpack.c.l.bf16 %v4988_v61 }
 0x7ff   : > { %v4430_v45 = vsel %vm481_vm2, %v6044_v3, %v6045_v63  ;;  %v4434_v15 = vmul.f32 %v6044_v3, %v8449_v16  ;;  %v4437_v30 = vmul.f32 %v6044_v3, %v8451_v47  ;;  %v4436_v36 = vmul.f32 %v6045_v63, %v8444_v44 }
 0x800   : > { %v4435_v5 = vmul.f32 %v4430_v45, %v8431_v13  ;;  %v4438_v51 = vmul.f32 %v4430_v45, %v8433_v24  ;;  %v4439_v38 = vmul.f32 %v6045_v63, %v8447_v49  ;;  %v4994_v63 = vunpack.c.l.bf16 %v4992_v10  ;;  %v5713_v10 = vld [vmem:[%s8632_s9 + $0x4] sm:$0xf] }
 0x801   : > { %v4440_v37 = vpack.c.bf16 %v4437_v30, %v4434_v15  ;;  %v4555_v45 = vmul.f32 %v6054_v27, %v8449_v16 }
 0x802   : > { %v4441_v18 = vpack.c.bf16 %v4438_v51, %v4435_v5  ;;  %v4442_v57 = vpack.c.bf16 %v4439_v38, %v4436_v36  ;;  %v6058_v3 = vpop.permute.xlu1 %6057  ;;  %v4558_v5 = vmul.f32 %v6054_v27, %v8451_v47  ;;  %v6076_v51 = vpack.i.bf16 %v4994_v63, %v4993_v8 }
 0x803   : > { %v8521_v38 = vunpack.c.h.bf16 %v8425_v35 }
 0x804   : > { %v6048_v32 = vpop.permute.xlu0 %6047  ;;  %4450 = vrot.lane.b32.xlu2 %v4441_v18, %s8892_s23  ;;  %v6059_v18 = vunpack.i.l.bf16 %v6058_v3 }
 0x805   : > { %v6050_v58 = vunpack.i.h.bf16 %v6048_v32  ;;  %v6049_v26 = vunpack.i.l.bf16 %v6048_v32  ;;  %v6060_v32 = vunpack.i.h.bf16 %v6058_v3 }
 0x806   : > { %v4633_v22 = vmul.f32 %v6059_v18, %v8451_v47 }
 0x807   : > { %v4406_v7 = vmul.f32 %v6050_v58, %v8444_v44  ;;  %v4409_v17 = vmul.f32 %v6050_v58, %v8447_v49  ;;  %v4400_v52 = vsel %vm452_vm0, %v6049_v26, %v6050_v58  ;;  %v4404_v12 = vmul.f32 %v6049_v26, %v8449_v16 }
 0x808   : > { %v4405_v21 = vmul.f32 %v4400_v52, %v8431_v13  ;;  %v4408_v9 = vmul.f32 %v4400_v52, %v8433_v24  ;;  %v4407_v59 = vmul.f32 %v6049_v26, %v8451_v47  ;;  %v4561_v58 = vpack.c.bf16 %v4558_v5, %v4555_v45  ;;  %v6063_v52 = vpop.permute.xlu2 %6062 }
 0x809   : > { %v4412_v0 = vpack.c.bf16 %v4409_v17, %v4406_v7  ;;  %v4630_v26 = vmul.f32 %v6059_v18, %v8449_v16  ;;  %v4632_v23 = vmul.f32 %v6060_v32, %v8444_v44  ;;  %v4635_v11 = vmul.f32 %v6060_v32, %v8447_v49 }
 0x80a   : > { %v4411_v40 = vpack.c.bf16 %v4408_v9, %v4405_v21  ;;  %v4410_v56 = vpack.c.bf16 %v4407_v59, %v4404_v12  ;;  %v8493_v16 = vunpack.c.h.bf16 %v8438_v53  ;;  %v8496_v47 = vunpack.c.h.bf16 %v8440_v55 }
 0x80b   : > { %4494 = vrot.lane.b32.xlu1 %v4412_v0, %s8893_s29  ;;  %v4636_v7 = vpack.c.bf16 %v4633_v22, %v4630_v26  ;;  %v4638_v17 = vpack.c.bf16 %v4635_v11, %v4632_v23  ;;  %v8499_v44 = vunpack.c.l.bf16 %v8425_v35  ;;  %v8502_v49 = vunpack.c.l.bf16 %v8427_v46 }
 0x80c   : > { %4492 = vrot.lane.b32.xlu0 %v4411_v40, %s8893_s29  ;;  %4490 = vrot.lane.b32.xlu2 %v4410_v56, %s8893_s29  ;;  %v6065_v59 = vunpack.i.h.bf16 %v6063_v52  ;;  %v6064_v6 = vunpack.i.l.bf16 %v6063_v52  ;;  %v4626_v29 = vsel %vm715_vm3, %v6059_v18, %v6060_v32 }
 0x80d   : > { %v4631_v15 = vmul.f32 %v4626_v29, %v8431_v13  ;;  %v4634_v30 = vmul.f32 %v4626_v29, %v8433_v24 }
 0x80e   : > { %v4851_v55 = vmul.f32 %v6065_v59, %v8493_v16  ;;  %v4854_v54 = vmul.f32 %v6065_v59, %v8496_v47  ;;  %v4849_v14 = vmul.f32 %v6064_v6, %v8499_v44  ;;  %v4852_v27 = vmul.f32 %v6064_v6, %v8502_v49 }
 0x80f   : > { %v4637_v36 = vpack.c.bf16 %v4634_v30, %v4631_v15 }
 0x810   : > { %v6068_v12 = vpop.permute.xlu2 %6067  ;;  %v4857_v43 = vpack.c.bf16 %v4854_v54, %v4851_v55  ;;  %v4855_v2 = vpack.c.bf16 %v4852_v27, %v4849_v14  ;;  %v5729_v55 = vld [vmem:[#allocation2 + $0x14] sm:$0xf0] }
 0x811   : > { %v6070_v21 = vunpack.i.h.bf16 %v6068_v12  ;;  %v6069_v9 = vunpack.i.l.bf16 %v6068_v12 }
 0x813   : > { %4448 = vrot.lane.b32.xlu1 %v4440_v37, %s8892_s23  ;;  %v4770_v20 = vmul.f32 %v6070_v21, %v8493_v16  ;;  %v4773_v0 = vmul.f32 %v6070_v21, %v8496_v47  ;;  %v4768_v40 = vmul.f32 %v6069_v9, %v8499_v44  ;;  %v4771_v53 = vmul.f32 %v6069_v9, %v8502_v49 }
 0x814   : > { %4452 = vrot.lane.b32.xlu0 %v4442_v57, %s8892_s23  ;;  %4573 = vrot.lane.b32.xlu2 %v4563_v25, %s8888_s26  ;;  %v4764_v48 = vsel %vm743_vm4, %v6069_v9, %v6070_v21  ;;  %v4845_v25 = vsel %vm655_vm5, %v6064_v6, %v6065_v59 }
 0x815   : > { %v4776_v56 = vpack.c.bf16 %v4773_v0, %v4770_v20  ;;  %v4774_v39 = vpack.c.bf16 %v4771_v53, %v4768_v40  ;;  %v4769_v60 = vmul.f32 %v4764_v48, %v8521_v38  ;;  %v4772_v13 = vmul.f32 %v4764_v48, %v8524_v4  ;;  %v5718_v53 = vld [vmem:[%s8632_s9 + $0x8] sm:$0xf]  ;;  %v5724_v48 = vld [vmem:[%s8632_s9 + $0x10] sm:$0xf] }
 0x816   : > { %v4850_v41 = vmul.f32 %v4845_v25, %v8521_v38  ;;  %v4853_v1 = vmul.f32 %v4845_v25, %v8524_v4 }
 0x817   : > { %v4775_v24 = vpack.c.bf16 %v4772_v13, %v4769_v60 }
 0x818   : > { %v4856_v35 = vpack.c.bf16 %v4853_v1, %v4850_v41  ;;  %v5735_v1 = vld [vmem:[%s8632_s9 + $0x14] sm:$0xf] }
 0x81b   : > { %4571 = vrot.lane.b32.xlu1 %v4562_v50, %s8888_s26 }
 0x81c   : > { %6072 = vrot.lane.b32.xlu0 %v6071_v62, %s8892_s23  ;;  %4646 = vrot.lane.b32.xlu2 %v4637_v36, %s8891_s13 }
 0x823   : > { %6077 = vrot.lane.b32.xlu1 %v6076_v51, %s8893_s29 }
 0x824   : > { %4569 = vrot.lane.b32.xlu0 %v4561_v58, %s8888_s26  ;;  %4784 = vrot.lane.b32.xlu2 %v4775_v24, %s8889_s28 }
 0x82b   : > { %4644 = vrot.lane.b32.xlu1 %v4636_v7, %s8891_s13 }
 0x82c   : > { %4648 = vrot.lane.b32.xlu0 %v4638_v17, %s8891_s13  ;;  %4865 = vrot.lane.b32.xlu2 %v4856_v35, %s8886_s21 }
 0x833   : > { %4782 = vrot.lane.b32.xlu1 %v4774_v39, %s8889_s28  ;;  %v5816_v39 = vld [vmem:[#allocation2 + $0x8] sm:$0xf] }
 0x834   : > { %4786 = vrot.lane.b32.xlu0 %v4776_v56, %s8889_s28 }
 0x83b   : > { %4863 = vrot.lane.b32.xlu1 %v4855_v2, %s8886_s21 }
 0x83c   : > { %4867 = vrot.lane.b32.xlu0 %v4857_v43, %s8886_s21 }
 0x85e   : > { %v4451_v46 = vpop.permute.xlu2 %4450 }
 0x866   : > { %v4491_v57 = vpop.permute.xlu2 %4490 }
 0x86e   : > { %v4574_v62 = vpop.permute.xlu2 %4573 }
 0x876   : > { %v4647_v30 = vpop.permute.xlu2 %4646 }
 0x87d   : > { %v4495_v37 = vpop.permute.xlu1 %4494 }
 0x87e   : > { %v4493_v42 = vpop.permute.xlu0 %4492  ;;  %v4785_v60 = vpop.permute.xlu2 %4784 }
 0x87f   : > { %v4496_v31 = vsel %vm565_vm6, %v4491_v57, %v4493_v42  ;;  %v4497_v28 = vsel %vm565_vm6, %v4493_v42, %v4495_v37 }
 0x880   : > { %4510 = vmatpush.bf16.msra.mxu2 %v4496_v31  ;;  %4523 = vmatpush.bf16.msra.mxu3 %v4497_v28  ;;  %v5738_v31 = vld [vmem:[%s8632_s9 + $0x18] sm:$0xf]  ;;  %v4363_v28 = vld [vmem:[%s8633_s10] sm:$0xff] }
 0x883   : > { %5717 = vmatmul.msk.bf16.vlgmr.msra.gmra.mxu3 %vm509_vm8, %v4413_v34  ;;  %5716 = vmatmul.msk.bf16.vlgmr.msra.gmra.mxu2 %vm509_vm8, %v4413_v34 }
 0x885   : > { %v4449_v19 = vpop.permute.xlu1 %4448 }
 0x886   : > { %v4453_v33 = vpop.permute.xlu0 %4452  ;;  %v4454_v50 = vsel %vm509_vm8, %v4449_v19, %v4451_v46  ;;  %v4866_v37 = vpop.permute.xlu2 %4865 }
 0x887   : > { %4468 = vmatpush.bf16.msra.mxu0 %v4454_v50  ;;  %v4455_v61 = vsel %vm509_vm8, %v4451_v46, %v4453_v33 }
 0x888   : > { %4481 = vmatpush.bf16.msra.mxu1 %v4455_v61 }
 0x88a   : > { %5714 = vmatmul.msk.bf16.vlgmr.msra.gmra.mxu0 %vm509_vm8, %v5713_v10 }
 0x88b   : > { %5715 = vmatmul.msk.bf16.vlgmr.msra.gmra.mxu1 %vm509_vm8, %v5713_v10 }
 0x88d   : > { %v4572_v8 = vpop.permute.xlu1 %4571 }
 0x88e   : > { %v6073_v63 = vpop.permute.xlu0 %6072  ;;  %v4576_v3 = vsel %vm655_vm5, %v4572_v8, %v4574_v62 }
 0x88f   : > { %v6075_v45 = vunpack.i.h.bf16 %v6073_v63  ;;  %v6074_v5 = vunpack.i.l.bf16 %v6073_v63  ;;  %4602 = vmatpush.bf16.msrb.mxu1 %v4576_v3  ;;  %v5741_v3 = vld [vmem:[%s8632_s9 + $0x1c] sm:$0xf] }
 0x891   : > { %v4926_v51 = vmul.f32 %v6075_v45, %v8493_v16  ;;  %v4929_v18 = vmul.f32 %v6075_v45, %v8496_v47  ;;  %v4924_v32 = vmul.f32 %v6074_v5, %v8499_v44  ;;  %v4927_v58 = vmul.f32 %v6074_v5, %v8502_v49 }
 0x892   : > { %v4920_v26 = vsel %vm509_vm8, %v6074_v5, %v6075_v45 }
 0x893   : > { %v4932_v22 = vpack.c.bf16 %v4929_v18, %v4926_v51  ;;  %v4930_v23 = vpack.c.bf16 %v4927_v58, %v4924_v32  ;;  %v4925_v11 = vmul.f32 %v4920_v26, %v8521_v38  ;;  %v4928_v7 = vmul.f32 %v4920_v26, %v8524_v4 }
 0x895   : > { %4942 = vrot.lane.b32.xlu0 %v4932_v22, %s8887_s25  ;;  %4938 = vrot.lane.b32.xlu1 %v4930_v23, %s8887_s25  ;;  %v6078_v17 = vpop.permute.xlu1 %6077  ;;  %v4931_v52 = vpack.c.bf16 %v4928_v7, %v4925_v11 }
 0x896   : > { %v4570_v12 = vpop.permute.xlu0 %4569  ;;  %v6080_v21 = vunpack.i.h.bf16 %v6078_v17  ;;  %v6079_v9 = vunpack.i.l.bf16 %v6078_v17  ;;  %v5744_v17 = vld [vmem:[%s8632_s9 + $0x20] sm:$0xf] }
 0x897   : > { %4940 = vrot.lane.b32.xlu2 %v4931_v52, %s8887_s25  ;;  %v4575_v59 = vsel %vm655_vm5, %v4570_v12, %v4572_v8 }
 0x898   : > { %4589 = vmatpush.bf16.msrb.mxu0 %v4575_v59  ;;  %v5007_v6 = vmul.f32 %v6080_v21, %v8493_v16  ;;  %v5010_v20 = vmul.f32 %v6080_v21, %v8496_v47  ;;  %v5005_v0 = vmul.f32 %v6079_v9, %v8499_v44  ;;  %v5008_v40 = vmul.f32 %v6079_v9, %v8502_v49  ;;  %v5727_v44 = vld [vmem:[#allocation2 + $0x4] sm:$0xf]  ;;  %v5817_v49 = vld [vmem:[#allocation2 + $0x10] sm:$0xf0] }
 0x899   : > { %v5001_v56 = vsel %vm565_vm6, %v6079_v9, %v6080_v21  ;;  %v5732_v47 = vor.u32 %v5816_v39, %v5729_v55  ;;  %v5728_v2 = vor.u32 %v5817_v49, %v5727_v44 }
 0x89a   : > { %v5013_v54 = vpack.c.bf16 %v5010_v20, %v5007_v6  ;;  %v5011_v14 = vpack.c.bf16 %v5008_v40, %v5005_v0  ;;  %v5006_v27 = vmul.f32 %v5001_v56, %v8521_v38  ;;  %v5009_v16 = vmul.f32 %v5001_v56, %v8524_v4  ;;  %v5721_v4 = vld [vmem:[%s8632_s9 + $0xc] sm:$0xf] }
 0x89b   : > { %5720 = vmatmul.msk.bf16.vlgmr.msrb.gmra.mxu1 %vm509_vm8, %v5718_v53  ;;  %5719 = vmatmul.msk.bf16.vlgmr.msrb.gmra.mxu0 %vm509_vm8, %v5718_v53 }
 0x89c   : > { %v5012_v43 = vpack.c.bf16 %v5009_v16, %v5006_v27  ;;  %4722 = vmatpush.bf16.msra.mxu1 %v5732_v47  ;;  %4709 = vmatpush.bf16.msra.mxu0 %v5728_v2 }
 0x89d   : > { %5023 = vrot.lane.b32.xlu0 %v5013_v54, %s8890_s12  ;;  %5019 = vrot.lane.b32.xlu1 %v5011_v14, %s8890_s12  ;;  %v4645_v15 = vpop.permute.xlu1 %4644 }
 0x89e   : > { %v4649_v29 = vpop.permute.xlu0 %4648  ;;  %v4650_v38 = vsel %vm743_vm4, %v4645_v15, %v4647_v30 }
 0x89f   : > { %5021 = vrot.lane.b32.xlu2 %v5012_v43, %s8890_s12  ;;  %v4651_v36 = vsel %vm743_vm4, %v4647_v30, %v4649_v29  ;;  %4664 = vmatpush.bf16.msrb.mxu2 %v4650_v38 }
 0x8a0   : > { %4677 = vmatpush.bf16.msrb.mxu3 %v4651_v36 }
 0x8a2   : > { %5722 = vmatmul.msk.bf16.vlgmr.msrb.gmra.mxu2 %vm509_vm8, %v5721_v4 }
 0x8a3   : > { %5723 = vmatmul.msk.bf16.vlgmr.msrb.gmra.mxu3 %vm509_vm8, %v5721_v4 }
 0x8a5   : > { %v4783_v24 = vpop.permute.xlu1 %4782 }
 0x8a6   : > { %v4787_v13 = vpop.permute.xlu0 %4786  ;;  %v4788_v25 = vsel %vm715_vm3, %v4783_v24, %v4785_v60 }
 0x8a7   : > { %v4789_v41 = vsel %vm715_vm3, %v4785_v60, %v4787_v13  ;;  %4802 = vmatpush.bf16.msra.mxu2 %v4788_v25  ;;  %5062 = vperm.xlu2 %6081, %v4363_v28   ;;  %v5067_v28 = vld [vmem:[%s6207_s30] sm:$0x3] }
 0x8a8   : > { %4815 = vmatpush.bf16.msra.mxu3 %v4789_v41 }
 0x8ab   : > { %5734 = vmatmul.msk.bf16.vlgmr.msra.gmra.mxu1 %vm509_vm8, %v5724_v48  ;;  %5733 = vmatmul.msk.bf16.vlgmr.msra.gmra.mxu0 %vm509_vm8, %v5724_v48 }
 0x8ad   : > { %v4864_v46 = vpop.permute.xlu1 %4863 }
 0x8ae   : > { %v4868_v35 = vpop.permute.xlu0 %4867  ;;  %v4869_v57 = vsel %vm627_vm1, %v4864_v46, %v4866_v37 }
 0x8af   : > { %v4870_v42 = vsel %vm627_vm1, %v4866_v37, %v4868_v35  ;;  %4883 = vmatpush.bf16.msrb.mxu0 %v4869_v57 }
 0x8b0   : > { %4896 = vmatpush.bf16.msrb.mxu1 %v4870_v42  ;;  %v5075_v42 = vlaneseq }
 0x8b2   : > { %5736 = vmatmul.msk.bf16.vlgmr.msra.gmra.mxu2 %vm509_vm8, %v5735_v1  ;;  %vm5077_vm12 = vcmp.lt.s32.totalorder %v5075_v42, 256 }
 0x8b3   : > { %5737 = vmatmul.msk.bf16.vlgmr.msra.gmra.mxu3 %vm509_vm8, %v5735_v1 }
 0x8bb   : > { %5740 = vmatmul.msk.bf16.vlgmr.msrb.gmra.mxu1 %vm509_vm8, %v5738_v31  ;;  %5739 = vmatmul.msk.bf16.vlgmr.msrb.gmra.mxu0 %vm509_vm8, %v5738_v31 }
 0x8f1   : > { %v4941_v34 = vpop.permute.xlu2 %4940 }
 0x8f9   : > { %v5022_v51 = vpop.permute.xlu2 %5021 }
 0x901   : > { %v5063_v1 = vpop.permute.xlu2 %5062 }
 0x906   : > { %v4525_v19 = vpop.f32.mrf.mxu3  ;;  %v4512_v33 = vpop.f32.mrf.mxu2 }
 0x907   : > { %v4943_v50 = vpop.permute.xlu0 %4942  ;;  %v4939_v61 = vpop.permute.xlu1 %4938 }
 0x908   : > { %v4945_v10 = vsel %vm481_vm2, %v4941_v34, %v4943_v50  ;;  %v4944_v62 = vsel %vm481_vm2, %v4939_v61, %v4941_v34  ;;  %v4483_v8 = vpop.f32.mrf.mxu1  ;;  %v4470_v63 = vpop.f32.mrf.mxu0 }
 0x909   : > { %4958 = vmatpush.bf16.msrb.mxu2 %v4944_v62  ;;  %4971 = vmatpush.bf16.msrb.mxu3 %v4945_v10  ;;  %v4526_v45 = vadd.f32 %v4525_v19, %v4483_v8  ;;  %v4513_v5 = vadd.f32 %v4512_v33, %v4470_v63 }
 0x90c   : > { %5742 = vmatmul.msk.bf16.vlgmr.msrb.gmra.mxu2 %vm509_vm8, %v5741_v3  ;;  %5743 = vmatmul.msk.bf16.vlgmr.msrb.gmra.mxu3 %vm509_vm8, %v5741_v3 }
 0x90e   : > { %v4527_v18 = vpop.f32.mrf.mxu3  ;;  %v4514_v32 = vpop.f32.mrf.mxu2 }
 0x90f   : > { %v5024_v58 = vpop.permute.xlu0 %5023  ;;  %v5020_v26 = vpop.permute.xlu1 %5019 }
 0x910   : > { %v5026_v22 = vsel %vm452_vm0, %v5022_v51, %v5024_v58  ;;  %v5025_v23 = vsel %vm452_vm0, %v5020_v26, %v5022_v51  ;;  %v4485_v11 = vpop.f32.mrf.mxu1  ;;  %v4472_v7 = vpop.f32.mrf.mxu0 }
 0x911   : > { %5039 = vmatpush.bf16.msra.mxu0 %v5025_v23  ;;  %5052 = vmatpush.bf16.msra.mxu1 %v5026_v22 }
 0x914   : > { %5745 = vmatmul.msk.bf16.vlgmr.msra.gmra.mxu0 %vm509_vm8, %v5744_v17  ;;  %5746 = vmatmul.msk.bf16.vlgmr.msra.gmra.mxu1 %vm509_vm8, %v5744_v17 }
 0x918   : > { %v4604_v52 = vpop.f32.mrf.mxu1  ;;  %v4591_v12 = vpop.f32.mrf.mxu0 }
 0x919   : > { %v4609_v21 = vadd.f32 %v4604_v52, %v4526_v45  ;;  %v4608_v9 = vadd.f32 %v4591_v12, %v4513_v5 }
 0x920   : > { %v4606_v59 = vpop.f32.mrf.mxu1  ;;  %v4593_v6 = vpop.f32.mrf.mxu0 }
 0x925   : > { %v4666_v53 = vpop.f32.mrf.mxu2 }
 0x926   : > { %v4679_v40 = vpop.f32.mrf.mxu3  ;;  %v4683_v39 = vadd.f32 %v4666_v53, %v4608_v9 }
 0x927   : > { %v4684_v56 = vadd.f32 %v4679_v40, %v4609_v21 }
 0x928   : > { %v4724_v20 = vpop.f32.mrf.mxu1  ;;  %v4711_v0 = vpop.f32.mrf.mxu0 }
 0x929   : > { %v4729_v55 = vadd.f32 %v4724_v20, %v4684_v56  ;;  %v4728_v54 = vadd.f32 %v4711_v0, %v4683_v39 }
 0x92d   : > { %v4668_v47 = vpop.f32.mrf.mxu2 }
 0x92e   : > { %v4681_v16 = vpop.f32.mrf.mxu3 }
 0x930   : > { %v4726_v14 = vpop.f32.mrf.mxu1  ;;  %v4713_v27 = vpop.f32.mrf.mxu0 }
 0x935   : > { %v4804_v49 = vpop.f32.mrf.mxu2 }
 0x936   : > { %v4817_v44 = vpop.f32.mrf.mxu3  ;;  %v4821_v2 = vadd.f32 %v4804_v49, %v4728_v54 }
 0x937   : > { %v4822_v43 = vadd.f32 %v4817_v44, %v4729_v55 }
 0x938   : > { %v4898_v29 = vpop.f32.mrf.mxu1  ;;  %v4885_v15 = vpop.f32.mrf.mxu0 }
 0x939   : > { %v4903_v30 = vadd.f32 %v4898_v29, %v4822_v43  ;;  %v4902_v36 = vadd.f32 %v4885_v15, %v4821_v2 }
 0x93d   : > { %v4806_v38 = vpop.f32.mrf.mxu2 }
 0x93e   : > { %v4819_v4 = vpop.f32.mrf.mxu3 }
 0x940   : > { %v4887_v48 = vpop.f32.mrf.mxu0  ;;  %v4900_v60 = vpop.f32.mrf.mxu1 }
 0x98f   : > { %v4960_v13 = vpop.f32.mrf.mxu2  ;;  %v4973_v24 = vpop.f32.mrf.mxu3 }
 0x990   : > { %v4977_v25 = vadd.f32 %v4960_v13, %v4902_v36  ;;  %v4978_v41 = vadd.f32 %v4973_v24, %v4903_v30 }
 0x991   : > { %v5041_v35 = vpop.f32.mrf.mxu0  ;;  %v5054_v46 = vpop.f32.mrf.mxu1 }
 0x992   : > { %v5058_v37 = vadd.f32 %v5041_v35, %v4977_v25  ;;  %v5059_v57 = vadd.f32 %v5054_v46, %v4978_v41 }
 0x994   : > { %v5066_v31 = vadd.f32 %v5063_v1, %v5059_v57  ;;  %v5065_v34 = vadd.f32 %v5063_v1, %v5058_v37 }
 0x996   : > { %v5070_v19 = vrot.slane %v5066_v31, 7 }
 0x997   : > { %v4975_v33 = vpop.f32.mrf.mxu3  ;;  %v4962_v50 = vpop.f32.mrf.mxu2 }
 0x998   : > { %v5072_v61 = vsel %vm5071_vm11, %v5065_v34, %v5070_v19 }
 0x999   : > { %v5074_v10 = vadd.f32 %v5072_v61, %v5067_v28  ;;  %v5056_v62 = vpop.f32.mrf.mxu1  ;;  %v5043_v8 = vpop.f32.mrf.mxu0 }
 0x99b   : > { %5079 = vst.msk [vmem:[%s6212_s14] sm:$0x3] %vm5077_vm12, %v5074_v10 }
 0x99c PF: > { %s21_s17 = sadd.s32 1, %s6093_s17  }
 0x99d   : > { %p18_p5 = scmp.ge.s32.totalorder %s21_s17, 4  }
 0x99f   :  { %20 = sbr.rel (!%p18_p5) target bundleno = 1 (0x1), region = 151 }

</bundles_post_ra>
